<compile_context>
chip_gen: v7x
topology: tpu7x:2x2x1
jax: 0.10.0
libtpu: 0.0.40
codegen_flags: <defaults>
</compile_context>

<pallas_src>
import numpy as np

import jax
import jax.numpy as jnp
from jax.experimental import pallas as pl
from jax.experimental.pallas import tpu as pltpu

NUM_LAYERS = 2
NHEAD = 4
MSG_TOKEN_LEN = 32
SHIFT_STRIDES = (1, -1, 2, -2)
EPS = 1e-5


# ------------------------- module-config construction ------------------------

def _build_msg_shift(num_layers):
    """Mirrors TransformerEncoder.__init__ msg_shift construction."""
    msg_shift = []
    for lid in range(num_layers):
        if lid % 2 == 0:
            msg_shift.append(tuple(SHIFT_STRIDES))
        else:
            msg_shift.append(tuple(-s for s in SHIFT_STRIDES))
    if num_layers % 2 == 1:
        msg_shift[-1] = None
    return tuple(msg_shift)


MSG_SHIFT = _build_msg_shift(NUM_LAYERS)


def _build_shift_perm(strides):
    """(MSG_TOKEN_LEN, MSG_TOKEN_LEN) permutation: shifted = P @ msg_tokens.

    Per chunk c of length clen, out[r] = in[(r - s_c) % clen]  (== torch.roll).
    """
    perm = np.zeros((MSG_TOKEN_LEN, MSG_TOKEN_LEN), dtype=np.float32)
    if strides is None:
        np.fill_diagonal(perm, 1.0)
        return perm
    clen = MSG_TOKEN_LEN // len(strides)
    for c, s in enumerate(strides):
        for r in range(clen):
            perm[c * clen + r, c * clen + (r - s) % clen] = 1.0
    return perm


# TODO(synk): the reference forward indexes self.msg_shift[layer_count] AFTER
# incrementing layer_count (off-by-one -> IndexError on the last layer) and
# splits the msg tokens by slicing dim 1 (batch) twice; we implement the evident
# intent: layer `lid` uses msg_shift[lid] and the msg tokens are the trailing
# msg_token_len entries of the sequence dim.
SHIFT_PERMS = np.stack([_build_shift_perm(MSG_SHIFT[l]) for l in range(NUM_LAYERS)])


# ----------------------------- in-kernel helpers -----------------------------

def _layer_norm(x, g, b):
    mu = jnp.mean(x, axis=-1, keepdims=True)
    var = jnp.mean((x - mu) ** 2, axis=-1, keepdims=True)
    return (x - mu) * jax.lax.rsqrt(var + EPS) * g + b


def _mha(qk_in, v_in, w_qk, b_qk, w_v, b_v, wo3, b_o):
    """nn.MultiheadAttention with q = k = qk_in, value = v_in.

    w_qk: (D, 2D) = [Wq | Wk] fused.  wo3: (H, hd, D) out-proj weight split per
    head so head-merge + output projection is one batched contraction.
    """
    L, D = qk_in.shape
    H = NHEAD
    hd = D // H
    scale = 1.0 / (hd ** 0.5)

    qk = jnp.dot(qk_in, w_qk, preferred_element_type=jnp.float32) + b_qk   # (L, 2D)
    v = jnp.dot(v_in, w_v, preferred_element_type=jnp.float32) + b_v       # (L, D)

    # Head-batched (H, L, hd) tensors (static lane slices stacked on a new
    # leading axis -> batched MXU contractions instead of per-head micro-dots).
    q3 = jnp.stack([qk[:, h * hd:(h + 1) * hd] for h in range(H)], axis=0) * scale
    k3 = jnp.stack([qk[:, D + h * hd:D + (h + 1) * hd] for h in range(H)], axis=0)
    v3 = jnp.stack([v[:, h * hd:(h + 1) * hd] for h in range(H)], axis=0)

    s = jnp.einsum("hqd,hkd->hqk", q3, k3, preferred_element_type=jnp.float32)
    s = s - jnp.max(s, axis=-1, keepdims=True)
    e = jnp.exp(s)
    p = e * pl.reciprocal(jnp.sum(e, axis=-1, keepdims=True), approx=True)
    o3 = jnp.einsum("hqk,hkd->hqd", p, v3, preferred_element_type=jnp.float32)

    # concat-over-heads followed by out_proj == sum_h head_h @ Wo[rows_h]
    out = jnp.sum(
        jnp.einsum("hqd,hde->hqe", o3, wo3, preferred_element_type=jnp.float32),
        axis=0)
    return out + b_o


def _msg_shift(x, perm):
    """Replace the trailing MSG_TOKEN_LEN tokens with their rolled version."""
    base = x.shape[0] - MSG_TOKEN_LEN
    shifted = jnp.dot(perm, x[base:, :], preferred_element_type=jnp.float32)
    return jnp.concatenate([x[:base, :], shifted], axis=0)


# -------------------------------- fused kernel -------------------------------

def encoder_kernel(
    src_ref, pos_ref, perm_ref,
    w_qk, b_qk, w_v, b_v, wo3, b_o,
    w1, b1, w2, b2,
    n1_g, n1_b, n2_g, n2_b,
    fn_g, fn_b,
    out_ref,
):
    x = src_ref[0].astype(jnp.float32)   # (L, D) — one batch element per grid step
    p = pos_ref[0].astype(jnp.float32)   # (L, D)

    for lid in range(NUM_LAYERS):        # statically unrolled: both layers fused
        # --- TransformerEncoderLayer.forward_post (normalize_before=False) ---
        qk_in = x + p                    # q = k = with_pos_embed(src, pos)
        attn = _mha(qk_in, x,
                    w_qk[lid], b_qk[lid], w_v[lid], b_v[lid], wo3[lid], b_o[lid])
        x = _layer_norm(x + attn, n1_g[lid], n1_b[lid])
        h = jnp.maximum(
            jnp.dot(x, w1[lid], preferred_element_type=jnp.float32) + b1[lid], 0.0)
        ff = jnp.dot(h, w2[lid], preferred_element_type=jnp.float32) + b2[lid]
        x = _layer_norm(x + ff, n2_g[lid], n2_b[lid])

        # --- msg-token shift (chunked roll of trailing tokens) ---
        x = _msg_shift(x, perm_ref[lid])

    # final norm (self.norm = LayerNorm(d_model))
    x = _layer_norm(x, fn_g[...], fn_b[...])
    out_ref[0] = x.astype(out_ref.dtype)


# --------------------------------- JAX wrapper --------------------------------

_WEIGHT_ORDER = ("w_qk", "b_qk", "w_v", "b_v", "wo3", "b_o",
                 "w1", "b1", "w2", "b2",
                 "n1_g", "n1_b", "n2_g", "n2_b",
                 "fn_g", "fn_b")


def _const_index_map(ndim):
    def index_map(b):
        return (0,) * ndim
    return index_map


def transformer_encoder_forward(src, pos, params):
    """Mirrors TransformerEncoder.forward for this config. src/pos: (L, B, D)."""
    # TODO(synk): src_mask / src_key_padding_mask are not implemented (this
    # config passes None); dropout is identity (eval mode); the zero-initialized
    # msg_tokens tensor in the reference forward is dead code and is omitted.
    L, B, D = src.shape
    assert L > MSG_TOKEN_LEN and D % NHEAD == 0
    if pos is None:
        pos = jnp.zeros_like(src)

    x = jnp.transpose(src, (1, 0, 2))        # (B, L, D)
    p = jnp.transpose(pos, (1, 0, 2))
    shift_perm = jnp.asarray(SHIFT_PERMS)    # (num_layers, 32, 32)
    weights = [params[k] for k in _WEIGHT_ORDER]

    def data_spec():
        return pl.BlockSpec((1, L, D), lambda b: (b, 0, 0))

    in_specs = ([data_spec(), data_spec(),
                 pl.BlockSpec(shift_perm.shape, _const_index_map(shift_perm.ndim))]
                + [pl.BlockSpec(w.shape, _const_index_map(w.ndim)) for w in weights])

    out = pl.pallas_call(
        encoder_kernel,
        out_shape=jax.ShapeDtypeStruct((B, L, D), src.dtype),
        grid=(B,),
        in_specs=in_specs,
        out_specs=data_spec(),
        compiler_params=pltpu.CompilerParams(dimension_semantics=("parallel",)),
    )(x, p, shift_perm, *weights)
    return jnp.transpose(out, (1, 0, 2))     # back to (L, B, D)


# ------------------------ deterministic parameter init ------------------------

def init_params(key, d_model, dim_feedforward):
    D, FF, H = d_model, dim_feedforward, NHEAD
    hd = D // H

    def dense(k, shape):
        return jax.random.normal(k, shape, jnp.float32) * 0.05

    ks = jax.random.split(key, 6)
    w_q = dense(ks[0], (NUM_LAYERS, D, D))
    w_k = dense(ks[1], (NUM_LAYERS, D, D))
    w_o = dense(ks[2], (NUM_LAYERS, D, D))
    params = {
        # fused [Wq | Wk] applied to (src + pos); Wv applied to src
        "w_qk": jnp.concatenate([w_q, w_k], axis=-1),               # (NL, D, 2D)
        "b_qk": jnp.zeros((NUM_LAYERS, 1, 2 * D), jnp.float32),
        "w_v": dense(ks[3], (NUM_LAYERS, D, D)),
        "b_v": jnp.zeros((NUM_LAYERS, 1, D), jnp.float32),
        # out-proj weight pre-split per head: rows h*hd:(h+1)*hd -> wo3[:, h]
        "wo3": w_o.reshape(NUM_LAYERS, H, hd, D),
        "b_o": jnp.zeros((NUM_LAYERS, 1, D), jnp.float32),
        "w1": dense(ks[4], (NUM_LAYERS, D, FF)),
        "b1": jnp.zeros((NUM_LAYERS, 1, FF), jnp.float32),
        "w2": dense(ks[5], (NUM_LAYERS, FF, D)),
        "b2": jnp.zeros((NUM_LAYERS, 1, D), jnp.float32),
        "n1_g": jnp.ones((NUM_LAYERS, 1, D), jnp.float32),
        "n1_b": jnp.zeros((NUM_LAYERS, 1, D), jnp.float32),
        "n2_g": jnp.ones((NUM_LAYERS, 1, D), jnp.float32),
        "n2_b": jnp.zeros((NUM_LAYERS, 1, D), jnp.float32),
        "fn_g": jnp.ones((1, D), jnp.float32),
        "fn_b": jnp.zeros((1, D), jnp.float32),
    }
    return params


# ------------------------------------ main ------------------------------------

if __name__ == "__main__":
    key = jax.random.PRNGKey(0)
    k_src, k_pos, k_par = jax.random.split(key, 3)

    # hw = 64 tokens (32 content + 32 msg tokens), batch = 2, d_model = 32, ffn = 64
    L, B, D, FF = 64, 2, 32, 64

    src = jax.random.normal(k_src, (L, B, D), jnp.float32)
    pos = jax.random.normal(k_pos, (L, B, D), jnp.float32)
    params = init_params(k_par, D, FF)

    out = transformer_encoder_forward(src, pos, params)
    jax.block_until_ready(out)

    assert out.shape == (L, B, D)
    assert bool(jnp.all(jnp.isfinite(out)))
    print("KERNEL_OK")
</pallas_src>

<mosaic_0001>
module attributes {stable_mosaic.version = 11 : i64} {
  func.func @encoder_kernel(%arg0: i32, %arg1: memref<1x64x32xf32, #tpu.memory_space<vmem>>, %arg2: memref<1x64x32xf32, #tpu.memory_space<vmem>>, %arg3: memref<2x32x32xf32, #tpu.memory_space<vmem>>, %arg4: memref<2x32x64xf32, #tpu.memory_space<vmem>>, %arg5: memref<2x1x64xf32, #tpu.memory_space<vmem>>, %arg6: memref<2x32x32xf32, #tpu.memory_space<vmem>>, %arg7: memref<2x1x32xf32, #tpu.memory_space<vmem>>, %arg8: memref<2x4x8x32xf32, #tpu.memory_space<vmem>>, %arg9: memref<2x1x32xf32, #tpu.memory_space<vmem>>, %arg10: memref<2x32x64xf32, #tpu.memory_space<vmem>>, %arg11: memref<2x1x64xf32, #tpu.memory_space<vmem>>, %arg12: memref<2x64x32xf32, #tpu.memory_space<vmem>>, %arg13: memref<2x1x32xf32, #tpu.memory_space<vmem>>, %arg14: memref<2x1x32xf32, #tpu.memory_space<vmem>>, %arg15: memref<2x1x32xf32, #tpu.memory_space<vmem>>, %arg16: memref<2x1x32xf32, #tpu.memory_space<vmem>>, %arg17: memref<2x1x32xf32, #tpu.memory_space<vmem>>, %arg18: memref<1x32xf32, #tpu.memory_space<vmem>>, %arg19: memref<1x32xf32, #tpu.memory_space<vmem>>, %arg20: memref<1x64x32xf32, #tpu.memory_space<vmem>>) attributes {dimension_semantics = [#tpu.dimension_semantics<parallel>], iteration_bounds = array<i64: 2>, scalar_prefetch = 0 : i64, scratch_operands = 0 : i64, tpu.core_type = #tpu.core_type<tc>, window_params = [{transform_indices = @transform_0, window_bounds = array<i64: 1, 64, 32>}, {transform_indices = @transform_1, window_bounds = array<i64: 1, 64, 32>}, {pipeline_mode = #tpu.pipeline_mode<synchronous>, transform_indices = @transform_2, window_bounds = array<i64: 2, 32, 32>}, {pipeline_mode = #tpu.pipeline_mode<synchronous>, transform_indices = @transform_3, window_bounds = array<i64: 2, 32, 64>}, {pipeline_mode = #tpu.pipeline_mode<synchronous>, transform_indices = @transform_4, window_bounds = array<i64: 2, 1, 64>}, {pipeline_mode = #tpu.pipeline_mode<synchronous>, transform_indices = @transform_5, window_bounds = array<i64: 2, 32, 32>}, {pipeline_mode = #tpu.pipeline_mode<synchronous>, transform_indices = @transform_6, window_bounds = array<i64: 2, 1, 32>}, {pipeline_mode = #tpu.pipeline_mode<synchronous>, transform_indices = @transform_7, window_bounds = array<i64: 2, 4, 8, 32>}, {pipeline_mode = #tpu.pipeline_mode<synchronous>, transform_indices = @transform_8, window_bounds = array<i64: 2, 1, 32>}, {pipeline_mode = #tpu.pipeline_mode<synchronous>, transform_indices = @transform_9, window_bounds = array<i64: 2, 32, 64>}, {pipeline_mode = #tpu.pipeline_mode<synchronous>, transform_indices = @transform_10, window_bounds = array<i64: 2, 1, 64>}, {pipeline_mode = #tpu.pipeline_mode<synchronous>, transform_indices = @transform_11, window_bounds = array<i64: 2, 64, 32>}, {pipeline_mode = #tpu.pipeline_mode<synchronous>, transform_indices = @transform_12, window_bounds = array<i64: 2, 1, 32>}, {pipeline_mode = #tpu.pipeline_mode<synchronous>, transform_indices = @transform_13, window_bounds = array<i64: 2, 1, 32>}, {pipeline_mode = #tpu.pipeline_mode<synchronous>, transform_indices = @transform_14, window_bounds = array<i64: 2, 1, 32>}, {pipeline_mode = #tpu.pipeline_mode<synchronous>, transform_indices = @transform_15, window_bounds = array<i64: 2, 1, 32>}, {pipeline_mode = #tpu.pipeline_mode<synchronous>, transform_indices = @transform_16, window_bounds = array<i64: 2, 1, 32>}, {pipeline_mode = #tpu.pipeline_mode<synchronous>, transform_indices = @transform_17, window_bounds = array<i64: 1, 32>}, {pipeline_mode = #tpu.pipeline_mode<synchronous>, transform_indices = @transform_18, window_bounds = array<i64: 1, 32>}, {transform_indices = @transform_19, window_bounds = array<i64: 1, 64, 32>}]} {
    %c0 = arith.constant 0 : index
    %c0_0 = arith.constant 0 : index
    %c0_1 = arith.constant 0 : index
    %0 = vector.load %arg1[%c0, %c0_0, %c0_1] : memref<1x64x32xf32, #tpu.memory_space<vmem>>, vector<1x64x32xf32>
    %1 = vector.shape_cast %0 : vector<1x64x32xf32> to vector<64x32xf32>
    %c0_2 = arith.constant 0 : index
    %c0_3 = arith.constant 0 : index
    %c0_4 = arith.constant 0 : index
    %2 = vector.load %arg2[%c0_2, %c0_3, %c0_4] : memref<1x64x32xf32, #tpu.memory_space<vmem>>, vector<1x64x32xf32>
    %3 = vector.shape_cast %2 : vector<1x64x32xf32> to vector<64x32xf32>
    %4 = arith.addf %1, %3 : vector<64x32xf32>
    %c0_5 = arith.constant 0 : index
    %c0_6 = arith.constant 0 : index
    %c0_7 = arith.constant 0 : index
    %5 = vector.load %arg4[%c0_5, %c0_6, %c0_7] : memref<2x32x64xf32, #tpu.memory_space<vmem>>, vector<1x32x64xf32>
    %6 = vector.shape_cast %5 : vector<1x32x64xf32> to vector<32x64xf32>
    %c0_8 = arith.constant 0 : index
    %c0_9 = arith.constant 0 : index
    %c0_10 = arith.constant 0 : index
    %7 = vector.load %arg5[%c0_8, %c0_9, %c0_10] : memref<2x1x64xf32, #tpu.memory_space<vmem>>, vector<1x1x64xf32>
    %8 = vector.shape_cast %7 : vector<1x1x64xf32> to vector<1x64xf32>
    %c0_11 = arith.constant 0 : index
    %c0_12 = arith.constant 0 : index
    %c0_13 = arith.constant 0 : index
    %9 = vector.load %arg6[%c0_11, %c0_12, %c0_13] : memref<2x32x32xf32, #tpu.memory_space<vmem>>, vector<1x32x32xf32>
    %10 = vector.shape_cast %9 : vector<1x32x32xf32> to vector<32x32xf32>
    %c0_14 = arith.constant 0 : index
    %c0_15 = arith.constant 0 : index
    %c0_16 = arith.constant 0 : index
    %11 = vector.load %arg7[%c0_14, %c0_15, %c0_16] : memref<2x1x32xf32, #tpu.memory_space<vmem>>, vector<1x1x32xf32>
    %12 = vector.shape_cast %11 : vector<1x1x32xf32> to vector<1x32xf32>
    %c0_17 = arith.constant 0 : index
    %c0_18 = arith.constant 0 : index
    %c0_19 = arith.constant 0 : index
    %c0_20 = arith.constant 0 : index
    %13 = vector.load %arg8[%c0_17, %c0_18, %c0_19, %c0_20] : memref<2x4x8x32xf32, #tpu.memory_space<vmem>>, vector<1x4x8x32xf32>
    %14 = vector.shape_cast %13 : vector<1x4x8x32xf32> to vector<4x8x32xf32>
    %c0_21 = arith.constant 0 : index
    %c0_22 = arith.constant 0 : index
    %c0_23 = arith.constant 0 : index
    %15 = vector.load %arg9[%c0_21, %c0_22, %c0_23] : memref<2x1x32xf32, #tpu.memory_space<vmem>>, vector<1x1x32xf32>
    %16 = vector.shape_cast %15 : vector<1x1x32xf32> to vector<1x32xf32>
    %cst = arith.constant dense<0.000000e+00> : vector<64x64xf32>
    %17 = tpu.matmul %4, %6, %cst {dimension_numbers = #tpu.dot_dimension_numbers<[1], [0], [0], [1], [0, 0, 1, 1], [], []>} : vector<64x32xf32>, vector<32x64xf32>, vector<64x64xf32> -> vector<64x64xf32>
    %18 = vector.broadcast %8 : vector<1x64xf32> to vector<64x64xf32>
    %19 = arith.addf %17, %18 : vector<64x64xf32>
    %cst_24 = arith.constant dense<0.000000e+00> : vector<64x32xf32>
    %20 = tpu.matmul %1, %10, %cst_24 {dimension_numbers = #tpu.dot_dimension_numbers<[1], [0], [0], [1], [0, 0, 1, 1], [], []>} : vector<64x32xf32>, vector<32x32xf32>, vector<64x32xf32> -> vector<64x32xf32>
    %21 = vector.broadcast %12 : vector<1x32xf32> to vector<64x32xf32>
    %22 = arith.addf %20, %21 : vector<64x32xf32>
    %23 = vector.extract_strided_slice %19 {offsets = [0, 0], sizes = [64, 8], strides = [1, 1]} : vector<64x64xf32> to vector<64x8xf32>
    %24 = vector.extract_strided_slice %19 {offsets = [0, 8], sizes = [64, 8], strides = [1, 1]} : vector<64x64xf32> to vector<64x8xf32>
    %25 = vector.extract_strided_slice %19 {offsets = [0, 16], sizes = [64, 8], strides = [1, 1]} : vector<64x64xf32> to vector<64x8xf32>
    %26 = vector.extract_strided_slice %19 {offsets = [0, 24], sizes = [64, 8], strides = [1, 1]} : vector<64x64xf32> to vector<64x8xf32>
    %27 = vector.shape_cast %23 : vector<64x8xf32> to vector<1x64x8xf32>
    %28 = vector.shape_cast %24 : vector<64x8xf32> to vector<1x64x8xf32>
    %29 = vector.shape_cast %25 : vector<64x8xf32> to vector<1x64x8xf32>
    %30 = vector.shape_cast %26 : vector<64x8xf32> to vector<1x64x8xf32>
    %31 = tpu.concatenate %27, %28, %29, %30 in 0 : vector<1x64x8xf32>, vector<1x64x8xf32>, vector<1x64x8xf32>, vector<1x64x8xf32> -> vector<4x64x8xf32>
    %cst_25 = arith.constant 0.353553385 : f32
    %32 = vector.broadcast %cst_25 : f32 to vector<4x64x8xf32>
    %33 = arith.mulf %31, %32 : vector<4x64x8xf32>
    %34 = vector.extract_strided_slice %19 {offsets = [0, 32], sizes = [64, 8], strides = [1, 1]} : vector<64x64xf32> to vector<64x8xf32>
    %35 = vector.extract_strided_slice %19 {offsets = [0, 40], sizes = [64, 8], strides = [1, 1]} : vector<64x64xf32> to vector<64x8xf32>
    %36 = vector.extract_strided_slice %19 {offsets = [0, 48], sizes = [64, 8], strides = [1, 1]} : vector<64x64xf32> to vector<64x8xf32>
    %37 = vector.extract_strided_slice %19 {offsets = [0, 56], sizes = [64, 8], strides = [1, 1]} : vector<64x64xf32> to vector<64x8xf32>
    %38 = vector.shape_cast %34 : vector<64x8xf32> to vector<1x64x8xf32>
    %39 = vector.shape_cast %35 : vector<64x8xf32> to vector<1x64x8xf32>
    %40 = vector.shape_cast %36 : vector<64x8xf32> to vector<1x64x8xf32>
    %41 = vector.shape_cast %37 : vector<64x8xf32> to vector<1x64x8xf32>
    %42 = tpu.concatenate %38, %39, %40, %41 in 0 : vector<1x64x8xf32>, vector<1x64x8xf32>, vector<1x64x8xf32>, vector<1x64x8xf32> -> vector<4x64x8xf32>
    %43 = vector.extract_strided_slice %22 {offsets = [0, 0], sizes = [64, 8], strides = [1, 1]} : vector<64x32xf32> to vector<64x8xf32>
    %44 = vector.extract_strided_slice %22 {offsets = [0, 8], sizes = [64, 8], strides = [1, 1]} : vector<64x32xf32> to vector<64x8xf32>
    %45 = vector.extract_strided_slice %22 {offsets = [0, 16], sizes = [64, 8], strides = [1, 1]} : vector<64x32xf32> to vector<64x8xf32>
    %46 = vector.extract_strided_slice %22 {offsets = [0, 24], sizes = [64, 8], strides = [1, 1]} : vector<64x32xf32> to vector<64x8xf32>
    %47 = vector.shape_cast %43 : vector<64x8xf32> to vector<1x64x8xf32>
    %48 = vector.shape_cast %44 : vector<64x8xf32> to vector<1x64x8xf32>
    %49 = vector.shape_cast %45 : vector<64x8xf32> to vector<1x64x8xf32>
    %50 = vector.shape_cast %46 : vector<64x8xf32> to vector<1x64x8xf32>
    %51 = tpu.concatenate %47, %48, %49, %50 in 0 : vector<1x64x8xf32>, vector<1x64x8xf32>, vector<1x64x8xf32>, vector<1x64x8xf32> -> vector<4x64x8xf32>
    "tpu.trace_start"() <{level = 10 : i32, message = "hqd,hkd->hqk"}> : () -> ()
    %cst_26 = arith.constant dense<0.000000e+00> : vector<4x64x64xf32>
    %52 = tpu.matmul %33, %42, %cst_26 {dimension_numbers = #tpu.dot_dimension_numbers<[2], [2], [1], [1], [0, 0, 0, 1, 1, 1], [0], [0]>} : vector<4x64x8xf32>, vector<4x64x8xf32>, vector<4x64x64xf32> -> vector<4x64x64xf32>
    "tpu.trace_stop"() : () -> ()
    %cst_27 = arith.constant dense<0xFF800000> : vector<4x64xf32>
    %53 = vector.multi_reduction <maximumf>, %52, %cst_27 [2] : vector<4x64x64xf32> to vector<4x64xf32>
    %54 = vector.shape_cast %53 : vector<4x64xf32> to vector<4x64x1xf32>
    %55 = vector.broadcast %54 : vector<4x64x1xf32> to vector<4x64x64xf32>
    %56 = arith.subf %52, %55 : vector<4x64x64xf32>
    %57 = math.exp %56 : vector<4x64x64xf32>
    %cst_28 = arith.constant dense<0.000000e+00> : vector<4x64xf32>
    %58 = vector.multi_reduction <add>, %57, %cst_28 [2] : vector<4x64x64xf32> to vector<4x64xf32>
    %59 = vector.shape_cast %58 : vector<4x64xf32> to vector<4x64x1xf32>
    %60 = tpu.reciprocal %59 {approx = true} : vector<4x64x1xf32> -> vector<4x64x1xf32>
    %61 = vector.broadcast %60 : vector<4x64x1xf32> to vector<4x64x64xf32>
    %62 = arith.mulf %57, %61 : vector<4x64x64xf32>
    "tpu.trace_start"() <{level = 10 : i32, message = "hqk,hkd->hqd"}> : () -> ()
    %cst_29 = arith.constant dense<0.000000e+00> : vector<4x64x8xf32>
    %63 = tpu.matmul %62, %51, %cst_29 {dimension_numbers = #tpu.dot_dimension_numbers<[2], [1], [1], [2], [0, 0, 0, 1, 1, 2], [0], [0]>} : vector<4x64x64xf32>, vector<4x64x8xf32>, vector<4x64x8xf32> -> vector<4x64x8xf32>
    "tpu.trace_stop"() : () -> ()
    "tpu.trace_start"() <{level = 10 : i32, message = "hqd,hde->hqe"}> : () -> ()
    %cst_30 = arith.constant dense<0.000000e+00> : vector<4x64x32xf32>
    %64 = tpu.matmul %63, %14, %cst_30 {dimension_numbers = #tpu.dot_dimension_numbers<[2], [1], [1], [2], [0, 0, 0, 1, 1, 2], [0], [0]>} : vector<4x64x8xf32>, vector<4x8x32xf32>, vector<4x64x32xf32> -> vector<4x64x32xf32>
    "tpu.trace_stop"() : () -> ()
    %cst_31 = arith.constant dense<0.000000e+00> : vector<64x32xf32>
    %65 = vector.multi_reduction <add>, %64, %cst_31 [0] : vector<4x64x32xf32> to vector<64x32xf32>
    %66 = vector.broadcast %16 : vector<1x32xf32> to vector<64x32xf32>
    %67 = arith.addf %65, %66 : vector<64x32xf32>
    %68 = arith.addf %1, %67 : vector<64x32xf32>
    %c0_32 = arith.constant 0 : index
    %c0_33 = arith.constant 0 : index
    %c0_34 = arith.constant 0 : index
    %69 = vector.load %arg14[%c0_32, %c0_33, %c0_34] : memref<2x1x32xf32, #tpu.memory_space<vmem>>, vector<1x1x32xf32>
    %70 = vector.shape_cast %69 : vector<1x1x32xf32> to vector<1x32xf32>
    %c0_35 = arith.constant 0 : index
    %c0_36 = arith.constant 0 : index
    %c0_37 = arith.constant 0 : index
    %71 = vector.load %arg15[%c0_35, %c0_36, %c0_37] : memref<2x1x32xf32, #tpu.memory_space<vmem>>, vector<1x1x32xf32>
    %72 = vector.shape_cast %71 : vector<1x1x32xf32> to vector<1x32xf32>
    %cst_38 = arith.constant dense<0.000000e+00> : vector<64xf32>
    %73 = vector.multi_reduction <add>, %68, %cst_38 [1] : vector<64x32xf32> to vector<64xf32>
    %74 = vector.shape_cast %73 : vector<64xf32> to vector<64x1xf32>
    %cst_39 = arith.constant 3.200000e+01 : f32
    %75 = vector.broadcast %cst_39 : f32 to vector<64x1xf32>
    %76 = arith.divf %74, %75 : vector<64x1xf32>
    %77 = vector.broadcast %76 : vector<64x1xf32> to vector<64x32xf32>
    %78 = arith.subf %68, %77 : vector<64x32xf32>
    %79 = arith.mulf %78, %78 : vector<64x32xf32>
    %cst_40 = arith.constant dense<0.000000e+00> : vector<64xf32>
    %80 = vector.multi_reduction <add>, %79, %cst_40 [1] : vector<64x32xf32> to vector<64xf32>
    %81 = vector.shape_cast %80 : vector<64xf32> to vector<64x1xf32>
    %cst_41 = arith.constant 3.200000e+01 : f32
    %82 = vector.broadcast %cst_41 : f32 to vector<64x1xf32>
    %83 = arith.divf %81, %82 : vector<64x1xf32>
    %84 = vector.broadcast %76 : vector<64x1xf32> to vector<64x32xf32>
    %85 = arith.subf %68, %84 : vector<64x32xf32>
    %cst_42 = arith.constant 9.99999974E-6 : f32
    %86 = vector.broadcast %cst_42 : f32 to vector<64x1xf32>
    %87 = arith.addf %83, %86 : vector<64x1xf32>
    %88 = math.rsqrt %87 : vector<64x1xf32>
    %89 = vector.broadcast %88 : vector<64x1xf32> to vector<64x32xf32>
    %90 = arith.mulf %85, %89 : vector<64x32xf32>
    %91 = vector.broadcast %70 : vector<1x32xf32> to vector<64x32xf32>
    %92 = arith.mulf %90, %91 : vector<64x32xf32>
    %93 = vector.broadcast %72 : vector<1x32xf32> to vector<64x32xf32>
    %94 = arith.addf %92, %93 : vector<64x32xf32>
    %c0_43 = arith.constant 0 : index
    %c0_44 = arith.constant 0 : index
    %c0_45 = arith.constant 0 : index
    %95 = vector.load %arg10[%c0_43, %c0_44, %c0_45] : memref<2x32x64xf32, #tpu.memory_space<vmem>>, vector<1x32x64xf32>
    %96 = vector.shape_cast %95 : vector<1x32x64xf32> to vector<32x64xf32>
    %cst_46 = arith.constant dense<0.000000e+00> : vector<64x64xf32>
    %97 = tpu.matmul %94, %96, %cst_46 {dimension_numbers = #tpu.dot_dimension_numbers<[1], [0], [0], [1], [0, 0, 1, 1], [], []>} : vector<64x32xf32>, vector<32x64xf32>, vector<64x64xf32> -> vector<64x64xf32>
    %c0_47 = arith.constant 0 : index
    %c0_48 = arith.constant 0 : index
    %c0_49 = arith.constant 0 : index
    %98 = vector.load %arg11[%c0_47, %c0_48, %c0_49] : memref<2x1x64xf32, #tpu.memory_space<vmem>>, vector<1x1x64xf32>
    %99 = vector.shape_cast %98 : vector<1x1x64xf32> to vector<1x64xf32>
    %100 = vector.broadcast %99 : vector<1x64xf32> to vector<64x64xf32>
    %101 = arith.addf %97, %100 : vector<64x64xf32>
    %cst_50 = arith.constant 0.000000e+00 : f32
    %102 = vector.broadcast %cst_50 : f32 to vector<64x64xf32>
    %103 = arith.maximumf %101, %102 : vector<64x64xf32>
    %c0_51 = arith.constant 0 : index
    %c0_52 = arith.constant 0 : index
    %c0_53 = arith.constant 0 : index
    %104 = vector.load %arg12[%c0_51, %c0_52, %c0_53] : memref<2x64x32xf32, #tpu.memory_space<vmem>>, vector<1x64x32xf32>
    %105 = vector.shape_cast %104 : vector<1x64x32xf32> to vector<64x32xf32>
    %cst_54 = arith.constant dense<0.000000e+00> : vector<64x32xf32>
    %106 = tpu.matmul %103, %105, %cst_54 {dimension_numbers = #tpu.dot_dimension_numbers<[1], [0], [0], [1], [0, 0, 1, 1], [], []>} : vector<64x64xf32>, vector<64x32xf32>, vector<64x32xf32> -> vector<64x32xf32>
    %c0_55 = arith.constant 0 : index
    %c0_56 = arith.constant 0 : index
    %c0_57 = arith.constant 0 : index
    %107 = vector.load %arg13[%c0_55, %c0_56, %c0_57] : memref<2x1x32xf32, #tpu.memory_space<vmem>>, vector<1x1x32xf32>
    %108 = vector.shape_cast %107 : vector<1x1x32xf32> to vector<1x32xf32>
    %109 = vector.broadcast %108 : vector<1x32xf32> to vector<64x32xf32>
    %110 = arith.addf %106, %109 : vector<64x32xf32>
    %111 = arith.addf %94, %110 : vector<64x32xf32>
    %c0_58 = arith.constant 0 : index
    %c0_59 = arith.constant 0 : index
    %c0_60 = arith.constant 0 : index
    %112 = vector.load %arg16[%c0_58, %c0_59, %c0_60] : memref<2x1x32xf32, #tpu.memory_space<vmem>>, vector<1x1x32xf32>
    %113 = vector.shape_cast %112 : vector<1x1x32xf32> to vector<1x32xf32>
    %c0_61 = arith.constant 0 : index
    %c0_62 = arith.constant 0 : index
    %c0_63 = arith.constant 0 : index
    %114 = vector.load %arg17[%c0_61, %c0_62, %c0_63] : memref<2x1x32xf32, #tpu.memory_space<vmem>>, vector<1x1x32xf32>
    %115 = vector.shape_cast %114 : vector<1x1x32xf32> to vector<1x32xf32>
    %cst_64 = arith.constant dense<0.000000e+00> : vector<64xf32>
    %116 = vector.multi_reduction <add>, %111, %cst_64 [1] : vector<64x32xf32> to vector<64xf32>
    %117 = vector.shape_cast %116 : vector<64xf32> to vector<64x1xf32>
    %cst_65 = arith.constant 3.200000e+01 : f32
    %118 = vector.broadcast %cst_65 : f32 to vector<64x1xf32>
    %119 = arith.divf %117, %118 : vector<64x1xf32>
    %120 = vector.broadcast %119 : vector<64x1xf32> to vector<64x32xf32>
    %121 = arith.subf %111, %120 : vector<64x32xf32>
    %122 = arith.mulf %121, %121 : vector<64x32xf32>
    %cst_66 = arith.constant dense<0.000000e+00> : vector<64xf32>
    %123 = vector.multi_reduction <add>, %122, %cst_66 [1] : vector<64x32xf32> to vector<64xf32>
    %124 = vector.shape_cast %123 : vector<64xf32> to vector<64x1xf32>
    %cst_67 = arith.constant 3.200000e+01 : f32
    %125 = vector.broadcast %cst_67 : f32 to vector<64x1xf32>
    %126 = arith.divf %124, %125 : vector<64x1xf32>
    %127 = vector.broadcast %119 : vector<64x1xf32> to vector<64x32xf32>
    %128 = arith.subf %111, %127 : vector<64x32xf32>
    %cst_68 = arith.constant 9.99999974E-6 : f32
    %129 = vector.broadcast %cst_68 : f32 to vector<64x1xf32>
    %130 = arith.addf %126, %129 : vector<64x1xf32>
    %131 = math.rsqrt %130 : vector<64x1xf32>
    %132 = vector.broadcast %131 : vector<64x1xf32> to vector<64x32xf32>
    %133 = arith.mulf %128, %132 : vector<64x32xf32>
    %134 = vector.broadcast %113 : vector<1x32xf32> to vector<64x32xf32>
    %135 = arith.mulf %133, %134 : vector<64x32xf32>
    %136 = vector.broadcast %115 : vector<1x32xf32> to vector<64x32xf32>
    %137 = arith.addf %135, %136 : vector<64x32xf32>
    %c0_69 = arith.constant 0 : index
    %c0_70 = arith.constant 0 : index
    %c0_71 = arith.constant 0 : index
    %138 = vector.load %arg3[%c0_69, %c0_70, %c0_71] : memref<2x32x32xf32, #tpu.memory_space<vmem>>, vector<1x32x32xf32>
    %139 = vector.shape_cast %138 : vector<1x32x32xf32> to vector<32x32xf32>
    %140 = vector.extract_strided_slice %137 {offsets = [32, 0], sizes = [32, 32], strides = [1, 1]} : vector<64x32xf32> to vector<32x32xf32>
    %cst_72 = arith.constant dense<0.000000e+00> : vector<32x32xf32>
    %141 = tpu.matmul %139, %140, %cst_72 {dimension_numbers = #tpu.dot_dimension_numbers<[1], [0], [0], [1], [0, 0, 1, 1], [], []>} : vector<32x32xf32>, vector<32x32xf32>, vector<32x32xf32> -> vector<32x32xf32>
    %142 = vector.extract_strided_slice %137 {offsets = [0, 0], sizes = [32, 32], strides = [1, 1]} : vector<64x32xf32> to vector<32x32xf32>
    %143 = tpu.concatenate %142, %141 in 0 : vector<32x32xf32>, vector<32x32xf32> -> vector<64x32xf32>
    %144 = arith.addf %143, %3 : vector<64x32xf32>
    %c1 = arith.constant 1 : index
    %c0_73 = arith.constant 0 : index
    %c0_74 = arith.constant 0 : index
    %145 = vector.load %arg4[%c1, %c0_73, %c0_74] : memref<2x32x64xf32, #tpu.memory_space<vmem>>, vector<1x32x64xf32>
    %146 = vector.shape_cast %145 : vector<1x32x64xf32> to vector<32x64xf32>
    %c1_75 = arith.constant 1 : index
    %c0_76 = arith.constant 0 : index
    %c0_77 = arith.constant 0 : index
    %147 = vector.load %arg5[%c1_75, %c0_76, %c0_77] : memref<2x1x64xf32, #tpu.memory_space<vmem>>, vector<1x1x64xf32>
    %148 = vector.shape_cast %147 : vector<1x1x64xf32> to vector<1x64xf32>
    %c1_78 = arith.constant 1 : index
    %c0_79 = arith.constant 0 : index
    %c0_80 = arith.constant 0 : index
    %149 = vector.load %arg6[%c1_78, %c0_79, %c0_80] : memref<2x32x32xf32, #tpu.memory_space<vmem>>, vector<1x32x32xf32>
    %150 = vector.shape_cast %149 : vector<1x32x32xf32> to vector<32x32xf32>
    %c1_81 = arith.constant 1 : index
    %c0_82 = arith.constant 0 : index
    %c0_83 = arith.constant 0 : index
    %151 = vector.load %arg7[%c1_81, %c0_82, %c0_83] : memref<2x1x32xf32, #tpu.memory_space<vmem>>, vector<1x1x32xf32>
    %152 = vector.shape_cast %151 : vector<1x1x32xf32> to vector<1x32xf32>
    %c1_84 = arith.constant 1 : index
    %c0_85 = arith.constant 0 : index
    %c0_86 = arith.constant 0 : index
    %c0_87 = arith.constant 0 : index
    %153 = vector.load %arg8[%c1_84, %c0_85, %c0_86, %c0_87] : memref<2x4x8x32xf32, #tpu.memory_space<vmem>>, vector<1x4x8x32xf32>
    %154 = vector.shape_cast %153 : vector<1x4x8x32xf32> to vector<4x8x32xf32>
    %c1_88 = arith.constant 1 : index
    %c0_89 = arith.constant 0 : index
    %c0_90 = arith.constant 0 : index
    %155 = vector.load %arg9[%c1_88, %c0_89, %c0_90] : memref<2x1x32xf32, #tpu.memory_space<vmem>>, vector<1x1x32xf32>
    %156 = vector.shape_cast %155 : vector<1x1x32xf32> to vector<1x32xf32>
    %cst_91 = arith.constant dense<0.000000e+00> : vector<64x64xf32>
    %157 = tpu.matmul %144, %146, %cst_91 {dimension_numbers = #tpu.dot_dimension_numbers<[1], [0], [0], [1], [0, 0, 1, 1], [], []>} : vector<64x32xf32>, vector<32x64xf32>, vector<64x64xf32> -> vector<64x64xf32>
    %158 = vector.broadcast %148 : vector<1x64xf32> to vector<64x64xf32>
    %159 = arith.addf %157, %158 : vector<64x64xf32>
    %cst_92 = arith.constant dense<0.000000e+00> : vector<64x32xf32>
    %160 = tpu.matmul %143, %150, %cst_92 {dimension_numbers = #tpu.dot_dimension_numbers<[1], [0], [0], [1], [0, 0, 1, 1], [], []>} : vector<64x32xf32>, vector<32x32xf32>, vector<64x32xf32> -> vector<64x32xf32>
    %161 = vector.broadcast %152 : vector<1x32xf32> to vector<64x32xf32>
    %162 = arith.addf %160, %161 : vector<64x32xf32>
    %163 = vector.extract_strided_slice %159 {offsets = [0, 0], sizes = [64, 8], strides = [1, 1]} : vector<64x64xf32> to vector<64x8xf32>
    %164 = vector.extract_strided_slice %159 {offsets = [0, 8], sizes = [64, 8], strides = [1, 1]} : vector<64x64xf32> to vector<64x8xf32>
    %165 = vector.extract_strided_slice %159 {offsets = [0, 16], sizes = [64, 8], strides = [1, 1]} : vector<64x64xf32> to vector<64x8xf32>
    %166 = vector.extract_strided_slice %159 {offsets = [0, 24], sizes = [64, 8], strides = [1, 1]} : vector<64x64xf32> to vector<64x8xf32>
    %167 = vector.shape_cast %163 : vector<64x8xf32> to vector<1x64x8xf32>
    %168 = vector.shape_cast %164 : vector<64x8xf32> to vector<1x64x8xf32>
    %169 = vector.shape_cast %165 : vector<64x8xf32> to vector<1x64x8xf32>
    %170 = vector.shape_cast %166 : vector<64x8xf32> to vector<1x64x8xf32>
    %171 = tpu.concatenate %167, %168, %169, %170 in 0 : vector<1x64x8xf32>, vector<1x64x8xf32>, vector<1x64x8xf32>, vector<1x64x8xf32> -> vector<4x64x8xf32>
    %cst_93 = arith.constant 0.353553385 : f32
    %172 = vector.broadcast %cst_93 : f32 to vector<4x64x8xf32>
    %173 = arith.mulf %171, %172 : vector<4x64x8xf32>
    %174 = vector.extract_strided_slice %159 {offsets = [0, 32], sizes = [64, 8], strides = [1, 1]} : vector<64x64xf32> to vector<64x8xf32>
    %175 = vector.extract_strided_slice %159 {offsets = [0, 40], sizes = [64, 8], strides = [1, 1]} : vector<64x64xf32> to vector<64x8xf32>
    %176 = vector.extract_strided_slice %159 {offsets = [0, 48], sizes = [64, 8], strides = [1, 1]} : vector<64x64xf32> to vector<64x8xf32>
    %177 = vector.extract_strided_slice %159 {offsets = [0, 56], sizes = [64, 8], strides = [1, 1]} : vector<64x64xf32> to vector<64x8xf32>
    %178 = vector.shape_cast %174 : vector<64x8xf32> to vector<1x64x8xf32>
    %179 = vector.shape_cast %175 : vector<64x8xf32> to vector<1x64x8xf32>
    %180 = vector.shape_cast %176 : vector<64x8xf32> to vector<1x64x8xf32>
    %181 = vector.shape_cast %177 : vector<64x8xf32> to vector<1x64x8xf32>
    %182 = tpu.concatenate %178, %179, %180, %181 in 0 : vector<1x64x8xf32>, vector<1x64x8xf32>, vector<1x64x8xf32>, vector<1x64x8xf32> -> vector<4x64x8xf32>
    %183 = vector.extract_strided_slice %162 {offsets = [0, 0], sizes = [64, 8], strides = [1, 1]} : vector<64x32xf32> to vector<64x8xf32>
    %184 = vector.extract_strided_slice %162 {offsets = [0, 8], sizes = [64, 8], strides = [1, 1]} : vector<64x32xf32> to vector<64x8xf32>
    %185 = vector.extract_strided_slice %162 {offsets = [0, 16], sizes = [64, 8], strides = [1, 1]} : vector<64x32xf32> to vector<64x8xf32>
    %186 = vector.extract_strided_slice %162 {offsets = [0, 24], sizes = [64, 8], strides = [1, 1]} : vector<64x32xf32> to vector<64x8xf32>
    %187 = vector.shape_cast %183 : vector<64x8xf32> to vector<1x64x8xf32>
    %188 = vector.shape_cast %184 : vector<64x8xf32> to vector<1x64x8xf32>
    %189 = vector.shape_cast %185 : vector<64x8xf32> to vector<1x64x8xf32>
    %190 = vector.shape_cast %186 : vector<64x8xf32> to vector<1x64x8xf32>
    %191 = tpu.concatenate %187, %188, %189, %190 in 0 : vector<1x64x8xf32>, vector<1x64x8xf32>, vector<1x64x8xf32>, vector<1x64x8xf32> -> vector<4x64x8xf32>
    "tpu.trace_start"() <{level = 10 : i32, message = "hqd,hkd->hqk"}> : () -> ()
    %cst_94 = arith.constant dense<0.000000e+00> : vector<4x64x64xf32>
    %192 = tpu.matmul %173, %182, %cst_94 {dimension_numbers = #tpu.dot_dimension_numbers<[2], [2], [1], [1], [0, 0, 0, 1, 1, 1], [0], [0]>} : vector<4x64x8xf32>, vector<4x64x8xf32>, vector<4x64x64xf32> -> vector<4x64x64xf32>
    "tpu.trace_stop"() : () -> ()
    %cst_95 = arith.constant dense<0xFF800000> : vector<4x64xf32>
    %193 = vector.multi_reduction <maximumf>, %192, %cst_95 [2] : vector<4x64x64xf32> to vector<4x64xf32>
    %194 = vector.shape_cast %193 : vector<4x64xf32> to vector<4x64x1xf32>
    %195 = vector.broadcast %194 : vector<4x64x1xf32> to vector<4x64x64xf32>
    %196 = arith.subf %192, %195 : vector<4x64x64xf32>
    %197 = math.exp %196 : vector<4x64x64xf32>
    %cst_96 = arith.constant dense<0.000000e+00> : vector<4x64xf32>
    %198 = vector.multi_reduction <add>, %197, %cst_96 [2] : vector<4x64x64xf32> to vector<4x64xf32>
    %199 = vector.shape_cast %198 : vector<4x64xf32> to vector<4x64x1xf32>
    %200 = tpu.reciprocal %199 {approx = true} : vector<4x64x1xf32> -> vector<4x64x1xf32>
    %201 = vector.broadcast %200 : vector<4x64x1xf32> to vector<4x64x64xf32>
    %202 = arith.mulf %197, %201 : vector<4x64x64xf32>
    "tpu.trace_start"() <{level = 10 : i32, message = "hqk,hkd->hqd"}> : () -> ()
    %cst_97 = arith.constant dense<0.000000e+00> : vector<4x64x8xf32>
    %203 = tpu.matmul %202, %191, %cst_97 {dimension_numbers = #tpu.dot_dimension_numbers<[2], [1], [1], [2], [0, 0, 0, 1, 1, 2], [0], [0]>} : vector<4x64x64xf32>, vector<4x64x8xf32>, vector<4x64x8xf32> -> vector<4x64x8xf32>
    "tpu.trace_stop"() : () -> ()
    "tpu.trace_start"() <{level = 10 : i32, message = "hqd,hde->hqe"}> : () -> ()
    %cst_98 = arith.constant dense<0.000000e+00> : vector<4x64x32xf32>
    %204 = tpu.matmul %203, %154, %cst_98 {dimension_numbers = #tpu.dot_dimension_numbers<[2], [1], [1], [2], [0, 0, 0, 1, 1, 2], [0], [0]>} : vector<4x64x8xf32>, vector<4x8x32xf32>, vector<4x64x32xf32> -> vector<4x64x32xf32>
    "tpu.trace_stop"() : () -> ()
    %cst_99 = arith.constant dense<0.000000e+00> : vector<64x32xf32>
    %205 = vector.multi_reduction <add>, %204, %cst_99 [0] : vector<4x64x32xf32> to vector<64x32xf32>
    %206 = vector.broadcast %156 : vector<1x32xf32> to vector<64x32xf32>
    %207 = arith.addf %205, %206 : vector<64x32xf32>
    %208 = arith.addf %143, %207 : vector<64x32xf32>
    %c1_100 = arith.constant 1 : index
    %c0_101 = arith.constant 0 : index
    %c0_102 = arith.constant 0 : index
    %209 = vector.load %arg14[%c1_100, %c0_101, %c0_102] : memref<2x1x32xf32, #tpu.memory_space<vmem>>, vector<1x1x32xf32>
    %210 = vector.shape_cast %209 : vector<1x1x32xf32> to vector<1x32xf32>
    %c1_103 = arith.constant 1 : index
    %c0_104 = arith.constant 0 : index
    %c0_105 = arith.constant 0 : index
    %211 = vector.load %arg15[%c1_103, %c0_104, %c0_105] : memref<2x1x32xf32, #tpu.memory_space<vmem>>, vector<1x1x32xf32>
    %212 = vector.shape_cast %211 : vector<1x1x32xf32> to vector<1x32xf32>
    %cst_106 = arith.constant dense<0.000000e+00> : vector<64xf32>
    %213 = vector.multi_reduction <add>, %208, %cst_106 [1] : vector<64x32xf32> to vector<64xf32>
    %214 = vector.shape_cast %213 : vector<64xf32> to vector<64x1xf32>
    %cst_107 = arith.constant 3.200000e+01 : f32
    %215 = vector.broadcast %cst_107 : f32 to vector<64x1xf32>
    %216 = arith.divf %214, %215 : vector<64x1xf32>
    %217 = vector.broadcast %216 : vector<64x1xf32> to vector<64x32xf32>
    %218 = arith.subf %208, %217 : vector<64x32xf32>
    %219 = arith.mulf %218, %218 : vector<64x32xf32>
    %cst_108 = arith.constant dense<0.000000e+00> : vector<64xf32>
    %220 = vector.multi_reduction <add>, %219, %cst_108 [1] : vector<64x32xf32> to vector<64xf32>
    %221 = vector.shape_cast %220 : vector<64xf32> to vector<64x1xf32>
    %cst_109 = arith.constant 3.200000e+01 : f32
    %222 = vector.broadcast %cst_109 : f32 to vector<64x1xf32>
    %223 = arith.divf %221, %222 : vector<64x1xf32>
    %224 = vector.broadcast %216 : vector<64x1xf32> to vector<64x32xf32>
    %225 = arith.subf %208, %224 : vector<64x32xf32>
    %cst_110 = arith.constant 9.99999974E-6 : f32
    %226 = vector.broadcast %cst_110 : f32 to vector<64x1xf32>
    %227 = arith.addf %223, %226 : vector<64x1xf32>
    %228 = math.rsqrt %227 : vector<64x1xf32>
    %229 = vector.broadcast %228 : vector<64x1xf32> to vector<64x32xf32>
    %230 = arith.mulf %225, %229 : vector<64x32xf32>
    %231 = vector.broadcast %210 : vector<1x32xf32> to vector<64x32xf32>
    %232 = arith.mulf %230, %231 : vector<64x32xf32>
    %233 = vector.broadcast %212 : vector<1x32xf32> to vector<64x32xf32>
    %234 = arith.addf %232, %233 : vector<64x32xf32>
    %c1_111 = arith.constant 1 : index
    %c0_112 = arith.constant 0 : index
    %c0_113 = arith.constant 0 : index
    %235 = vector.load %arg10[%c1_111, %c0_112, %c0_113] : memref<2x32x64xf32, #tpu.memory_space<vmem>>, vector<1x32x64xf32>
    %236 = vector.shape_cast %235 : vector<1x32x64xf32> to vector<32x64xf32>
    %cst_114 = arith.constant dense<0.000000e+00> : vector<64x64xf32>
    %237 = tpu.matmul %234, %236, %cst_114 {dimension_numbers = #tpu.dot_dimension_numbers<[1], [0], [0], [1], [0, 0, 1, 1], [], []>} : vector<64x32xf32>, vector<32x64xf32>, vector<64x64xf32> -> vector<64x64xf32>
    %c1_115 = arith.constant 1 : index
    %c0_116 = arith.constant 0 : index
    %c0_117 = arith.constant 0 : index
    %238 = vector.load %arg11[%c1_115, %c0_116, %c0_117] : memref<2x1x64xf32, #tpu.memory_space<vmem>>, vector<1x1x64xf32>
    %239 = vector.shape_cast %238 : vector<1x1x64xf32> to vector<1x64xf32>
    %240 = vector.broadcast %239 : vector<1x64xf32> to vector<64x64xf32>
    %241 = arith.addf %237, %240 : vector<64x64xf32>
    %cst_118 = arith.constant 0.000000e+00 : f32
    %242 = vector.broadcast %cst_118 : f32 to vector<64x64xf32>
    %243 = arith.maximumf %241, %242 : vector<64x64xf32>
    %c1_119 = arith.constant 1 : index
    %c0_120 = arith.constant 0 : index
    %c0_121 = arith.constant 0 : index
    %244 = vector.load %arg12[%c1_119, %c0_120, %c0_121] : memref<2x64x32xf32, #tpu.memory_space<vmem>>, vector<1x64x32xf32>
    %245 = vector.shape_cast %244 : vector<1x64x32xf32> to vector<64x32xf32>
    %cst_122 = arith.constant dense<0.000000e+00> : vector<64x32xf32>
    %246 = tpu.matmul %243, %245, %cst_122 {dimension_numbers = #tpu.dot_dimension_numbers<[1], [0], [0], [1], [0, 0, 1, 1], [], []>} : vector<64x64xf32>, vector<64x32xf32>, vector<64x32xf32> -> vector<64x32xf32>
    %c1_123 = arith.constant 1 : index
    %c0_124 = arith.constant 0 : index
    %c0_125 = arith.constant 0 : index
    %247 = vector.load %arg13[%c1_123, %c0_124, %c0_125] : memref<2x1x32xf32, #tpu.memory_space<vmem>>, vector<1x1x32xf32>
    %248 = vector.shape_cast %247 : vector<1x1x32xf32> to vector<1x32xf32>
    %249 = vector.broadcast %248 : vector<1x32xf32> to vector<64x32xf32>
    %250 = arith.addf %246, %249 : vector<64x32xf32>
    %251 = arith.addf %234, %250 : vector<64x32xf32>
    %c1_126 = arith.constant 1 : index
    %c0_127 = arith.constant 0 : index
    %c0_128 = arith.constant 0 : index
    %252 = vector.load %arg16[%c1_126, %c0_127, %c0_128] : memref<2x1x32xf32, #tpu.memory_space<vmem>>, vector<1x1x32xf32>
    %253 = vector.shape_cast %252 : vector<1x1x32xf32> to vector<1x32xf32>
    %c1_129 = arith.constant 1 : index
    %c0_130 = arith.constant 0 : index
    %c0_131 = arith.constant 0 : index
    %254 = vector.load %arg17[%c1_129, %c0_130, %c0_131] : memref<2x1x32xf32, #tpu.memory_space<vmem>>, vector<1x1x32xf32>
    %255 = vector.shape_cast %254 : vector<1x1x32xf32> to vector<1x32xf32>
    %cst_132 = arith.constant dense<0.000000e+00> : vector<64xf32>
    %256 = vector.multi_reduction <add>, %251, %cst_132 [1] : vector<64x32xf32> to vector<64xf32>
    %257 = vector.shape_cast %256 : vector<64xf32> to vector<64x1xf32>
    %cst_133 = arith.constant 3.200000e+01 : f32
    %258 = vector.broadcast %cst_133 : f32 to vector<64x1xf32>
    %259 = arith.divf %257, %258 : vector<64x1xf32>
    %260 = vector.broadcast %259 : vector<64x1xf32> to vector<64x32xf32>
    %261 = arith.subf %251, %260 : vector<64x32xf32>
    %262 = arith.mulf %261, %261 : vector<64x32xf32>
    %cst_134 = arith.constant dense<0.000000e+00> : vector<64xf32>
    %263 = vector.multi_reduction <add>, %262, %cst_134 [1] : vector<64x32xf32> to vector<64xf32>
    %264 = vector.shape_cast %263 : vector<64xf32> to vector<64x1xf32>
    %cst_135 = arith.constant 3.200000e+01 : f32
    %265 = vector.broadcast %cst_135 : f32 to vector<64x1xf32>
    %266 = arith.divf %264, %265 : vector<64x1xf32>
    %267 = vector.broadcast %259 : vector<64x1xf32> to vector<64x32xf32>
    %268 = arith.subf %251, %267 : vector<64x32xf32>
    %cst_136 = arith.constant 9.99999974E-6 : f32
    %269 = vector.broadcast %cst_136 : f32 to vector<64x1xf32>
    %270 = arith.addf %266, %269 : vector<64x1xf32>
    %271 = math.rsqrt %270 : vector<64x1xf32>
    %272 = vector.broadcast %271 : vector<64x1xf32> to vector<64x32xf32>
    %273 = arith.mulf %268, %272 : vector<64x32xf32>
    %274 = vector.broadcast %253 : vector<1x32xf32> to vector<64x32xf32>
    %275 = arith.mulf %273, %274 : vector<64x32xf32>
    %276 = vector.broadcast %255 : vector<1x32xf32> to vector<64x32xf32>
    %277 = arith.addf %275, %276 : vector<64x32xf32>
    %c1_137 = arith.constant 1 : index
    %c0_138 = arith.constant 0 : index
    %c0_139 = arith.constant 0 : index
    %278 = vector.load %arg3[%c1_137, %c0_138, %c0_139] : memref<2x32x32xf32, #tpu.memory_space<vmem>>, vector<1x32x32xf32>
    %279 = vector.shape_cast %278 : vector<1x32x32xf32> to vector<32x32xf32>
    %280 = vector.extract_strided_slice %277 {offsets = [32, 0], sizes = [32, 32], strides = [1, 1]} : vector<64x32xf32> to vector<32x32xf32>
    %cst_140 = arith.constant dense<0.000000e+00> : vector<32x32xf32>
    %281 = tpu.matmul %279, %280, %cst_140 {dimension_numbers = #tpu.dot_dimension_numbers<[1], [0], [0], [1], [0, 0, 1, 1], [], []>} : vector<32x32xf32>, vector<32x32xf32>, vector<32x32xf32> -> vector<32x32xf32>
    %282 = vector.extract_strided_slice %277 {offsets = [0, 0], sizes = [32, 32], strides = [1, 1]} : vector<64x32xf32> to vector<32x32xf32>
    %283 = tpu.concatenate %282, %281 in 0 : vector<32x32xf32>, vector<32x32xf32> -> vector<64x32xf32>
    %c0_141 = arith.constant 0 : index
    %c0_142 = arith.constant 0 : index
    %284 = vector.load %arg18[%c0_141, %c0_142] : memref<1x32xf32, #tpu.memory_space<vmem>>, vector<1x32xf32>
    %c0_143 = arith.constant 0 : index
    %c0_144 = arith.constant 0 : index
    %285 = vector.load %arg19[%c0_143, %c0_144] : memref<1x32xf32, #tpu.memory_space<vmem>>, vector<1x32xf32>
    %cst_145 = arith.constant dense<0.000000e+00> : vector<64xf32>
    %286 = vector.multi_reduction <add>, %283, %cst_145 [1] : vector<64x32xf32> to vector<64xf32>
    %287 = vector.shape_cast %286 : vector<64xf32> to vector<64x1xf32>
    %cst_146 = arith.constant 3.200000e+01 : f32
    %288 = vector.broadcast %cst_146 : f32 to vector<64x1xf32>
    %289 = arith.divf %287, %288 : vector<64x1xf32>
    %290 = vector.broadcast %289 : vector<64x1xf32> to vector<64x32xf32>
    %291 = arith.subf %283, %290 : vector<64x32xf32>
    %292 = arith.mulf %291, %291 : vector<64x32xf32>
    %cst_147 = arith.constant dense<0.000000e+00> : vector<64xf32>
    %293 = vector.multi_reduction <add>, %292, %cst_147 [1] : vector<64x32xf32> to vector<64xf32>
    %294 = vector.shape_cast %293 : vector<64xf32> to vector<64x1xf32>
    %cst_148 = arith.constant 3.200000e+01 : f32
    %295 = vector.broadcast %cst_148 : f32 to vector<64x1xf32>
    %296 = arith.divf %294, %295 : vector<64x1xf32>
    %297 = vector.broadcast %289 : vector<64x1xf32> to vector<64x32xf32>
    %298 = arith.subf %283, %297 : vector<64x32xf32>
    %cst_149 = arith.constant 9.99999974E-6 : f32
    %299 = vector.broadcast %cst_149 : f32 to vector<64x1xf32>
    %300 = arith.addf %296, %299 : vector<64x1xf32>
    %301 = math.rsqrt %300 : vector<64x1xf32>
    %302 = vector.broadcast %301 : vector<64x1xf32> to vector<64x32xf32>
    %303 = arith.mulf %298, %302 : vector<64x32xf32>
    %304 = vector.broadcast %284 : vector<1x32xf32> to vector<64x32xf32>
    %305 = arith.mulf %303, %304 : vector<64x32xf32>
    %306 = vector.broadcast %285 : vector<1x32xf32> to vector<64x32xf32>
    %307 = arith.addf %305, %306 : vector<64x32xf32>
    %c0_150 = arith.constant 0 : index
    %c0_151 = arith.constant 0 : index
    %c0_152 = arith.constant 0 : index
    %308 = vector.load %arg20[%c0_150, %c0_151, %c0_152] : memref<1x64x32xf32, #tpu.memory_space<vmem>>, vector<1x64x32xf32>
    %309 = vector.shape_cast %308 : vector<1x64x32xf32> to vector<64x32xf32>
    %310 = vector.shape_cast %307 : vector<64x32xf32> to vector<1x64x32xf32>
    tpu.vector_store %arg20[%c0_150, %c0_151, %c0_152], %310 {strides = array<i32>} : memref<1x64x32xf32, #tpu.memory_space<vmem>>, vector<1x64x32xf32>,
    return
  }
  func.func @transform_0(%arg0: i32) -> (i32, i32, i32) {
    %c0_i32 = arith.constant 0 : i32
    %c0_i32_0 = arith.constant 0 : i32
    %c0_i32_1 = arith.constant 0 : i32
    return %arg0, %c0_i32, %c0_i32_0 : i32, i32, i32
  }
  func.func @transform_1(%arg0: i32) -> (i32, i32, i32) {
    %c0_i32 = arith.constant 0 : i32
    %c0_i32_0 = arith.constant 0 : i32
    %c0_i32_1 = arith.constant 0 : i32
    return %arg0, %c0_i32, %c0_i32_0 : i32, i32, i32
  }
  func.func @transform_2(%arg0: i32) -> (i32, i32, i32) {
    %c0_i32 = arith.constant 0 : i32
    %c0_i32_0 = arith.constant 0 : i32
    %c0_i32_1 = arith.constant 0 : i32
    %c0_i32_2 = arith.constant 0 : i32
    return %c0_i32, %c0_i32_0, %c0_i32_1 : i32, i32, i32
  }
  func.func @transform_3(%arg0: i32) -> (i32, i32, i32) {
    %c0_i32 = arith.constant 0 : i32
    %c0_i32_0 = arith.constant 0 : i32
    %c0_i32_1 = arith.constant 0 : i32
    %c0_i32_2 = arith.constant 0 : i32
    return %c0_i32, %c0_i32_0, %c0_i32_1 : i32, i32, i32
  }
  func.func @transform_4(%arg0: i32) -> (i32, i32, i32) {
    %c0_i32 = arith.constant 0 : i32
    %c0_i32_0 = arith.constant 0 : i32
    %c0_i32_1 = arith.constant 0 : i32
    %c0_i32_2 = arith.constant 0 : i32
    return %c0_i32, %c0_i32_0, %c0_i32_1 : i32, i32, i32
  }
  func.func @transform_5(%arg0: i32) -> (i32, i32, i32) {
    %c0_i32 = arith.constant 0 : i32
    %c0_i32_0 = arith.constant 0 : i32
    %c0_i32_1 = arith.constant 0 : i32
    %c0_i32_2 = arith.constant 0 : i32
    return %c0_i32, %c0_i32_0, %c0_i32_1 : i32, i32, i32
  }
  func.func @transform_6(%arg0: i32) -> (i32, i32, i32) {
    %c0_i32 = arith.constant 0 : i32
    %c0_i32_0 = arith.constant 0 : i32
    %c0_i32_1 = arith.constant 0 : i32
    %c0_i32_2 = arith.constant 0 : i32
    return %c0_i32, %c0_i32_0, %c0_i32_1 : i32, i32, i32
  }
  func.func @transform_7(%arg0: i32) -> (i32, i32, i32, i32) {
    %c0_i32 = arith.constant 0 : i32
    %c0_i32_0 = arith.constant 0 : i32
    %c0_i32_1 = arith.constant 0 : i32
    %c0_i32_2 = arith.constant 0 : i32
    %c0_i32_3 = arith.constant 0 : i32
    return %c0_i32, %c0_i32_0, %c0_i32_1, %c0_i32_2 : i32, i32, i32, i32
  }
  func.func @transform_8(%arg0: i32) -> (i32, i32, i32) {
    %c0_i32 = arith.constant 0 : i32
    %c0_i32_0 = arith.constant 0 : i32
    %c0_i32_1 = arith.constant 0 : i32
    %c0_i32_2 = arith.constant 0 : i32
    return %c0_i32, %c0_i32_0, %c0_i32_1 : i32, i32, i32
  }
  func.func @transform_9(%arg0: i32) -> (i32, i32, i32) {
    %c0_i32 = arith.constant 0 : i32
    %c0_i32_0 = arith.constant 0 : i32
    %c0_i32_1 = arith.constant 0 : i32
    %c0_i32_2 = arith.constant 0 : i32
    return %c0_i32, %c0_i32_0, %c0_i32_1 : i32, i32, i32
  }
  func.func @transform_10(%arg0: i32) -> (i32, i32, i32) {
    %c0_i32 = arith.constant 0 : i32
    %c0_i32_0 = arith.constant 0 : i32
    %c0_i32_1 = arith.constant 0 : i32
    %c0_i32_2 = arith.constant 0 : i32
    return %c0_i32, %c0_i32_0, %c0_i32_1 : i32, i32, i32
  }
  func.func @transform_11(%arg0: i32) -> (i32, i32, i32) {
    %c0_i32 = arith.constant 0 : i32
    %c0_i32_0 = arith.constant 0 : i32
    %c0_i32_1 = arith.constant 0 : i32
    %c0_i32_2 = arith.constant 0 : i32
    return %c0_i32, %c0_i32_0, %c0_i32_1 : i32, i32, i32
  }
  func.func @transform_12(%arg0: i32) -> (i32, i32, i32) {
    %c0_i32 = arith.constant 0 : i32
    %c0_i32_0 = arith.constant 0 : i32
    %c0_i32_1 = arith.constant 0 : i32
    %c0_i32_2 = arith.constant 0 : i32
    return %c0_i32, %c0_i32_0, %c0_i32_1 : i32, i32, i32
  }
  func.func @transform_13(%arg0: i32) -> (i32, i32, i32) {
    %c0_i32 = arith.constant 0 : i32
    %c0_i32_0 = arith.constant 0 : i32
    %c0_i32_1 = arith.constant 0 : i32
    %c0_i32_2 = arith.constant 0 : i32
    return %c0_i32, %c0_i32_0, %c0_i32_1 : i32, i32, i32
  }
  func.func @transform_14(%arg0: i32) -> (i32, i32, i32) {
    %c0_i32 = arith.constant 0 : i32
    %c0_i32_0 = arith.constant 0 : i32
    %c0_i32_1 = arith.constant 0 : i32
    %c0_i32_2 = arith.constant 0 : i32
    return %c0_i32, %c0_i32_0, %c0_i32_1 : i32, i32, i32
  }
  func.func @transform_15(%arg0: i32) -> (i32, i32, i32) {
    %c0_i32 = arith.constant 0 : i32
    %c0_i32_0 = arith.constant 0 : i32
    %c0_i32_1 = arith.constant 0 : i32
    %c0_i32_2 = arith.constant 0 : i32
    return %c0_i32, %c0_i32_0, %c0_i32_1 : i32, i32, i32
  }
  func.func @transform_16(%arg0: i32) -> (i32, i32, i32) {
    %c0_i32 = arith.constant 0 : i32
    %c0_i32_0 = arith.constant 0 : i32
    %c0_i32_1 = arith.constant 0 : i32
    %c0_i32_2 = arith.constant 0 : i32
    return %c0_i32, %c0_i32_0, %c0_i32_1 : i32, i32, i32
  }
  func.func @transform_17(%arg0: i32) -> (i32, i32) {
    %c0_i32 = arith.constant 0 : i32
    %c0_i32_0 = arith.constant 0 : i32
    %c0_i32_1 = arith.constant 0 : i32
    return %c0_i32, %c0_i32_0 : i32, i32
  }
  func.func @transform_18(%arg0: i32) -> (i32, i32) {
    %c0_i32 = arith.constant 0 : i32
    %c0_i32_0 = arith.constant 0 : i32
    %c0_i32_1 = arith.constant 0 : i32
    return %c0_i32, %c0_i32_0 : i32, i32
  }
  func.func @transform_19(%arg0: i32) -> (i32, i32, i32) {
    %c0_i32 = arith.constant 0 : i32
    %c0_i32_0 = arith.constant 0 : i32
    %c0_i32_1 = arith.constant 0 : i32
    return %arg0, %c0_i32, %c0_i32_0 : i32, i32, i32
  }
}

</mosaic_0001>

<bundles_post_ra>
// kernel: tpu_custom_call.1
= control target key start
LH: loop header
LB: loop body
LE: loop exit
PB: predicated region body
PF: predicated region fallthrough
CT: control target
= control target key end

     0   :  { %s12504_s0 = inlined_call_operand.vmem [shape: f32[2,64,32], index: 0, kind: input, shape index: {}]   ;;  %s12505_s1 = inlined_call_operand.vmem [shape: f32[2,64,32], index: 1, kind: input, shape index: {}]   ;;  %s12506_s2 = inlined_call_operand.vmem [shape: f32[2,32,32], index: 2, kind: input, shape index: {}]   ;;  %s12507_s3 = inlined_call_operand.vmem [shape: f32[2,32,64], index: 3, kind: input, shape index: {}]   ;;  %s12508_s4 = inlined_call_operand.vmem [shape: f32[2,1,64], index: 4, kind: input, shape index: {}]   ;;  %s12509_s5 = inlined_call_operand.vmem [shape: f32[2,32,32], index: 5, kind: input, shape index: {}]   ;;  %s12510_s6 = inlined_call_operand.vmem [shape: f32[2,1,32], index: 6, kind: input, shape index: {}]   ;;  %s12511_s7 = inlined_call_operand.vmem [shape: f32[2,4,8,32], index: 7, kind: input, shape index: {}]   ;;  %s12512_s8 = inlined_call_operand.vmem [shape: f32[2,1,32], index: 8, kind: input, shape index: {}]   ;;  %s12513_s9 = inlined_call_operand.vmem [shape: f32[2,32,64], index: 9, kind: input, shape index: {}]   ;;  %s12514_s10 = inlined_call_operand.vmem [shape: f32[2,1,64], index: 10, kind: input, shape index: {}]   ;;  %s12515_s11 = inlined_call_operand.vmem [shape: f32[2,64,32], index: 11, kind: input, shape index: {}]   ;;  %s12516_s12 = inlined_call_operand.vmem [shape: f32[2,1,32], index: 12, kind: input, shape index: {}]   ;;  %s12517_s13 = inlined_call_operand.vmem [shape: f32[2,1,32], index: 13, kind: input, shape index: {}]   ;;  %s12518_s14 = inlined_call_operand.vmem [shape: f32[2,1,32], index: 14, kind: input, shape index: {}]   ;;  %s12519_s15 = inlined_call_operand.vmem [shape: f32[2,1,32], index: 15, kind: input, shape index: {}]   ;;  %s12520_s16 = inlined_call_operand.vmem [shape: f32[2,1,32], index: 16, kind: input, shape index: {}]   ;;  %s12521_s17 = inlined_call_operand.vmem [shape: f32[1,32], index: 17, kind: input, shape index: {}]   ;;  %s12522_s18 = inlined_call_operand.vmem [shape: f32[1,32], index: 18, kind: input, shape index: {}]   ;;  %s12523_s19 = inlined_call_operand.vmem [shape: f32[2,64,32], index: 19, kind: output, shape index: {}]  }
   0x1   :  { %12534 = sst [smem:[#allocation2_spill]] %s12504_s0  ;;  %s10172_s0 = smov 0  }
   0x2   :  { %12535 = sst [smem:[#allocation3_spill]] %s12505_s1 }
   0x3   :  { %12536 = sst [smem:[#allocation4_spill]] %s12506_s2 }
   0x4   :  { %12537 = sst [smem:[#allocation5_spill]] %s12507_s3 }
   0x5 LB: > { %s7387_s30 = sadd.s32 4294967295, %s10066_s0   ;;  %p7391_p0 = scmp.ge.s32.totalorder %s10066_s0, 1  ;;  %s10066_s0 = sphi %s10172_s0, %s29_s0  }
   0x6   : > { %p547_p1 = scmp.lt.s32.totalorder %s10066_s0, 3 }
   0x8   : > { %p548_p2 = pnand %p7391_p0, %p547_p1 }
   0x9   : > { %s12538_s1 = sld [smem:[#allocation5_spill]] (!%p548_p2)  ;;  %p608_p3 = scmp.lt.s32.totalorder (!%p548_p2), %s7387_s30, 1  ;;  %vm668_vm0 = vcmask (!%p548_p2), 261120   ;;  %v652_v30 = vld [vmem:[%s12509_s5] sm:$0xff] (!%p548_p2)  ;;  %v653_v31 = vld [vmem:[%s12509_s5 + $0x8] sm:$0xff] (!%p548_p2)  ;;  %v654_v32 = vld [vmem:[%s12509_s5 + $0x10] sm:$0xff] (!%p548_p2) }
   0xa   : > { %551 = sbr.rel (%p548_p2) target bundleno = 6011 (0x177b), region = 96  ;;  %s12539_s29 = sld [smem:[#allocation2_spill]] (!%p548_p2)  ;;  %v9008_v33 = vpack.c.bf16 (!%p548_p2), %v653_v31, %v652_v30  ;;  %v655_v34 = vld [vmem:[%s12509_s5 + $0x18] sm:$0xff] (!%p548_p2)  ;;  %v7398_v36 = vld [vmem:[%s12508_s4] ss:$0 sm:$0xff] (!%p548_p2)  ;;  %vm1141_vm1 = vcmask (!%p548_p2), 64512  }
   0xb   : > { %s12540_s2 = sld [smem:[#allocation3_spill]] (!%p548_p2)  ;;  %v9012_v35 = vpack.c.bf16 (!%p548_p2), %v655_v34, %v654_v32  ;;  %s12530_s24 = smov (!%p548_p2), 112   ;;  %vm10407_vm2 = vmpackc.low (!%p548_p2), %vm1141_vm1, %vm1141_vm1  ;;  %vm1770_vm3 = vcmask (!%p548_p2), 523264  }
   0xc   : > { %9009 = vmatprep.subr.bf16.mxu1 (!%p548_p2), %v9008_v33  ;;  %s12528_s25 = smov (!%p548_p2), 104   ;;  %s12526_s3 = smov (!%p548_p2), 96  }
   0xd   : > { %9011 = vmatpush3.bf16.msra.mxu1 (!%p548_p2), %v9008_v33  ;;  %s12543_s21 = sld [smem:[#allocation4_spill]] (!%p548_p2)  ;;  %s12545_s22 = smov (!%p548_p2), 112  }
   0xe   : > { %9013 = vmatprep.subr.bf16.mxu1 (!%p548_p2), %v9012_v35 }
   0xf   : > { %v647_v0 = vld [vmem:[%s12538_s1] sm:$0xff] (!%p548_p2)  ;;  %v648_v1 = vld [vmem:[%s12538_s1 + $0x8] sm:$0xff] (!%p548_p2)  ;;  %v649_v2 = vld [vmem:[%s12538_s1 + $0x10] sm:$0xff] (!%p548_p2) }
  0x10   : > { %v9000_v3 = vpack.c.bf16 (!%p548_p2), %v648_v1, %v647_v0  ;;  %v650_v4 = vld [vmem:[%s12538_s1 + $0x18] sm:$0xff] (!%p548_p2) }
  0x11   : > { %v9004_v5 = vpack.c.bf16 %v650_v4, %v649_v2  ;;  %s12549_s30 = smov (!%p608_p3, %s7387_s30), 1  ;;  %9015 = vmatpush3.bf16.msra.mxu1 %v9012_v35 }
  0x12   : > { %9001 = vmatprep.subr.bf16.mxu0 %v9000_v3  ;;  %s10192_s26 = sshll.u32 %s12549_s30, 6  ;;  %s12532_s30 = smov 120  }
  0x13   : > { %9003 = vmatpush3.bf16.msra.mxu0 %v9000_v3  ;;  %s10198_s20 = scalar_lea.vmem %s12539_s29, %s10192_s26  ;;  %s10204_s23 = scalar_lea.vmem %s12540_s2, %s10192_s26 }
  0x14   : > { %9005 = vmatprep.subr.bf16.mxu0 %v9004_v5  ;;  %v623_v6 = vld [vmem:[%s10198_s20] sm:$0xff]  ;;  %v624_v8 = vld [vmem:[%s10198_s20 + $0x8] sm:$0xff]  ;;  %v625_v11 = vld [vmem:[%s10198_s20 + $0x10] sm:$0xff]  ;;  %s12546_s2 = smov 104   ;;  %s12477_s29 = scalar_lea.vmem %s12523_s19, %s10192_s26 }
  0x15   : > { %v631_v7 = vld [vmem:[%s10204_s23] sm:$0xff]  ;;  %v632_v10 = vld [vmem:[%s10204_s23 + $0x8] sm:$0xff]  ;;  %v633_v12 = vld [vmem:[%s10204_s23 + $0x10] sm:$0xff]  ;;  %8264 = vmatprep.mubr.msk.f32.mxu1 %vm668_vm0, %v623_v6 }
  0x16   : > { %v639_v9 = vadd.f32 %v631_v7, %v623_v6  ;;  %v640_v13 = vadd.f32 %v632_v10, %v624_v8  ;;  %v641_v14 = vadd.f32 %v633_v12, %v625_v11  ;;  %v626_v15 = vld [vmem:[%s10198_s20 + $0x18] sm:$0xff]  ;;  %v627_v17 = vld [vmem:[%s10198_s20 + $0x20] sm:$0xff]  ;;  %v628_v21 = vld [vmem:[%s10198_s20 + $0x28] sm:$0xff]  ;;  %8265 = vmatmul.mubr.msk.f32.vlgmr.msra.gmra.mrb[0].mxu1 %vm668_vm0, %v624_v8 }
  0x17   : > { %9007 = vmatpush3.bf16.msra.mxu0 %v9004_v5  ;;  %v634_v16 = vld [vmem:[%s10204_s23 + $0x18] sm:$0xff]  ;;  %v635_v18 = vld [vmem:[%s10204_s23 + $0x20] sm:$0xff]  ;;  %v636_v22 = vld [vmem:[%s10204_s23 + $0x28] sm:$0xff]  ;;  %8267 = vmatprep.mubr.msk.f32.mxu1 %vm668_vm0, %v625_v11 }
  0x18   : > { %8244 = vmatprep.mubr.msk.f32.mxu0 %vm668_vm0, %v639_v9  ;;  %v642_v19 = vadd.f32 %v634_v16, %v626_v15  ;;  %v643_v20 = vadd.f32 %v635_v18, %v627_v17  ;;  %v629_v23 = vld [vmem:[%s10198_s20 + $0x30] sm:$0xff]  ;;  %v644_v25 = vadd.f32 %v636_v22, %v628_v21  ;;  %v630_v27 = vld [vmem:[%s10198_s20 + $0x38] sm:$0xff] }
  0x19   : > { %v637_v24 = vld [vmem:[%s10204_s23 + $0x30] sm:$0xff]  ;;  %v638_v28 = vld [vmem:[%s10204_s23 + $0x38] sm:$0xff] }
  0x1a   : > { %8245 = vmatmul.mubr.msk.f32.vlgmr.msra.gmra.mrb[0].mxu0 %vm668_vm0, %v640_v13  ;;  %v645_v26 = vadd.f32 %v637_v24, %v629_v23  ;;  %v646_v29 = vadd.f32 %v638_v28, %v630_v27  ;;  %8268 = vmatmul.mubr.msk.f32.gmra.mrb[2].mxu1 %vm668_vm0, %v626_v15 }
  0x1b   : > { %8247 = vmatprep.mubr.msk.f32.mxu0 %vm668_vm0, %v641_v14  ;;  %8270 = vmatprep.mubr.msk.f32.mxu1 %vm668_vm0, %v627_v17 }
  0x1e   : > { %8248 = vmatmul.mubr.msk.f32.gmra.mrb[2].mxu0 %vm668_vm0, %v642_v19  ;;  %8271 = vmatmul.mubr.msk.f32.gmra.mrb[4].mxu1 %vm668_vm0, %v628_v21 }
  0x1f   : > { %8250 = vmatprep.mubr.msk.f32.mxu0 %vm668_vm0, %v643_v20  ;;  %8273 = vmatprep.mubr.msk.f32.mxu1 %vm668_vm0, %v629_v23 }
  0x22   : > { %8251 = vmatmul.mubr.msk.f32.gmra.mrb[4].mxu0 %vm668_vm0, %v644_v25  ;;  %8274 = vmatmul.mubr.msk.f32.gmra.mrb[6].mxu1 %vm668_vm0, %v630_v27 }
  0x23   : > { %8253 = vmatprep.mubr.msk.f32.mxu0 %vm668_vm0, %v645_v26 }
  0x26   : > { %8254 = vmatmul.mubr.msk.f32.gmra.mrb[6].mxu0 %vm668_vm0, %v646_v29 }
  0xed   : > { %v8246_v37 = vpop.f32.mrb[0].mxu0 }
  0xee   : > { %v10253_v38 = vadd.f32 %v8246_v37, %v7398_v36  ;;  %v759_v39 = vpop.f32.mrb[1].mxu0 }
  0xef   : > { %v760_v40 = vadd.f32 %v7398_v36, %v759_v39 }
  0xf1   : > { %v8249_v41 = vpop.f32.mrb[2].mxu0  ;;  %941 = vrot.lane.b32.xlu0 %v760_v40, %s12532_s30  ;;  %v1013_v42 = vmul.f32 0.35355338, %v760_v40  ;;  %v9428_v43 = vpack.i.bf16 %v10253_v38, %v760_v40 }
  0xf2   : > { %v10257_v44 = vadd.f32 %v8249_v41, %v7398_v36  ;;  %v769_v45 = vpop.f32.mrb[3].mxu0 }
  0xf3   : > { %v10259_v46 = vadd.f32 %v7398_v36, %v769_v45  ;;  %8292 = vmatprep.mubr.msk.f32.mxu0 %vm1141_vm1, %v1013_v42 }
  0xf5   : > { %v8252_v47 = vpop.f32.mrb[4].mxu0  ;;  %945 = vrot.lane.b32.xlu1 %v10259_v46, %s12532_s30  ;;  %943 = vrot.lane.b32.xlu0 %v10253_v38, %s12532_s30  ;;  %v9438_v48 = vpack.i.bf16 %v10257_v44, %v10259_v46 }
  0xf6   : > { %v10268_v49 = vadd.f32 %v8252_v47, %v7398_v36  ;;  %v779_v50 = vpop.f32.mrb[5].mxu0 }
  0xf7   : > { %v10270_v51 = vadd.f32 %v7398_v36, %v779_v50 }
  0xf9   : > { %947 = vrot.lane.b32.xlu1 %v10257_v44, %s12532_s30  ;;  %949 = vrot.lane.b32.xlu0 %v10270_v51, %s12532_s30  ;;  %v8255_v52 = vpop.f32.mrb[6].mxu0  ;;  %v9448_v53 = vpack.i.bf16 %v10268_v49, %v10270_v51 }
  0xfa   : > { %v10278_v54 = vadd.f32 %v8255_v52, %v7398_v36  ;;  %v789_v55 = vpop.f32.mrb[7].mxu0 }
  0xfb   : > { %v10280_v56 = vadd.f32 %v7398_v36, %v789_v55  ;;  %v7407_v55 = vld [vmem:[%s12510_s6] ss:$0 sm:$0xff] }
  0xfd   : > { %951 = vrot.lane.b32.xlu1 %v10268_v49, %s12532_s30  ;;  %965 = vrot.lane.b32.xlu0 %v760_v40, %s12530_s24  ;;  %v9458_v57 = vpack.i.bf16 %v10278_v54, %v10280_v56 }
 0x101   : > { %955 = vrot.lane.b32.xlu1 %v10278_v54, %s12532_s30  ;;  %953 = vrot.lane.b32.xlu0 %v10280_v56, %s12532_s30 }
 0x105   : > { %967 = vrot.lane.b32.xlu1 %v10253_v38, %s12530_s24  ;;  %989 = vrot.lane.b32.xlu0 %v760_v40, %s12528_s25 }
 0x109   : > { %991 = vrot.lane.b32.xlu1 %v10253_v38, %s12528_s25  ;;  %969 = vrot.lane.b32.xlu0 %v10259_v46, %s12530_s24 }
 0x10d   : > { %971 = vrot.lane.b32.xlu1 %v10257_v44, %s12530_s24  ;;  %993 = vrot.lane.b32.xlu0 %v10259_v46, %s12528_s25 }
 0x111   : > { %995 = vrot.lane.b32.xlu1 %v10257_v44, %s12528_s25  ;;  %973 = vrot.lane.b32.xlu0 %v10270_v51, %s12530_s24 }
 0x115   : > { %975 = vrot.lane.b32.xlu1 %v10268_v49, %s12530_s24  ;;  %997 = vrot.lane.b32.xlu0 %v10270_v51, %s12528_s25 }
 0x119   : > { %999 = vrot.lane.b32.xlu1 %v10268_v49, %s12528_s25  ;;  %977 = vrot.lane.b32.xlu0 %v10280_v56, %s12530_s24 }
 0x11d   : > { %979 = vrot.lane.b32.xlu1 %v10278_v54, %s12530_s24  ;;  %1001 = vrot.lane.b32.xlu0 %v10280_v56, %s12528_s25 }
 0x121   : > { %1003 = vrot.lane.b32.xlu1 %v10278_v54, %s12528_s25  ;;  %9429 = vrot.lane.b32.xlu0 %v9428_v43, %s12526_s3 }
 0x125   : > { %9439 = vrot.lane.b32.xlu0 %v9438_v48, %s12526_s3 }
 0x129   : > { %9449 = vrot.lane.b32.xlu0 %v9448_v53, %s12526_s3  ;;  %v8266_v53 = vpop.f32.mrb[0].mxu1 }
 0x12d   : > { %9459 = vrot.lane.b32.xlu0 %v9458_v57, %s12526_s3  ;;  %v900_v57 = vadd.f32 %v8266_v53, %v7407_v55 }
 0x163   : > { %v942_v58 = vpop.permute.xlu0 %941 }
 0x164   : > { %v1021_v59 = vmul.f32 0.35355338, %v942_v58 }
 0x166   : > { %8320 = vmatprep.mubr.msk.f32.mxu1 %vm1141_vm1, %v1021_v59 }
 0x167   : > { %v10325_v60 = vpop.permute.xlu1 %945  ;;  %v10327_v61 = vpop.permute.xlu0 %943 }
 0x168   : > { %v9433_v62 = vpack.i.bf16 %v10327_v61, %v942_v58  ;;  %v894_v58 = vpop.f32.mrb[1].mxu1 }
 0x169   : > { %v895_v59 = vadd.f32 %v7407_v55, %v894_v58 }
 0x16a   : > { %9434 = vrot.lane.b32.xlu1 %v9433_v62, %s12526_s3  ;;  %v8269_v62 = vpop.f32.mrb[2].mxu1 }
 0x16b   : > { %v10331_v63 = vpop.permute.xlu1 %947  ;;  %v10333_v0 = vpop.permute.xlu0 %949 }
 0x16c   : > { %v9443_v1 = vpack.i.bf16 %v10331_v63, %v10325_v60 }
 0x16e   : > { %9444 = vrot.lane.b32.xlu1 %v9443_v1, %s12526_s3  ;;  %v910_v1 = vadd.f32 %v8269_v62, %v7407_v55 }
 0x16f   : > { %v10338_v2 = vpop.permute.xlu1 %951  ;;  %v10340_v3 = vpop.permute.xlu0 %965 }
 0x170   : > { %v9453_v4 = vpack.i.bf16 %v10338_v2, %v10333_v0 }
 0x172   : > { %9454 = vrot.lane.b32.xlu1 %v9453_v4, %s12526_s3  ;;  %v904_v4 = vpop.f32.mrb[3].mxu1 }
 0x173   : > { %v10345_v5 = vpop.permute.xlu1 %955  ;;  %v10347_v6 = vpop.permute.xlu0 %953 }
 0x174   : > { %v9463_v7 = vpack.i.bf16 %v10345_v5, %v10347_v6 }
 0x176   : > { %9464 = vrot.lane.b32.xlu1 %v9463_v7, %s12526_s3  ;;  %v905_v7 = vadd.f32 %v7407_v55, %v904_v4 }
 0x177   : > { %v10352_v8 = vpop.permute.xlu1 %967  ;;  %v10354_v9 = vpop.permute.xlu0 %989 }
 0x178   : > { %v9468_v10 = vpack.i.bf16 %v10352_v8, %v10340_v3 }
 0x17a   : > { %9469 = vrot.lane.b32.xlu0 %v9468_v10, %s12526_s3  ;;  %v9508_v10 = vpack.i.bf16 %v900_v57, %v895_v59 }
 0x17b   : > { %v10359_v11 = vpop.permute.xlu1 %991  ;;  %v10361_v12 = vpop.permute.xlu0 %969 }
 0x17c   : > { %v9473_v13 = vpack.i.bf16 %v10359_v11, %v10354_v9 }
 0x17e   : > { %9474 = vrot.lane.b32.xlu1 %v9473_v13, %s12526_s3  ;;  %v8272_v13 = vpop.f32.mrb[4].mxu1 }
 0x17f   : > { %v10366_v14 = vpop.permute.xlu1 %971  ;;  %v10368_v15 = vpop.permute.xlu0 %993 }
 0x180   : > { %v9478_v16 = vpack.i.bf16 %v10366_v14, %v10361_v12 }
 0x182   : > { %9479 = vrot.lane.b32.xlu0 %v9478_v16, %s12526_s3  ;;  %v10431_v16 = vpack.c.bf16 %v900_v57, %v895_v59 }
 0x183   : > { %v10373_v17 = vpop.permute.xlu1 %995  ;;  %v10375_v18 = vpop.permute.xlu0 %973 }
 0x184   : > { %v9483_v19 = vpack.i.bf16 %v10373_v17, %v10368_v15 }
 0x186   : > { %9484 = vrot.lane.b32.xlu1 %v9483_v19, %s12526_s3  ;;  %v920_v19 = vadd.f32 %v8272_v13, %v7407_v55 }
 0x187   : > { %v10380_v20 = vpop.permute.xlu1 %975  ;;  %v10382_v21 = vpop.permute.xlu0 %997 }
 0x188   : > { %v9488_v22 = vpack.i.bf16 %v10380_v20, %v10375_v18 }
 0x18a   : > { %9489 = vrot.lane.b32.xlu0 %v9488_v22, %s12526_s3  ;;  %v914_v22 = vpop.f32.mrb[5].mxu1 }
 0x18b   : > { %v10387_v23 = vpop.permute.xlu1 %999  ;;  %v10389_v24 = vpop.permute.xlu0 %977 }
 0x18c   : > { %v9493_v25 = vpack.i.bf16 %v10387_v23, %v10382_v21 }
 0x18e   : > { %9494 = vrot.lane.b32.xlu1 %v9493_v25, %s12526_s3  ;;  %v915_v25 = vadd.f32 %v7407_v55, %v914_v22 }
 0x18f   : > { %v10394_v26 = vpop.permute.xlu1 %979  ;;  %v10396_v27 = vpop.permute.xlu0 %1001 }
 0x190   : > { %v9498_v28 = vpack.i.bf16 %v10394_v26, %v10389_v24 }
 0x192   : > { %9499 = vrot.lane.b32.xlu0 %v9498_v28, %s12526_s3  ;;  %v8275_v28 = vpop.f32.mrb[6].mxu1 }
 0x193   : > { %v10401_v29 = vpop.permute.xlu1 %1003  ;;  %v9430_v30 = vpop.permute.xlu0 %9429 }
 0x194   : > { %v9503_v31 = vpack.i.bf16 %v10401_v29, %v10396_v27  ;;  %v9432_v32 = vunpack.i.h.bf16 %v9430_v30  ;;  %v9431_v33 = vunpack.i.l.bf16 %v9430_v30  ;;  %v10434_v30 = vpack.i.bf16 %v910_v1, %v905_v7 }
 0x196   : > { %v9016_v35 = vpack.c.bf16 %v9432_v32, %v9431_v33  ;;  %9504 = vrot.lane.b32.xlu1 %v9503_v31, %s12526_s3  ;;  %v10436_v31 = vpack.c.bf16 %v910_v1, %v905_v7  ;;  %v930_v32 = vadd.f32 %v8275_v28, %v7407_v55  ;;  %v924_v33 = vpop.f32.mrb[7].mxu1 }
 0x197   : > { %v9440_v36 = vpop.permute.xlu0 %9439 }
 0x198   : > { %v9442_v37 = vunpack.i.h.bf16 %v9440_v36  ;;  %v9441_v39 = vunpack.i.l.bf16 %v9440_v36  ;;  %9018 = vmatprep.subr.msk.bf16.mxu0 %vm10407_vm2, %v9016_v35  ;;  %v925_v36 = vadd.f32 %v7407_v55, %v924_v33 }
 0x199   : > { %9021 = vmatpush3.bf16.xpose.msk.msra.mxu0 %vm10407_vm2, %v9016_v35  ;;  %v1014_v35 = vmul.f32 0.35355338, %v10253_v38  ;;  %v1016_v38 = vmul.f32 0.35355338, %v10257_v44  ;;  %v1020_v44 = vmul.f32 0.35355338, %v10278_v54 }
 0x19a   : > { %v9022_v40 = vpack.c.bf16 %v9442_v37, %v9441_v39  ;;  %9509 = vrot.lane.b32.xlu1 %v9508_v10, %s12532_s30  ;;  %v10439_v37 = vpack.i.bf16 %v920_v19, %v915_v25  ;;  %v10441_v39 = vpack.c.bf16 %v920_v19, %v915_v25 }
 0x19b   : > { %v9450_v41 = vpop.permute.xlu0 %9449 }
 0x19c   : > { %v9452_v42 = vunpack.i.h.bf16 %v9450_v41  ;;  %v9451_v43 = vunpack.i.l.bf16 %v9450_v41  ;;  %9024 = vmatprep.subr.msk.bf16.mxu0 %vm10407_vm2, %v9022_v40  ;;  %v10447_v41 = vpack.i.bf16 %v930_v32, %v925_v36  ;;  %9519 = vrot.lane.b32.xlu0 %v10439_v37, %s12532_s30 }
 0x19e   : > { %v9028_v45 = vpack.c.bf16 %v9452_v42, %v9451_v43  ;;  %9514 = vrot.lane.b32.xlu1 %v10434_v30, %s12532_s30  ;;  %v10449_v42 = vpack.c.bf16 %v930_v32, %v925_v36  ;;  %v1017_v43 = vmul.f32 0.35355338, %v10270_v51  ;;  %v1029_v51 = vmul.f32 0.35355338, %v10340_v3 }
 0x19f   : > { %v9460_v47 = vpop.permute.xlu0 %9459 }
 0x1a0   : > { %v9462_v48 = vunpack.i.h.bf16 %v9460_v47  ;;  %v9461_v50 = vunpack.i.l.bf16 %v9460_v47  ;;  %9529 = vrot.lane.b32.xlu0 %v9508_v10, %s12530_s24 }
 0x1a1   : > { %9027 = vmatpush3.bf16.xpose.msk.msra.mxu0 %vm10407_vm2, %v9022_v40  ;;  %v1015_v40 = vmul.f32 0.35355338, %v10259_v46  ;;  %v1018_v46 = vmul.f32 0.35355338, %v10268_v49 }
 0x1a2   : > { %9030 = vmatprep.subr.msk.bf16.mxu0 %vm10407_vm2, %v9028_v45  ;;  %v9034_v52 = vpack.c.bf16 %v9462_v48, %v9461_v50  ;;  %9524 = vrot.lane.b32.xlu1 %v10447_v41, %s12532_s30 }
 0x1a4   : > { %9539 = vrot.lane.b32.xlu0 %v10434_v30, %s12530_s24 }
 0x1a6   : > { %9534 = vrot.lane.b32.xlu1 %v9508_v10, %s12528_s25 }
 0x1a9   : > { %9033 = vmatpush3.bf16.xpose.msk.msra.mxu0 %vm10407_vm2, %v9028_v45  ;;  %v1019_v45 = vmul.f32 0.35355338, %v10280_v56 }
 0x1aa   : > { %9036 = vmatprep.subr.msk.bf16.mxu0 %vm10407_vm2, %v9034_v52 }
 0x1b1   : > { %9039 = vmatpush3.bf16.xpose.msk.msra.mxu0 %vm10407_vm2, %v9034_v52 }
 0x1b8   : > { %8293 = vmatmul.mubr.msk.f32.vlgmr.msra.gmra.mrb[8].mxu0 %vm1141_vm1, %v1014_v35 }
 0x1b9   : > { %8295 = vmatprep.mubr.msk.f32.mxu0 %vm1141_vm1, %v1015_v40 }
 0x1bc   : > { %8296 = vmatmul.mubr.msk.f32.gmra.mrb[10].mxu0 %vm1141_vm1, %v1016_v38 }
 0x1bd   : > { %8298 = vmatprep.mubr.msk.f32.mxu0 %vm1141_vm1, %v1017_v43 }
 0x1c0   : > { %8299 = vmatmul.mubr.msk.f32.gmra.mrb[12].mxu0 %vm1141_vm1, %v1018_v46 }
 0x1c1   : > { %8301 = vmatprep.mubr.msk.f32.mxu0 %vm1141_vm1, %v1019_v45 }
 0x1c4   : > { %8302 = vmatmul.mubr.msk.f32.gmra.mrb[14].mxu0 %vm1141_vm1, %v1020_v44 }
 0x1c5   : > { %8348 = vmatprep.mubr.msk.f32.mxu0 %vm1141_vm1, %v1029_v51 }
 0x1dc   : > { %v9435_v49 = vpop.permute.xlu1 %9434 }
 0x1dd   : > { %v9437_v47 = vunpack.i.h.bf16 %v9435_v49  ;;  %v9436_v56 = vunpack.i.l.bf16 %v9435_v49  ;;  %v1022_v49 = vmul.f32 0.35355338, %v10327_v61  ;;  %v1025_v61 = vmul.f32 0.35355338, %v10333_v0 }
 0x1df   : > { %v9040_v48 = vpack.c.bf16 %v9437_v47, %v9436_v56  ;;  %v1023_v56 = vmul.f32 0.35355338, %v10325_v60 }
 0x1e0   : > { %v9445_v50 = vpop.permute.xlu1 %9444 }
 0x1e1   : > { %v9447_v52 = vunpack.i.h.bf16 %v9445_v50  ;;  %v9446_v53 = vunpack.i.l.bf16 %v9445_v50  ;;  %9042 = vmatprep.subr.msk.bf16.mxu1 %vm10407_vm2, %v9040_v48  ;;  %v1024_v50 = vmul.f32 0.35355338, %v10331_v63  ;;  %v1026_v63 = vmul.f32 0.35355338, %v10338_v2 }
 0x1e2   : > { %9045 = vmatpush3.bf16.xpose.msk.msra.mxu1 %vm10407_vm2, %v9040_v48  ;;  %v1037_v2 = vmul.f32 0.35355338, %v10354_v9  ;;  %v1032_v9 = vmul.f32 0.35355338, %v10366_v14  ;;  %v1036_v14 = vmul.f32 0.35355338, %v10394_v26 }
 0x1e3   : > { %v9046_v54 = vpack.c.bf16 %v9447_v52, %v9446_v53  ;;  %v1041_v26 = vmul.f32 0.35355338, %v10382_v21 }
 0x1e4   : > { %v9455_v55 = vpop.permute.xlu1 %9454 }
 0x1e5   : > { %v9457_v3 = vunpack.i.h.bf16 %v9455_v55  ;;  %v9456_v57 = vunpack.i.l.bf16 %v9455_v55  ;;  %9048 = vmatprep.subr.msk.bf16.mxu1 %vm10407_vm2, %v9046_v54 }
 0x1e7   : > { %v9052_v58 = vpack.c.bf16 %v9457_v3, %v9456_v57 }
 0x1e8   : > { %v9465_v59 = vpop.permute.xlu1 %9464 }
 0x1e9   : > { %v9467_v1 = vunpack.i.h.bf16 %v9465_v59  ;;  %v9466_v4 = vunpack.i.l.bf16 %v9465_v59  ;;  %v1028_v59 = vmul.f32 0.35355338, %v10345_v5  ;;  %v1031_v5 = vmul.f32 0.35355338, %v10361_v12 }
 0x1ea   : > { %9051 = vmatpush3.bf16.xpose.msk.msra.mxu1 %vm10407_vm2, %v9046_v54  ;;  %v1035_v12 = vmul.f32 0.35355338, %v10389_v24  ;;  %v1040_v24 = vmul.f32 0.35355338, %v10373_v17 }
 0x1eb   : > { %9054 = vmatprep.subr.msk.bf16.mxu1 %vm10407_vm2, %v9052_v58  ;;  %v9058_v19 = vpack.c.bf16 %v9467_v1, %v9466_v4  ;;  %v1030_v4 = vmul.f32 0.35355338, %v10352_v8  ;;  %v1034_v8 = vmul.f32 0.35355338, %v10380_v20  ;;  %v1039_v20 = vmul.f32 0.35355338, %v10368_v15 }
 0x1ec   : > { %v9470_v62 = vpop.permute.xlu0 %9469 }
 0x1ed   : > { %v9472_v7 = vunpack.i.h.bf16 %v9470_v62  ;;  %v9471_v10 = vunpack.i.l.bf16 %v9470_v62 }
 0x1ef   : > { %v9064_v13 = vpack.c.bf16 %v9472_v7, %v9471_v10  ;;  %v1033_v10 = vmul.f32 0.35355338, %v10375_v18  ;;  %v1038_v18 = vmul.f32 0.35355338, %v10359_v11  ;;  %v1043_v11 = vmul.f32 0.35355338, %v10396_v27 }
 0x1f0   : > { %v9475_v22 = vpop.permute.xlu1 %9474 }
 0x1f1   : > { %9066 = vmatprep.subr.msk.bf16.mxu0 %vm10407_vm2, %v9064_v13  ;;  %v9477_v28 = vunpack.i.h.bf16 %v9475_v22  ;;  %v9476_v32 = vunpack.i.l.bf16 %v9475_v22  ;;  %v1044_v22 = vmul.f32 0.35355338, %v10401_v29 }
 0x1f2   : > { %9057 = vmatpush3.bf16.xpose.msk.msra.mxu1 %vm10407_vm2, %v9052_v58  ;;  %9069 = vmatpush3.bf16.xpose.msk.msra.mxu0 %vm10407_vm2, %v9064_v13  ;;  %v1027_v58 = vmul.f32 0.35355338, %v10347_v6 }
 0x1f3   : > { %9060 = vmatprep.subr.msk.bf16.mxu1 %vm10407_vm2, %v9058_v19  ;;  %v9088_v40 = vpack.c.bf16 %v9477_v28, %v9476_v32 }
 0x1f4   : > { %v9480_v25 = vpop.permute.xlu0 %9479 }
 0x1f5   : > { %v9482_v33 = vunpack.i.h.bf16 %v9480_v25  ;;  %v9481_v35 = vunpack.i.l.bf16 %v9480_v25 }
 0x1f7   : > { %v9070_v36 = vpack.c.bf16 %v9482_v33, %v9481_v35 }
 0x1f8   : > { %v9485_v38 = vpop.permute.xlu1 %9484 }
 0x1f9   : > { %9072 = vmatprep.subr.msk.bf16.mxu0 %vm10407_vm2, %v9070_v36  ;;  %v9487_v44 = vunpack.i.h.bf16 %v9485_v38  ;;  %v9486_v51 = vunpack.i.l.bf16 %v9485_v38 }
 0x1fa   : > { %9063 = vmatpush3.bf16.xpose.msk.msra.mxu1 %vm10407_vm2, %v9058_v19  ;;  %9075 = vmatpush3.bf16.xpose.msk.msra.mxu0 %vm10407_vm2, %v9070_v36 }
 0x1fb   : > { %9090 = vmatprep.subr.msk.bf16.mxu1 %vm10407_vm2, %v9088_v40  ;;  %v9094_v48 = vpack.c.bf16 %v9487_v44, %v9486_v51 }
 0x1fc   : > { %v9490_v43 = vpop.permute.xlu0 %9489 }
 0x1fd   : > { %v9492_v46 = vunpack.i.h.bf16 %v9490_v43  ;;  %v9491_v45 = vunpack.i.l.bf16 %v9490_v43 }
 0x1ff   : > { %v9076_v47 = vpack.c.bf16 %v9492_v46, %v9491_v45 }
 0x200   : > { %v9495_v52 = vpop.permute.xlu1 %9494 }
 0x201   : > { %8321 = vmatmul.mubr.msk.f32.vlgmr.msra.gmra.mrb[8].mxu1 %vm1141_vm1, %v1022_v49  ;;  %9078 = vmatprep.subr.msk.bf16.mxu0 %vm10407_vm2, %v9076_v47  ;;  %v9497_v55 = vunpack.i.h.bf16 %v9495_v52  ;;  %v9496_v3 = vunpack.i.l.bf16 %v9495_v52 }
 0x202   : > { %8323 = vmatprep.mubr.msk.f32.mxu1 %vm1141_vm1, %v1023_v56  ;;  %9081 = vmatpush3.bf16.xpose.msk.msra.mxu0 %vm10407_vm2, %v9076_v47 }
 0x203   : > { %9093 = vmatpush3.bf16.xpose.msk.msra.mxu1 %vm10407_vm2, %v9088_v40  ;;  %v9100_v0 = vpack.c.bf16 %v9497_v55, %v9496_v3 }
 0x204   : > { %9096 = vmatprep.subr.msk.bf16.mxu1 %vm10407_vm2, %v9094_v48  ;;  %v9500_v60 = vpop.permute.xlu0 %9499 }
 0x205   : > { %v9502_v53 = vunpack.i.h.bf16 %v9500_v60  ;;  %v9501_v54 = vunpack.i.l.bf16 %v9500_v60  ;;  %8324 = vmatmul.mubr.msk.f32.gmra.mrb[10].mxu1 %vm1141_vm1, %v1024_v50 }
 0x206   : > { %8326 = vmatprep.mubr.msk.f32.mxu1 %vm1141_vm1, %v1025_v61 }
 0x207   : > { %v9082_v57 = vpack.c.bf16 %v9502_v53, %v9501_v54 }
 0x208   : > { %v9505_v62 = vpop.permute.xlu1 %9504 }
 0x209   : > { %8327 = vmatmul.mubr.msk.f32.gmra.mrb[12].mxu1 %vm1141_vm1, %v1026_v63  ;;  %9084 = vmatprep.subr.msk.bf16.mxu0 %vm10407_vm2, %v9082_v57  ;;  %v9507_v6 = vunpack.i.h.bf16 %v9505_v62  ;;  %v9506_v1 = vunpack.i.l.bf16 %v9505_v62 }
 0x20a   : > { %8329 = vmatprep.mubr.msk.f32.mxu1 %vm1141_vm1, %v1027_v58  ;;  %9087 = vmatpush3.bf16.xpose.msk.msra.mxu0 %vm10407_vm2, %v9082_v57 }
 0x20b   : > { %9099 = vmatpush3.bf16.xpose.msk.msra.mxu1 %vm10407_vm2, %v9094_v48  ;;  %9113 = vmatprep.subr.bf16.mxu0 %v10431_v16  ;;  %v9106_v7 = vpack.c.bf16 %v9507_v6, %v9506_v1 }
 0x20c   : > { %9102 = vmatprep.subr.msk.bf16.mxu1 %vm10407_vm2, %v9100_v0 }
 0x20d   : > { %8330 = vmatmul.mubr.msk.f32.gmra.mrb[14].mxu1 %vm1141_vm1, %v1028_v59 }
 0x20e   : > { %8376 = vmatprep.mubr.msk.f32.mxu1 %vm1141_vm1, %v1037_v2  ;;  %v9520_v21 = vpop.permute.xlu0 %9519 }
 0x20f   : > { %v9522_v25 = vunpack.i.h.bf16 %v9520_v21  ;;  %v9521_v28 = vunpack.i.l.bf16 %v9520_v21 }
 0x211   : > { %8349 = vmatmul.mubr.msk.f32.vlgmr.msra.gmra.mrb[16].mxu0 %vm1141_vm1, %v1030_v4  ;;  %v9136_v27 = vpack.c.bf16 %v9522_v25, %v9521_v28 }
 0x212   : > { %8351 = vmatprep.mubr.msk.f32.mxu0 %vm1141_vm1, %v1031_v5  ;;  %9115 = vmatpush3.bf16.msra.mxu0 %v10431_v16  ;;  %v9510_v16 = vpop.permute.xlu1 %9509  ;;  %v9530_v36 = vpop.permute.xlu0 %9529 }
 0x213   : > { %9105 = vmatpush3.bf16.xpose.msk.msra.mxu1 %vm10407_vm2, %v9100_v0  ;;  %9117 = vmatprep.subr.bf16.mxu0 %v10436_v31  ;;  %v9532_v40 = vunpack.i.h.bf16 %v9530_v36  ;;  %v9531_v38 = vunpack.i.l.bf16 %v9530_v36 }
 0x214   : > { %9108 = vmatprep.subr.msk.bf16.mxu1 %vm10407_vm2, %v9106_v7 }
 0x215   : > { %8352 = vmatmul.mubr.msk.f32.gmra.mrb[18].mxu0 %vm1141_vm1, %v1032_v9  ;;  %v10572_v45 = vpack.c.bf16 %v9532_v40, %v9531_v38 }
 0x216   : > { %8354 = vmatprep.mubr.msk.f32.mxu0 %vm1141_vm1, %v1033_v10  ;;  %9119 = vmatpush3.bf16.msra.mxu0 %v10436_v31  ;;  %v9512_v31 = vunpack.i.h.bf16 %v9510_v16  ;;  %v9515_v13 = vpop.permute.xlu1 %9514 }
 0x217   : > { %9121 = vmatprep.subr.bf16.mxu0 %v10441_v39  ;;  %v9517_v17 = vunpack.i.h.bf16 %v9515_v13  ;;  %v9516_v19 = vunpack.i.l.bf16 %v9515_v13 }
 0x219   : > { %8355 = vmatmul.mubr.msk.f32.gmra.mrb[20].mxu0 %vm1141_vm1, %v1034_v8  ;;  %v9132_v32 = vpack.c.bf16 %v9517_v17, %v9516_v19 }
 0x21a   : > { %8357 = vmatprep.mubr.msk.f32.mxu0 %vm1141_vm1, %v1035_v12  ;;  %9123 = vmatpush3.bf16.msra.mxu0 %v10441_v39  ;;  %v9511_v39 = vunpack.i.l.bf16 %v9510_v16 }
 0x21b   : > { %9111 = vmatpush3.bf16.xpose.msk.msra.mxu1 %vm10407_vm2, %v9106_v7  ;;  %9125 = vmatprep.subr.bf16.mxu0 %v10449_v42 }
 0x21c   : > { %v9128_v15 = vpack.c.bf16 %v9512_v31, %v9511_v39 }
 0x21d   : > { %8358 = vmatmul.mubr.msk.f32.gmra.mrb[22].mxu0 %vm1141_vm1, %v1036_v14 }
 0x21e   : > { %9127 = vmatpush3.bf16.msra.mxu0 %v10449_v42  ;;  %v1042_v42 = vmul.f32 0.35355338, %v10387_v23  ;;  %9129 = vmatprep.subr.bf16.mxu1 %v9128_v15  ;;  %v9525_v23 = vpop.permute.xlu1 %9524 }
 0x21f   : > { %v9527_v33 = vunpack.i.h.bf16 %v9525_v23  ;;  %v9526_v35 = vunpack.i.l.bf16 %v9525_v23  ;;  %9145 = vmatprep.subr.bf16.mxu0 %v10572_v45 }
 0x221   : > { %v9140_v43 = vpack.c.bf16 %v9527_v33, %v9526_v35 }
 0x222   : > { %8377 = vmatmul.mubr.msk.f32.vlgmr.msra.gmra.mrb[16].mxu1 %vm1141_vm1, %v1038_v18  ;;  %v9535_v46 = vpop.permute.xlu1 %9534 }
 0x223   : > { %8379 = vmatprep.mubr.msk.f32.mxu1 %vm1141_vm1, %v1039_v20  ;;  %9131 = vmatpush3.bf16.msra.mxu1 %v9128_v15  ;;  %v9537_v29 = vunpack.i.h.bf16 %v9535_v46  ;;  %v9536_v44 = vunpack.i.l.bf16 %v9535_v46 }
 0x224   : > { %9133 = vmatprep.subr.bf16.mxu1 %v9132_v32 }
 0x225   : > { %v10575_v51 = vpack.c.bf16 %v9537_v29, %v9536_v44 }
 0x226   : > { %8380 = vmatmul.mubr.msk.f32.gmra.mrb[18].mxu1 %vm1141_vm1, %v1040_v24 }
 0x227   : > { %8382 = vmatprep.mubr.msk.f32.mxu1 %vm1141_vm1, %v1041_v26  ;;  %9135 = vmatpush3.bf16.msra.mxu1 %v9132_v32 }
 0x228   : > { %9137 = vmatprep.subr.bf16.mxu1 %v9136_v27 }
 0x22a   : > { %8383 = vmatmul.mubr.msk.f32.gmra.mrb[20].mxu1 %vm1141_vm1, %v1042_v42 }
 0x22b   : > { %8385 = vmatprep.mubr.msk.f32.mxu1 %vm1141_vm1, %v1043_v11  ;;  %9139 = vmatpush3.bf16.msra.mxu1 %v9136_v27 }
 0x22c   : > { %9141 = vmatprep.subr.bf16.mxu1 %v9140_v43 }
 0x22e   : > { %8386 = vmatmul.mubr.msk.f32.gmra.mrb[22].mxu1 %vm1141_vm1, %v1044_v22 }
 0x22f   : > { %9143 = vmatpush3.bf16.msra.mxu1 %v9140_v43 }
 0x230   : > { %9161 = vmatprep.subr.bf16.mxu1 %v10575_v51 }
 0x28b   : > { %v10578_v49 = vpop.f32.mrb[8].mxu0 }
 0x28c   : > { %v10580_v47 = vpop.f32.mrb[9].mxu0  ;;  %v1774_v56 = vsel %vm1770_vm3, %v10578_v49, -inf }
 0x28d   : > { %1775 = vmax.xlane.f32.xlu1 %v1774_v56  ;;  %v1771_v48 = vsel %vm1770_vm3, %v10580_v47, -inf }
 0x28e   : > { %1772 = vmax.xlane.f32.xlu0 %v1771_v48 }
 0x28f   : > { %v10586_v50 = vpop.f32.mrb[10].mxu0 }
 0x290   : > { %v10588_v52 = vpop.f32.mrb[11].mxu0  ;;  %v1780_v61 = vsel %vm1770_vm3, %v10586_v50, -inf }
 0x291   : > { %v1777_v60 = vsel %vm1770_vm3, %v10588_v52, -inf }
 0x292   : > { %1781 = vmax.xlane.f32.xlu0 %v1780_v61  ;;  %1778 = vmax.xlane.f32.xlu1 %v1777_v60 }
 0x293   : > { %v10594_v53 = vpop.f32.mrb[12].mxu0 }
 0x294   : > { %v10596_v54 = vpop.f32.mrb[13].mxu0  ;;  %v1786_v55 = vsel %vm1770_vm3, %v10594_v53, -inf }
 0x295   : > { %v1783_v3 = vsel %vm1770_vm3, %v10596_v54, -inf }
 0x296   : > { %1787 = vmax.xlane.f32.xlu0 %v1786_v55  ;;  %1784 = vmax.xlane.f32.xlu1 %v1783_v3  ;;  %v10702_v55 = vpop.permute.xlu0 %9539 }
 0x297   : > { %v10602_v63 = vpop.f32.mrb[14].mxu0 }
 0x298   : > { %v10604_v57 = vpop.f32.mrb[15].mxu0  ;;  %v1792_v58 = vsel %vm1770_vm3, %v10602_v63, -inf }
 0x299   : > { %v1789_v0 = vsel %vm1770_vm3, %v10604_v57, -inf }
 0x29a   : > { %1793 = vmax.xlane.f32.xlu0 %v1792_v58  ;;  %1790 = vmax.xlane.f32.xlu1 %v1789_v0 }
 0x2d4   : > { %v10610_v59 = vpop.f32.mrb[8].mxu1 }
 0x2d5   : > { %v10612_v62 = vpop.f32.mrb[9].mxu1  ;;  %v1798_v2 = vsel %vm1770_vm3, %v10610_v59, -inf }
 0x2d6   : > { %1799 = vmax.xlane.f32.xlu0 %v1798_v2  ;;  %v1795_v24 = vsel %vm1770_vm3, %v10612_v62, -inf }
 0x2d8   : > { %v10616_v6 = vpop.f32.mrb[10].mxu1 }
 0x2d9   : > { %v10618_v1 = vpop.f32.mrb[11].mxu1  ;;  %v1804_v39 = vsel %vm1770_vm3, %v10616_v6, -inf }
 0x2da   : > { %v1801_v26 = vsel %vm1770_vm3, %v10618_v1, -inf }
 0x2dc   : > { %v10620_v4 = vpop.f32.mrb[12].mxu1 }
 0x2dd   : > { %v10622_v5 = vpop.f32.mrb[13].mxu1  ;;  %v1810_v21 = vsel %vm1770_vm3, %v10620_v4, -inf }
 0x2de   : > { %v1807_v17 = vsel %vm1770_vm3, %v10622_v5, -inf }
 0x2e0   : > { %v10624_v7 = vpop.f32.mrb[14].mxu1 }
 0x2e1   : > { %v10626_v9 = vpop.f32.mrb[15].mxu1  ;;  %v1816_v35 = vsel %vm1770_vm3, %v10624_v7, -inf }
 0x2e2   : > { %v1813_v27 = vsel %vm1770_vm3, %v10626_v9, -inf }
 0x2e4   : > { %v10628_v10 = vpop.f32.mrb[16].mxu0 }
 0x2e5   : > { %v10630_v8 = vpop.f32.mrb[17].mxu0  ;;  %v1822_v12 = vsel %vm1770_vm3, %v10628_v10, -inf }
 0x2e6   : > { %1823 = vmax.xlane.f32.xlu0 %v1822_v12  ;;  %v1819_v14 = vsel %vm1770_vm3, %v10630_v8, -inf }
 0x2e7   : > { %1820 = vmax.xlane.f32.xlu1 %v1819_v14 }
 0x2e8   : > { %v10636_v18 = vpop.f32.mrb[18].mxu0 }
 0x2e9   : > { %v10638_v20 = vpop.f32.mrb[19].mxu0  ;;  %v1828_v13 = vsel %vm1770_vm3, %v10636_v18, -inf }
 0x2ea   : > { %1796 = vmax.xlane.f32.xlu0 %v1795_v24  ;;  %v1825_v42 = vsel %vm1770_vm3, %v10638_v20, -inf }
 0x2eb   : > { %1802 = vmax.xlane.f32.xlu1 %v1801_v26 }
 0x2ec   : > { %v10644_v16 = vpop.f32.mrb[20].mxu0 }
 0x2ed   : > { %v10646_v31 = vpop.f32.mrb[21].mxu0  ;;  %v1834_v32 = vsel %vm1770_vm3, %v10644_v16, -inf }
 0x2ee   : > { %1805 = vmax.xlane.f32.xlu0 %v1804_v39  ;;  %v1831_v25 = vsel %vm1770_vm3, %v10646_v31, -inf }
 0x2ef   : > { %1826 = vmax.xlane.f32.xlu1 %v1825_v42 }
 0x2f0   : > { %v10652_v11 = vpop.f32.mrb[22].mxu0 }
 0x2f1   : > { %v10654_v15 = vpop.f32.mrb[23].mxu0  ;;  %v1840_v43 = vsel %vm1770_vm3, %v10652_v11, -inf }
 0x2f2   : > { %1829 = vmax.xlane.f32.xlu0 %v1828_v13  ;;  %v1837_v40 = vsel %vm1770_vm3, %v10654_v15, -inf }
 0x2f3   : > { %1808 = vmax.xlane.f32.xlu1 %v1807_v17 }
 0x2f5   : > { %v10660_v19 = vpop.f32.mrb[16].mxu1 }
 0x2f6   : > { %v10664_v22 = vpop.f32.mrb[17].mxu1  ;;  %1811 = vmax.xlane.f32.xlu0 %v1810_v21  ;;  %v1846_v44 = vsel %vm1770_vm3, %v10660_v19, -inf }
 0x2f7   : > { %1832 = vmax.xlane.f32.xlu1 %v1831_v25  ;;  %v1843_v29 = vsel %vm1770_vm3, %v10664_v22, -inf }
 0x2f9   : > { %v10668_v28 = vpop.f32.mrb[18].mxu1 }
 0x2fa   : > { %v10672_v23 = vpop.f32.mrb[19].mxu1  ;;  %1835 = vmax.xlane.f32.xlu0 %v1834_v32  ;;  %v1852_v48 = vsel %vm1770_vm3, %v10668_v28, -inf }
 0x2fb   : > { %1814 = vmax.xlane.f32.xlu1 %v1813_v27  ;;  %v1849_v56 = vsel %vm1770_vm3, %v10672_v23, -inf }
 0x2fd   : > { %v10676_v33 = vpop.f32.mrb[20].mxu1 }
 0x2fe   : > { %v10680_v36 = vpop.f32.mrb[21].mxu1  ;;  %1817 = vmax.xlane.f32.xlu0 %v1816_v35  ;;  %v1858_v60 = vsel %vm1770_vm3, %v10676_v33, -inf }
 0x2ff   : > { %1838 = vmax.xlane.f32.xlu1 %v1837_v40  ;;  %v1855_v61 = vsel %vm1770_vm3, %v10680_v36, -inf }
 0x301   : > { %v10684_v38 = vpop.f32.mrb[22].mxu1 }
 0x302   : > { %v10688_v46 = vpop.f32.mrb[23].mxu1  ;;  %1841 = vmax.xlane.f32.xlu0 %v1840_v43 }
 0x303   : > { %1844 = vmax.xlane.f32.xlu1 %v1843_v29 }
 0x306   : > { %1847 = vmax.xlane.f32.xlu0 %v1846_v44 }
 0x307   : > { %1850 = vmax.xlane.f32.xlu1 %v1849_v56 }
 0x30a   : > { %1853 = vmax.xlane.f32.xlu0 %v1852_v48 }
 0x30b   : > { %1856 = vmax.xlane.f32.xlu1 %v1855_v61 }
 0x30e   : > { %1859 = vmax.xlane.f32.xlu0 %v1858_v60 }
 0x31a   : > { %v1776_v3 = vpop.xlane.xlu1 %1775 }
 0x31b   : > { %v1868_v58 = vsub.f32 %v10578_v49, %v1776_v3  ;;  %v1773_v0 = vpop.xlane.xlu0 %1772 }
 0x31c   : > { %v1867_v2 = vsub.f32 %v10580_v47, %v1773_v0 }
 0x31d   : > { %v1901_v12 = vmul.f32 1.442695, %v1868_v58 }
 0x31e   : > { %v1899_v14 = vmul.f32 1.442695, %v1867_v2 }
 0x31f   : > { %9708 = vpow2.f32 %v1901_v12  ;;  %v1782_v24 = vpop.xlane.xlu0 %1781  ;;  %v1779_v26 = vpop.xlane.xlu1 %1778 }
 0x320   : > { %9710 = vpow2.f32 %v1899_v14  ;;  %v1870_v39 = vsub.f32 %v10586_v50, %v1782_v24  ;;  %v1869_v2 = vsub.f32 %v10588_v52, %v1779_v26 }
 0x322   : > { %v1905_v42 = vmul.f32 1.442695, %v1870_v39  ;;  %v1903_v12 = vmul.f32 1.442695, %v1869_v2 }
 0x323   : > { %v1788_v13 = vpop.xlane.xlu0 %1787  ;;  %v1785_v17 = vpop.xlane.xlu1 %1784 }
 0x324   : > { %v1872_v21 = vsub.f32 %v10594_v53, %v1788_v13  ;;  %9712 = vpow2.f32 %v1905_v42  ;;  %v1871_v14 = vsub.f32 %v10596_v54, %v1785_v17 }
 0x326   : > { %v1909_v25 = vmul.f32 1.442695, %v1872_v21  ;;  %v1907_v24 = vmul.f32 1.442695, %v1871_v14 }
 0x327   : > { %v1794_v32 = vpop.xlane.xlu0 %1793  ;;  %v1791_v49 = vpop.xlane.xlu1 %1790 }
 0x328   : > { %v1874_v27 = vsub.f32 %v10602_v63, %v1794_v32  ;;  %9714 = vpow2.f32 %v1909_v25  ;;  %v1873_v35 = vsub.f32 %v10604_v57, %v1791_v49  ;;  %v1864_v63 = vsel %vm1770_vm3, %v10684_v38, -inf }
 0x329   : > { %v10709_v47 = vpop.eup %9708  ;;  %v1861_v57 = vsel %vm1770_vm3, %v10688_v46, -inf }
 0x32a   : > { %v10712_v40 = vpop.eup %9710  ;;  %v1913_v43 = vmul.f32 1.442695, %v1874_v27  ;;  %v1966_v50 = vsel %vm1770_vm3, %v10709_v47, 0.0  ;;  %v1911_v29 = vmul.f32 1.442695, %v1873_v35 }
 0x32b   : > { %1967 = vadd.xlane.f32.xlu0 %v1966_v50  ;;  %v1963_v53 = vsel %vm1770_vm3, %v10712_v40, 0.0 }
 0x32c   : > { %1964 = vadd.xlane.f32.xlu1 %v1963_v53  ;;  %9716 = vpow2.f32 %v1913_v43 }
 0x32d   : > { %9718 = vpow2.f32 %v1911_v29 }
 0x32e   : > { %v10720_v44 = vpop.eup %9712  ;;  %9720 = vpow2.f32 %v1903_v12 }
 0x32f   : > { %1865 = vmax.xlane.f32.xlu0 %v1864_v63  ;;  %v1972_v56 = vsel %vm1770_vm3, %v10720_v44, 0.0  ;;  %9722 = vpow2.f32 %v1907_v24 }
 0x330   : > { %1862 = vmax.xlane.f32.xlu1 %v1861_v57 }
 0x332   : > { %v10726_v48 = vpop.eup %9714 }
 0x333   : > { %1973 = vadd.xlane.f32.xlu0 %v1972_v56  ;;  %v1978_v61 = vsel %vm1770_vm3, %v10726_v48, 0.0 }
 0x336   : > { %v10730_v60 = vpop.eup %9716 }
 0x337   : > { %1979 = vadd.xlane.f32.xlu0 %v1978_v61  ;;  %v1984_v3 = vsel %vm1770_vm3, %v10730_v60, 0.0  ;;  %v10734_v58 = vpop.eup %9718 }
 0x338   : > { %v1981_v0 = vsel %vm1770_vm3, %v10734_v58, 0.0  ;;  %v10742_v39 = vpop.eup %9720 }
 0x339   : > { %v1969_v21 = vsel %vm1770_vm3, %v10742_v39, 0.0  ;;  %v10747_v25 = vpop.eup %9722 }
 0x33a   : > { %v1975_v52 = vsel %vm1770_vm3, %v10747_v25, 0.0 }
 0x33b   : > { %1985 = vadd.xlane.f32.xlu0 %v1984_v3 }
 0x33f   : > { %1982 = vadd.xlane.f32.xlu0 %v1981_v0 }
 0x341   : > { %9544 = vrot.lane.b32.xlu1 %v10434_v30, %s12528_s25 }
 0x363   : > { %v1800_v42 = vpop.xlane.xlu0 %1799 }
 0x364   : > { %v1876_v13 = vsub.f32 %v10610_v59, %v1800_v42 }
 0x365   : > { %1970 = vadd.xlane.f32.xlu1 %v1969_v21 }
 0x366   : > { %v1917_v30 = vmul.f32 1.442695, %v1876_v13 }
 0x368   : > { %9724 = vpow2.f32 %v1917_v30 }
 0x369   : > { %1976 = vadd.xlane.f32.xlu1 %v1975_v52 }
 0x372   : > { %v10751_v54 = vpop.eup %9724 }
 0x373   : > { %v1824_v26 = vpop.xlane.xlu0 %1823  ;;  %v1990_v17 = vsel %vm1770_vm3, %v10751_v54, 0.0 }
 0x374   : > { %v1884_v59 = vsub.f32 %v10628_v10, %v1824_v26  ;;  %v1821_v32 = vpop.xlane.xlu1 %1820  ;;  %1991 = vadd.xlane.f32.xlu0 %v1990_v17 }
 0x375   : > { %v1883_v49 = vsub.f32 %v10630_v8, %v1821_v32 }
 0x376   : > { %v1933_v27 = vmul.f32 1.442695, %v1884_v59 }
 0x377   : > { %v1931_v35 = vmul.f32 1.442695, %v1883_v49  ;;  %v1797_v43 = vpop.xlane.xlu0 %1796 }
 0x378   : > { %9726 = vpow2.f32 %v1933_v27  ;;  %v1875_v50 = vsub.f32 %v10612_v62, %v1797_v43  ;;  %v1803_v53 = vpop.xlane.xlu1 %1802 }
 0x379   : > { %9728 = vpow2.f32 %v1931_v35  ;;  %v1877_v61 = vsub.f32 %v10618_v1, %v1803_v53 }
 0x37a   : > { %v1915_v29 = vmul.f32 1.442695, %v1875_v50 }
 0x37b   : > { %v1806_v63 = vpop.xlane.xlu0 %1805  ;;  %v1919_v14 = vmul.f32 1.442695, %v1877_v61 }
 0x37c   : > { %9730 = vpow2.f32 %v1915_v29  ;;  %v1878_v57 = vsub.f32 %v10616_v6, %v1806_v63  ;;  %v1827_v56 = vpop.xlane.xlu1 %1826 }
 0x37d   : > { %v1885_v10 = vsub.f32 %v10638_v20, %v1827_v56 }
 0x37e   : > { %v1921_v3 = vmul.f32 1.442695, %v1878_v57 }
 0x37f   : > { %v1935_v8 = vmul.f32 1.442695, %v1885_v10  ;;  %v1830_v0 = vpop.xlane.xlu0 %1829 }
 0x380   : > { %9732 = vpow2.f32 %v1921_v3  ;;  %v1886_v2 = vsub.f32 %v10636_v18, %v1830_v0  ;;  %v1809_v12 = vpop.xlane.xlu1 %1808 }
 0x381   : > { %9734 = vpow2.f32 %v1935_v8  ;;  %v1879_v52 = vsub.f32 %v10622_v5, %v1809_v12 }
 0x382   : > { %v10762_v62 = vpop.eup %9726  ;;  %v1937_v24 = vmul.f32 1.442695, %v1886_v2 }
 0x383   : > { %v10764_v42 = vpop.eup %9728  ;;  %v1812_v6 = vpop.xlane.xlu0 %1811  ;;  %v2014_v20 = vsel %vm1770_vm3, %v10762_v62, 0.0 }
 0x384   : > { %9736 = vpow2.f32 %v1937_v24  ;;  %v1880_v1 = vsub.f32 %v10620_v4, %v1812_v6  ;;  %v1833_v13 = vpop.xlane.xlu1 %1832  ;;  %2015 = vadd.xlane.f32.xlu1 %v2014_v20  ;;  %v2011_v18 = vsel %vm1770_vm3, %v10764_v42, 0.0 }
 0x385   : > { %v1887_v21 = vsub.f32 %v10646_v31, %v1833_v13  ;;  %2012 = vadd.xlane.f32.xlu0 %v2011_v18  ;;  %9738 = vpow2.f32 %v1919_v14  ;;  %v1923_v31 = vmul.f32 1.442695, %v1879_v52 }
 0x386   : > { %v10772_v30 = vpop.eup %9730  ;;  %v1925_v26 = vmul.f32 1.442695, %v1880_v1 }
 0x387   : > { %v1939_v17 = vmul.f32 1.442695, %v1887_v21  ;;  %v1836_v59 = vpop.xlane.xlu0 %1835  ;;  %v1987_v32 = vsel %vm1770_vm3, %v10772_v30, 0.0 }
 0x388   : > { %9740 = vpow2.f32 %v1925_v26  ;;  %v1888_v4 = vsub.f32 %v10644_v16, %v1836_v59  ;;  %v1815_v49 = vpop.xlane.xlu1 %1814  ;;  %1988 = vadd.xlane.f32.xlu1 %v1987_v32 }
 0x389   : > { %9742 = vpow2.f32 %v1939_v17  ;;  %v1881_v43 = vsub.f32 %v10626_v9, %v1815_v49 }
 0x38a   : > { %v10778_v27 = vpop.eup %9732  ;;  %v1941_v35 = vmul.f32 1.442695, %v1888_v4 }
 0x38b   : > { %v1818_v50 = vpop.xlane.xlu0 %1817  ;;  %v1996_v5 = vsel %vm1770_vm3, %v10778_v27, 0.0  ;;  %v10783_v53 = vpop.eup %9734  ;;  %v1927_v57 = vmul.f32 1.442695, %v1881_v43 }
 0x38c   : > { %9744 = vpow2.f32 %v1941_v35  ;;  %v1882_v29 = vsub.f32 %v10624_v7, %v1818_v50  ;;  %1997 = vadd.xlane.f32.xlu0 %v1996_v5  ;;  %v1839_v16 = vpop.xlane.xlu1 %1838  ;;  %v2017_v9 = vsel %vm1770_vm3, %v10783_v53, 0.0 }
 0x38d   : > { %9746 = vpow2.f32 %v1923_v31  ;;  %v1889_v10 = vsub.f32 %v10654_v15, %v1839_v16 }
 0x38e   : > { %v10786_v63 = vpop.eup %9736  ;;  %v1929_v56 = vmul.f32 1.442695, %v1882_v29 }
 0x38f   : > { %v1842_v61 = vpop.xlane.xlu0 %1841  ;;  %v2020_v3 = vsel %vm1770_vm3, %v10786_v63, 0.0  ;;  %v10793_v8 = vpop.eup %9738  ;;  %v1943_v12 = vmul.f32 1.442695, %v1889_v10 }
 0x390   : > { %9748 = vpow2.f32 %v1929_v56  ;;  %v1890_v7 = vsub.f32 %v10652_v11, %v1842_v61  ;;  %2018 = vadd.xlane.f32.xlu0 %v2017_v9  ;;  %2021 = vadd.xlane.f32.xlu1 %v2020_v3  ;;  %v1845_v0 = vpop.xlane.xlu1 %1844  ;;  %v1993_v6 = vsel %vm1770_vm3, %v10793_v8, 0.0 }
 0x391   : > { %9750 = vpow2.f32 %v1927_v57  ;;  %v1891_v13 = vsub.f32 %v10664_v22, %v1845_v0 }
 0x392   : > { %v10796_v2 = vpop.eup %9740  ;;  %v1945_v15 = vmul.f32 1.442695, %v1890_v7 }
 0x393   : > { %v1848_v14 = vpop.xlane.xlu0 %1847  ;;  %v2002_v24 = vsel %vm1770_vm3, %v10796_v2, 0.0  ;;  %v10802_v20 = vpop.eup %9742  ;;  %v1947_v4 = vmul.f32 1.442695, %v1891_v13 }
 0x394   : > { %9752 = vpow2.f32 %v1945_v15  ;;  %v1892_v11 = vsub.f32 %v10660_v19, %v1848_v14  ;;  %2003 = vadd.xlane.f32.xlu0 %v2002_v24  ;;  %1994 = vadd.xlane.f32.xlu1 %v1993_v6  ;;  %v1851_v1 = vpop.xlane.xlu1 %1850  ;;  %v2023_v17 = vsel %vm1770_vm3, %v10802_v20, 0.0 }
 0x395   : > { %9754 = vpow2.f32 %v1943_v12  ;;  %v1893_v52 = vsub.f32 %v10672_v23, %v1851_v1 }
 0x396   : > { %v10806_v18 = vpop.eup %9744  ;;  %v1949_v21 = vmul.f32 1.442695, %v1892_v11 }
 0x397   : > { %v1854_v26 = vpop.xlane.xlu0 %1853  ;;  %v2026_v59 = vsel %vm1770_vm3, %v10806_v18, 0.0  ;;  %v10813_v32 = vpop.eup %9746  ;;  %v1951_v23 = vmul.f32 1.442695, %v1893_v52 }
 0x398   : > { %v1894_v19 = vsub.f32 %v10668_v28, %v1854_v26  ;;  %2024 = vadd.xlane.f32.xlu0 %v2023_v17  ;;  %2027 = vadd.xlane.f32.xlu1 %v2026_v59  ;;  %v1857_v22 = vpop.xlane.xlu1 %1856  ;;  %9756 = vpow2.f32 %v1949_v21  ;;  %v1999_v5 = vsel %vm1770_vm3, %v10813_v32, 0.0 }
 0x399   : > { %v1895_v49 = vsub.f32 %v10680_v36, %v1857_v22 }
 0x39a   : > { %v10817_v31 = vpop.eup %9748  ;;  %v1953_v35 = vmul.f32 1.442695, %v1894_v19 }
 0x39b   : > { %v1860_v43 = vpop.xlane.xlu0 %1859  ;;  %v2008_v50 = vsel %vm1770_vm3, %v10817_v31, 0.0  ;;  %v10823_v29 = vpop.eup %9750  ;;  %v1955_v36 = vmul.f32 1.442695, %v1895_v49 }
 0x39c   : > { %9758 = vpow2.f32 %v1953_v35  ;;  %v1896_v28 = vsub.f32 %v10676_v33, %v1860_v43  ;;  %2009 = vadd.xlane.f32.xlu0 %v2008_v50  ;;  %2000 = vadd.xlane.f32.xlu1 %v1999_v5  ;;  %v2005_v56 = vsel %vm1770_vm3, %v10823_v29, 0.0  ;;  %v9542_v35 = vunpack.i.h.bf16 %v10702_v55 }
 0x39d   : > { %9760 = vpow2.f32 %v1947_v4  ;;  %v9541_v43 = vunpack.i.l.bf16 %v10702_v55 }
 0x39e   : > { %v10826_v16 = vpop.eup %9752  ;;  %9762 = vpow2.f32 %v1951_v23  ;;  %v1957_v57 = vmul.f32 1.442695, %v1896_v28 }
 0x39f   : > { %v2032_v10 = vsel %vm1770_vm3, %v10826_v16, 0.0  ;;  %v10832_v61 = vpop.eup %9754  ;;  %9764 = vpow2.f32 %v1955_v36 }
 0x3a0   : > { %2006 = vadd.xlane.f32.xlu0 %v2005_v56  ;;  %2033 = vadd.xlane.f32.xlu1 %v2032_v10  ;;  %9766 = vpow2.f32 %v1957_v57  ;;  %v2029_v33 = vsel %vm1770_vm3, %v10832_v61, 0.0 }
 0x3a2   : > { %v10836_v9 = vpop.eup %9756 }
 0x3a3   : > { %v2038_v12 = vsel %vm1770_vm3, %v10836_v9, 0.0 }
 0x3a4   : > { %2030 = vadd.xlane.f32.xlu0 %v2029_v33 }
 0x3a6   : > { %v10838_v3 = vpop.eup %9758 }
 0x3a7   : > { %v10840_v7 = vpop.eup %9760  ;;  %v2044_v0 = vsel %vm1770_vm3, %v10838_v3, 0.0 }
 0x3a8   : > { %v10846_v15 = vpop.eup %9762  ;;  %2045 = vadd.xlane.f32.xlu1 %v2044_v0  ;;  %2039 = vadd.xlane.f32.xlu0 %v2038_v12  ;;  %v2035_v24 = vsel %vm1770_vm3, %v10840_v7, 0.0 }
 0x3a9   : > { %v10848_v14 = vpop.eup %9764  ;;  %v2041_v6 = vsel %vm1770_vm3, %v10846_v15, 0.0 }
 0x3aa   : > { %v10854_v11 = vpop.eup %9766  ;;  %v2047_v13 = vsel %vm1770_vm3, %v10848_v14, 0.0 }
 0x3ab   : > { %v2050_v1 = vsel %vm1770_vm3, %v10854_v11, 0.0 }
 0x3ac   : > { %2036 = vadd.xlane.f32.xlu0 %v2035_v24  ;;  %2042 = vadd.xlane.f32.xlu1 %v2041_v6 }
 0x3b0   : > { %2051 = vadd.xlane.f32.xlu1 %v2050_v1  ;;  %2048 = vadd.xlane.f32.xlu0 %v2047_v13 }
 0x3b8   : > { %v1968_v21 = vpop.xlane.xlu0 %1967 }
 0x3b9   : > { %9768 = vrcp.f32 %v1968_v21  ;;  %v1965_v52 = vpop.xlane.xlu1 %1964 }
 0x3ba   : > { %9770 = vrcp.f32 %v1965_v52 }
 0x3bc   : > { %v1866_v26 = vpop.xlane.xlu0 %1865 }
 0x3bd   : > { %v1898_v17 = vsub.f32 %v10684_v38, %v1866_v26  ;;  %v1863_v59 = vpop.xlane.xlu1 %1862  ;;  %v9148_v38 = vpack.c.bf16 %v9542_v35, %v9541_v43 }
 0x3be   : > { %v1897_v19 = vsub.f32 %v10688_v46, %v1863_v59 }
 0x3bf   : > { %v1961_v22 = vmul.f32 1.442695, %v1898_v17 }
 0x3c0   : > { %v1959_v4 = vmul.f32 1.442695, %v1897_v19 }
 0x3c1   : > { %9772 = vpow2.f32 %v1961_v22  ;;  %v9545_v57 = vpop.permute.xlu1 %9544 }
 0x3c2   : > { %9774 = vpow2.f32 %v1959_v4  ;;  %v9547_v35 = vunpack.i.h.bf16 %v9545_v57 }
 0x3c3   : > { %v9769_v49 = vpop.eup %9768 }
 0x3c4   : > { %v9771_v23 = vpop.eup %9770  ;;  %v2092_v5 = vmul.f32 %v9769_v49, %v10709_v47  ;;  %v1974_v47 = vpop.xlane.xlu0 %1973 }
 0x3c5   : > { %v2091_v50 = vmul.f32 %v9771_v23, %v10712_v40  ;;  %9776 = vrcp.f32 %v1974_v47 }
 0x3c7   : > { %8404 = vmatprep.mubr.msk.f32.mxu0 %vm1770_vm3, %v2091_v50 }
 0x3c8   : > { %8405 = vmatmul.mubr.msk.f32.vlgmr.msra.gmra.mrb[24].mxu0 %vm1770_vm3, %v2092_v5 }
 0x3c9   : > { %9147 = vmatpush3.bf16.msra.mxu0 %v10572_v45  ;;  %v1980_v45 = vpop.xlane.xlu0 %1979 }
 0x3ca   : > { %9149 = vmatprep.subr.bf16.mxu0 %v9148_v38 }
 0x3cb   : > { %v10869_v46 = vpop.eup %9772 }
 0x3cc   : > { %v10871_v28 = vpop.eup %9774  ;;  %v2056_v36 = vsel %vm1770_vm3, %v10869_v46, 0.0 }
 0x3cd   : > { %9151 = vmatpush3.bf16.msra.mxu0 %v9148_v38  ;;  %2057 = vadd.xlane.f32.xlu1 %v2056_v36  ;;  %v2053_v55 = vsel %vm1770_vm3, %v10871_v28, 0.0  ;;  %v1986_v40 = vpop.xlane.xlu0 %1985 }
 0x3ce   : > { %2054 = vadd.xlane.f32.xlu0 %v2053_v55 }
 0x3cf   : > { %v9777_v0 = vpop.eup %9776 }
 0x3d0   : > { %v2094_v6 = vmul.f32 %v9777_v0, %v10720_v44 }
 0x3d1   : > { %v1983_v10 = vpop.xlane.xlu0 %1982 }
 0x3de   : > { %9554 = vrot.lane.b32.xlu1 %v10439_v37, %s12528_s25 }
 0x3e2   : > { %9559 = vrot.lane.b32.xlu1 %v10447_v41, %s12530_s24 }
 0x3e4   : > { %9549 = vrot.lane.b32.xlu0 %v10439_v37, %s12530_s24 }
 0x3e6   : > { %9564 = vrot.lane.b32.xlu1 %v10447_v41, %s12528_s25 }
 0x3f2   : > { %v1971_v56 = vpop.xlane.xlu1 %1970 }
 0x3f3   : > { %9778 = vrcp.f32 %v1971_v56 }
 0x3f4   : > { %9780 = vrcp.f32 %v1980_v45 }
 0x3f5   : > { %9782 = vrcp.f32 %v1983_v10 }
 0x3f6   : > { %v1977_v33 = vpop.xlane.xlu1 %1976 }
 0x3f7   : > { %9784 = vrcp.f32 %v1977_v33 }
 0x3f8   : > { %9786 = vrcp.f32 %v1986_v40 }
 0x3fd   : > { %v9779_v12 = vpop.eup %9778 }
 0x3fe   : > { %v2093_v24 = vmul.f32 %v9779_v12, %v10742_v39  ;;  %v9781_v37 = vpop.eup %9780 }
 0x3ff   : > { %v9783_v41 = vpop.eup %9782  ;;  %v2096_v21 = vmul.f32 %v9781_v37, %v10726_v48 }
 0x400   : > { %8407 = vmatprep.mubr.msk.f32.mxu0 %vm1770_vm3, %v2093_v24  ;;  %v2097_v26 = vmul.f32 %v9783_v41, %v10734_v58 }
 0x401   : > { %v9785_v1 = vpop.eup %9784  ;;  %8408 = vmatmul.mubr.msk.f32.gmra.mrb[26].mxu0 %vm1770_vm3, %v2094_v6  ;;  %v1992_v39 = vpop.xlane.xlu0 %1991 }
 0x402   : > { %v2095_v13 = vmul.f32 %v9785_v1, %v10747_v25  ;;  %v9787_v52 = vpop.eup %9786 }
 0x403   : > { %v2098_v44 = vmul.f32 %v9787_v52, %v10730_v60  ;;  %v9546_v60 = vunpack.i.l.bf16 %v9545_v57 }
 0x404   : > { %8410 = vmatprep.mubr.msk.f32.mxu0 %vm1770_vm3, %v2095_v13 }
 0x405   : > { %8411 = vmatmul.mubr.msk.f32.gmra.mrb[28].mxu0 %vm1770_vm3, %v2096_v21  ;;  %v9164_v36 = vpack.c.bf16 %v9547_v35, %v9546_v60 }
 0x406   : > { %8413 = vmatprep.mubr.msk.f32.mxu0 %vm1770_vm3, %v2097_v26 }
 0x409   : > { %8414 = vmatmul.mubr.msk.f32.gmra.mrb[30].mxu0 %vm1770_vm3, %v2098_v44 }
 0x411   : > { %v10897_v17 = vpop.xlane.xlu1 %2015 }
 0x412   : > { %v2013_v59 = vpop.xlane.xlu0 %2012 }
 0x413   : > { %9788 = vrcp.f32 %v2013_v59 }
 0x414   : > { %9790 = vrcp.f32 %v1992_v39 }
 0x415   : > { %v1989_v48 = vpop.xlane.xlu1 %1988 }
 0x416   : > { %9792 = vrcp.f32 %v1989_v48 }
 0x419   : > { %v1998_v25 = vpop.xlane.xlu0 %1997 }
 0x41a   : > { %9794 = vrcp.f32 %v1998_v25 }
 0x41d   : > { %v9789_v19 = vpop.eup %9788  ;;  %v2019_v22 = vpop.xlane.xlu0 %2018 }
 0x41e   : > { %v2022_v58 = vpop.xlane.xlu1 %2021  ;;  %v2107_v4 = vmul.f32 %v9789_v19, %v10764_v42  ;;  %v9791_v49 = vpop.eup %9790 }
 0x41f   : > { %v2100_v38 = vmul.f32 %v9791_v49, %v10751_v54 }
 0x420   : > { %v9793_v23 = vpop.eup %9792  ;;  %8460 = vmatprep.mubr.msk.f32.mxu0 %vm1770_vm3, %v2107_v4 }
 0x421   : > { %v2004_v43 = vpop.xlane.xlu0 %2003  ;;  %v2099_v5 = vmul.f32 %v9793_v23, %v10772_v30 }
 0x422   : > { %v1995_v50 = vpop.xlane.xlu1 %1994 }
 0x423   : > { %9796 = vrcp.f32 %v1995_v50  ;;  %8432 = vmatprep.mubr.msk.f32.mxu1 %vm1770_vm3, %v2099_v5  ;;  %v657_v50 = vld [vmem:[%s12511_s7] sm:$0xff] }
 0x424   : > { %8433 = vmatmul.mubr.msk.f32.vlgmr.msra.gmra.mrb[24].mxu1 %vm1770_vm3, %v2100_v38  ;;  %9798 = vrcp.f32 %v2004_v43  ;;  %v9795_v30 = vpop.eup %9794 }
 0x425   : > { %9163 = vmatpush3.bf16.msra.mxu1 %v10575_v51  ;;  %v2025_v42 = vpop.xlane.xlu0 %2024  ;;  %v2102_v56 = vmul.f32 %v9795_v30, %v10778_v27 }
 0x426   : > { %v2028_v55 = vpop.xlane.xlu1 %2027  ;;  %9165 = vmatprep.subr.bf16.mxu1 %v9164_v36 }
 0x429   : > { %9167 = vmatpush3.bf16.msra.mxu1 %v9164_v36  ;;  %v2010_v47 = vpop.xlane.xlu0 %2009 }
 0x42a   : > { %v2001_v45 = vpop.xlane.xlu1 %2000 }
 0x42b   : > { %9800 = vrcp.f32 %v2001_v45 }
 0x42c   : > { %9802 = vrcp.f32 %v2010_v47 }
 0x42d   : > { %v9797_v40 = vpop.eup %9796  ;;  %v2007_v54 = vpop.xlane.xlu0 %2006 }
 0x42e   : > { %9804 = vrcp.f32 %v2007_v54  ;;  %v2101_v57 = vmul.f32 %v9797_v40, %v10793_v8  ;;  %v9799_v10 = vpop.eup %9798  ;;  %v2034_v13 = vpop.xlane.xlu1 %2033 }
 0x42f   : > { %v2104_v37 = vmul.f32 %v9799_v10, %v10796_v2 }
 0x430   : > { %8435 = vmatprep.mubr.msk.f32.mxu1 %vm1770_vm3, %v2101_v57 }
 0x431   : > { %8436 = vmatmul.mubr.msk.f32.gmra.mrb[26].mxu1 %vm1770_vm3, %v2102_v56  ;;  %v2031_v51 = vpop.xlane.xlu0 %2030 }
 0x435   : > { %v9801_v33 = vpop.eup %9800  ;;  %v2040_v0 = vpop.xlane.xlu0 %2039 }
 0x436   : > { %v2103_v12 = vmul.f32 %v9801_v33, %v10813_v32  ;;  %v9803_v24 = vpop.eup %9802  ;;  %v2046_v2 = vpop.xlane.xlu1 %2045 }
 0x437   : > { %v2106_v41 = vmul.f32 %v9803_v24, %v10817_v31 }
 0x438   : > { %v9805_v6 = vpop.eup %9804  ;;  %8438 = vmatprep.mubr.msk.f32.mxu1 %vm1770_vm3, %v2103_v12 }
 0x439   : > { %8439 = vmatmul.mubr.msk.f32.gmra.mrb[28].mxu1 %vm1770_vm3, %v2104_v37  ;;  %v2037_v8 = vpop.xlane.xlu0 %2036  ;;  %v2105_v27 = vmul.f32 %v9805_v6, %v10823_v29 }
 0x43a   : > { %9806 = vrcp.f32 %v2037_v8  ;;  %v2043_v21 = vpop.xlane.xlu1 %2042 }
 0x43b   : > { %8441 = vmatprep.mubr.msk.f32.mxu1 %vm1770_vm3, %v2105_v27  ;;  %9808 = vrcp.f32 %v10897_v17 }
 0x43c   : > { %9810 = vrcp.f32 %v2019_v22 }
 0x43d   : > { %8442 = vmatmul.mubr.msk.f32.gmra.mrb[30].mxu1 %vm1770_vm3, %v2106_v41  ;;  %v2049_v26 = vpop.xlane.xlu0 %2048  ;;  %9812 = vrcp.f32 %v2022_v58 }
 0x43e   : > { %v2052_v52 = vpop.xlane.xlu1 %2051  ;;  %9814 = vrcp.f32 %v2040_v0 }
 0x43f   : > { %9816 = vrcp.f32 %v2043_v21 }
 0x440   : > { %9818 = vrcp.f32 %v2025_v42 }
 0x441   : > { %9820 = vrcp.f32 %v2028_v55 }
 0x442   : > { %9822 = vrcp.f32 %v2046_v2 }
 0x443   : > { %9824 = vrcp.f32 %v2049_v26 }
 0x444   : > { %v9807_v1 = vpop.eup %9806  ;;  %9826 = vrcp.f32 %v2031_v51 }
 0x445   : > { %v2115_v32 = vmul.f32 %v9807_v1, %v10840_v7  ;;  %v9809_v58 = vpop.eup %9808  ;;  %9828 = vrcp.f32 %v2034_v13 }
 0x446   : > { %v9811_v5 = vpop.eup %9810  ;;  %9830 = vrcp.f32 %v2052_v52  ;;  %v2108_v55 = vmul.f32 %v9809_v58, %v10762_v62 }
 0x447   : > { %8488 = vmatprep.mubr.msk.f32.mxu1 %vm1770_vm3, %v2115_v32  ;;  %v9813_v38 = vpop.eup %9812  ;;  %v2109_v45 = vmul.f32 %v9811_v5, %v10783_v53 }
 0x448   : > { %v9815_v42 = vpop.eup %9814  ;;  %v2110_v56 = vmul.f32 %v9813_v38, %v10786_v63 }
 0x449   : > { %v9817_v47 = vpop.eup %9816  ;;  %v2116_v54 = vmul.f32 %v9815_v42, %v10836_v9 }
 0x44a   : > { %v9819_v30 = vpop.eup %9818  ;;  %v2117_v62 = vmul.f32 %v9817_v47, %v10846_v15 }
 0x44b   : > { %v9821_v40 = vpop.eup %9820  ;;  %v2111_v53 = vmul.f32 %v9819_v30, %v10802_v20 }
 0x44c   : > { %v9823_v57 = vpop.eup %9822  ;;  %v2112_v63 = vmul.f32 %v9821_v40, %v10806_v18 }
 0x44d   : > { %v9825_v51 = vpop.eup %9824  ;;  %v2118_v9 = vmul.f32 %v9823_v57, %v10838_v3 }
 0x44e   : > { %v9827_v10 = vpop.eup %9826  ;;  %v2119_v15 = vmul.f32 %v9825_v51, %v10848_v14 }
 0x44f   : > { %v9829_v33 = vpop.eup %9828  ;;  %v2113_v20 = vmul.f32 %v9827_v10, %v10832_v61  ;;  %v658_v61 = vld [vmem:[%s12511_s7 + $0x8] sm:$0xff] }
 0x450   : > { %v9831_v0 = vpop.eup %9830  ;;  %v2114_v3 = vmul.f32 %v9829_v33, %v10826_v16  ;;  %v659_v16 = vld [vmem:[%s12511_s7 + $0x10] sm:$0xff] }
 0x451   : > { %v2120_v24 = vmul.f32 %v9831_v0, %v10854_v11  ;;  %v660_v11 = vld [vmem:[%s12511_s7 + $0x18] sm:$0xff] }
 0x45a   : > { %v2058_v44 = vpop.xlane.xlu1 %2057 }
 0x45b   : > { %v2055_v39 = vpop.xlane.xlu0 %2054 }
 0x45c   : > { %9832 = vrcp.f32 %v2055_v39 }
 0x45d   : > { %9834 = vrcp.f32 %v2058_v44 }
 0x45e   : > { %v9555_v29 = vpop.permute.xlu1 %9554 }
 0x45f   : > { %v9557_v31 = vunpack.i.h.bf16 %v9555_v29  ;;  %v9556_v59 = vunpack.i.l.bf16 %v9555_v29  ;;  %v9550_v48 = vpop.permute.xlu0 %9549 }
 0x460   : > { %v9552_v25 = vunpack.i.h.bf16 %v9550_v48  ;;  %v9551_v7 = vunpack.i.l.bf16 %v9550_v48 }
 0x461   : > { %v9168_v19 = vpack.c.bf16 %v9557_v31, %v9556_v59 }
 0x462   : > { %v9560_v4 = vpop.permute.xlu1 %9559  ;;  %v9152_v49 = vpack.c.bf16 %v9552_v25, %v9551_v7 }
 0x463   : > { %v9562_v23 = vunpack.i.h.bf16 %v9560_v4  ;;  %v9561_v35 = vunpack.i.l.bf16 %v9560_v4  ;;  %9169 = vmatprep.subr.bf16.mxu1 %v9168_v19 }
 0x464   : > { %9153 = vmatprep.subr.bf16.mxu0 %v9152_v49  ;;  %9171 = vmatpush3.bf16.msra.mxu1 %v9168_v19 }
 0x465   : > { %9155 = vmatpush3.bf16.msra.mxu0 %v9152_v49  ;;  %v9156_v17 = vpack.c.bf16 %v9562_v23, %v9561_v35 }
 0x466   : > { %v9565_v22 = vpop.permute.xlu1 %9564  ;;  %v9833_v12 = vpop.eup %9832 }
 0x467   : > { %v9567_v60 = vunpack.i.h.bf16 %v9565_v22  ;;  %v9566_v43 = vunpack.i.l.bf16 %v9565_v22  ;;  %9157 = vmatprep.subr.bf16.mxu0 %v9156_v17  ;;  %v9835_v37 = vpop.eup %9834  ;;  %v2121_v18 = vmul.f32 %v9833_v12, %v10871_v28 }
 0x468   : > { %v2122_v14 = vmul.f32 %v9835_v37, %v10869_v46 }
 0x469   : > { %9159 = vmatpush3.bf16.msra.mxu0 %v9156_v17  ;;  %v9172_v36 = vpack.c.bf16 %v9567_v60, %v9566_v43 }
 0x46a   : > { %8500 = vmatprep.subr.mxu0 %v657_v50 }
 0x46b   : > { %9173 = vmatprep.subr.bf16.mxu1 %v9172_v36 }
 0x46c   : > { %8461 = vmatmul.mubr.msk.f32.vlgmr.msra.gmra.mrb[32].mxu0 %vm1770_vm3, %v2108_v55  ;;  %9175 = vmatpush3.bf16.msra.mxu1 %v9172_v36 }
 0x46d   : > { %8463 = vmatprep.mubr.msk.f32.mxu0 %vm1770_vm3, %v2109_v45  ;;  %8501 = vmatpush3.msra.mxu0 %v657_v50 }
 0x46e   : > { %8514 = vmatprep.subr.mxu1 %v658_v61  ;;  %8528 = vmatprep.subr.mxu0 %v659_v16 }
 0x46f   : > { %8489 = vmatmul.mubr.msk.f32.vlgmr.msra.gmra.mrb[32].mxu1 %vm1770_vm3, %v2116_v54 }
 0x470   : > { %8464 = vmatmul.mubr.msk.f32.gmra.mrb[34].mxu0 %vm1770_vm3, %v2110_v56  ;;  %8491 = vmatprep.mubr.msk.f32.mxu1 %vm1770_vm3, %v2117_v62 }
 0x471   : > { %8466 = vmatprep.mubr.msk.f32.mxu0 %vm1770_vm3, %v2111_v53  ;;  %8515 = vmatpush3.msra.mxu1 %v658_v61 }
 0x472   : > { %8542 = vmatprep.subr.mxu1 %v660_v11 }
 0x473   : > { %8492 = vmatmul.mubr.msk.f32.gmra.mrb[34].mxu1 %vm1770_vm3, %v2118_v9 }
 0x474   : > { %8467 = vmatmul.mubr.msk.f32.gmra.mrb[36].mxu0 %vm1770_vm3, %v2112_v63  ;;  %8494 = vmatprep.mubr.msk.f32.mxu1 %vm1770_vm3, %v2119_v15 }
 0x475   : > { %8469 = vmatprep.mubr.msk.f32.mxu0 %vm1770_vm3, %v2113_v20 }
 0x477   : > { %8495 = vmatmul.mubr.msk.f32.gmra.mrb[36].mxu1 %vm1770_vm3, %v2120_v24 }
 0x478   : > { %8470 = vmatmul.mubr.msk.f32.gmra.mrb[38].mxu0 %vm1770_vm3, %v2114_v3  ;;  %8497 = vmatprep.mubr.msk.f32.mxu1 %vm1770_vm3, %v2121_v18 }
 0x47b   : > { %8498 = vmatmul.mubr.msk.f32.gmra.mrb[38].mxu1 %vm1770_vm3, %v2122_v14 }
 0x49b   : > { %v8406_v28 = vpop.f32.mrb[24].mxu0 }
 0x49c   : > { %v2213_v6 = vpop.f32.mrb[25].mxu0 }
 0x49d   : > { %8502 = vmatprep.mubr.msk.f32.mxu0 %vm1141_vm1, %v2213_v6 }
 0x49e   : > { %8503 = vmatmul.mubr.msk.f32.vlgmr.msra.gmra.mrb[40].mxu0 %vm1141_vm1, %v8406_v28 }
 0x49f   : > { %8529 = vmatpush3.msra.mxu0 %v659_v16 }
 0x4d4   : > { %v8409_v46 = vpop.f32.mrb[26].mxu0 }
 0x4d5   : > { %v2223_v8 = vpop.f32.mrb[27].mxu0 }
 0x4d6   : > { %8505 = vmatprep.mubr.msk.f32.mxu0 %vm1141_vm1, %v2223_v8 }
 0x4d7   : > { %8506 = vmatmul.mubr.msk.f32.gmra.mrb[42].mxu0 %vm1141_vm1, %v8409_v46 }
 0x4d8   : > { %v8412_v27 = vpop.f32.mrb[28].mxu0 }
 0x4d9   : > { %v2233_v41 = vpop.f32.mrb[29].mxu0 }
 0x4da   : > { %8508 = vmatprep.mubr.msk.f32.mxu0 %vm1141_vm1, %v2233_v41 }
 0x4db   : > { %8509 = vmatmul.mubr.msk.f32.gmra.mrb[44].mxu0 %vm1141_vm1, %v8412_v27 }
 0x4dc   : > { %v8415_v1 = vpop.f32.mrb[30].mxu0 }
 0x4dd   : > { %v2243_v32 = vpop.f32.mrb[31].mxu0 }
 0x4de   : > { %8511 = vmatprep.mubr.msk.f32.mxu0 %vm1141_vm1, %v2243_v32 }
 0x4df   : > { %8512 = vmatmul.mubr.msk.f32.gmra.mrb[46].mxu0 %vm1141_vm1, %v8415_v1 }
 0x4f7   : > { %v8434_v13 = vpop.f32.mrb[24].mxu1 }
 0x4f8   : > { %v2342_v2 = vpop.f32.mrb[25].mxu1 }
 0x4f9   : > { %8516 = vmatprep.mubr.msk.f32.mxu1 %vm1141_vm1, %v2342_v2 }
 0x4fa   : > { %8517 = vmatmul.mubr.msk.f32.vlgmr.msra.gmra.mrb[40].mxu1 %vm1141_vm1, %v8434_v13 }
 0x4fb   : > { %8543 = vmatpush3.msra.mxu1 %v660_v11 }
 0x504   : > { %v8437_v21 = vpop.f32.mrb[26].mxu1 }
 0x505   : > { %v2352_v52 = vpop.f32.mrb[27].mxu1 }
 0x506   : > { %8519 = vmatprep.mubr.msk.f32.mxu1 %vm1141_vm1, %v2352_v52 }
 0x507   : > { %8520 = vmatmul.mubr.msk.f32.gmra.mrb[42].mxu1 %vm1141_vm1, %v8437_v21 }
 0x50c   : > { %v8440_v26 = vpop.f32.mrb[28].mxu1 }
 0x50d   : > { %v2362_v44 = vpop.f32.mrb[29].mxu1 }
 0x50e   : > { %8522 = vmatprep.mubr.msk.f32.mxu1 %vm1141_vm1, %v2362_v44 }
 0x50f   : > { %8523 = vmatmul.mubr.msk.f32.gmra.mrb[44].mxu1 %vm1141_vm1, %v8440_v26 }
 0x510   : > { %v8443_v39 = vpop.f32.mrb[30].mxu1 }
 0x511   : > { %v2372_v29 = vpop.f32.mrb[31].mxu1 }
 0x512   : > { %8525 = vmatprep.mubr.msk.f32.mxu1 %vm1141_vm1, %v2372_v29 }
 0x513   : > { %8526 = vmatmul.mubr.msk.f32.gmra.mrb[46].mxu1 %vm1141_vm1, %v8443_v39 }
 0x53f   : > { %v8462_v31 = vpop.f32.mrb[32].mxu0 }
 0x540   : > { %v2471_v59 = vpop.f32.mrb[33].mxu0 }
 0x541   : > { %8530 = vmatprep.mubr.msk.f32.mxu0 %vm1141_vm1, %v2471_v59 }
 0x542   : > { %v8490_v48 = vpop.f32.mrb[32].mxu1  ;;  %8531 = vmatmul.mubr.msk.f32.vlgmr.msra.gmra.mrb[48].mxu0 %vm1141_vm1, %v8462_v31  ;;  %v11014_v31 = vld [vmem:[%s12512_s8] ss:$0 sm:$0xff] }
 0x543   : > { %v8465_v25 = vpop.f32.mrb[34].mxu0  ;;  %v2600_v7 = vpop.f32.mrb[33].mxu1 }
 0x544   : > { %v2481_v19 = vpop.f32.mrb[35].mxu0  ;;  %8544 = vmatprep.mubr.msk.f32.mxu1 %vm1141_vm1, %v2600_v7 }
 0x545   : > { %8533 = vmatprep.mubr.msk.f32.mxu0 %vm1141_vm1, %v2481_v19  ;;  %8545 = vmatmul.mubr.msk.f32.vlgmr.msra.gmra.mrb[48].mxu1 %vm1141_vm1, %v8490_v48 }
 0x546   : > { %v8493_v4 = vpop.f32.mrb[34].mxu1  ;;  %8534 = vmatmul.mubr.msk.f32.gmra.mrb[50].mxu0 %vm1141_vm1, %v8465_v25 }
 0x547   : > { %v8468_v49 = vpop.f32.mrb[36].mxu0  ;;  %v2610_v23 = vpop.f32.mrb[35].mxu1 }
 0x548   : > { %v2491_v35 = vpop.f32.mrb[37].mxu0  ;;  %8547 = vmatprep.mubr.msk.f32.mxu1 %vm1141_vm1, %v2610_v23 }
 0x549   : > { %8536 = vmatprep.mubr.msk.f32.mxu0 %vm1141_vm1, %v2491_v35  ;;  %8548 = vmatmul.mubr.msk.f32.gmra.mrb[50].mxu1 %vm1141_vm1, %v8493_v4 }
 0x54a   : > { %v8496_v17 = vpop.f32.mrb[36].mxu1  ;;  %8537 = vmatmul.mubr.msk.f32.gmra.mrb[52].mxu0 %vm1141_vm1, %v8468_v49 }
 0x54b   : > { %v8471_v22 = vpop.f32.mrb[38].mxu0  ;;  %v2620_v58 = vpop.f32.mrb[37].mxu1 }
 0x54c   : > { %v2501_v60 = vpop.f32.mrb[39].mxu0  ;;  %8550 = vmatprep.mubr.msk.f32.mxu1 %vm1141_vm1, %v2620_v58 }
 0x54d   : > { %8539 = vmatprep.mubr.msk.f32.mxu0 %vm1141_vm1, %v2501_v60  ;;  %8551 = vmatmul.mubr.msk.f32.gmra.mrb[52].mxu1 %vm1141_vm1, %v8496_v17 }
 0x54e   : > { %v8499_v43 = vpop.f32.mrb[38].mxu1  ;;  %8540 = vmatmul.mubr.msk.f32.gmra.mrb[54].mxu0 %vm1141_vm1, %v8471_v22 }
 0x54f   : > { %v2630_v50 = vpop.f32.mrb[39].mxu1 }
 0x550   : > { %8553 = vmatprep.mubr.msk.f32.mxu1 %vm1141_vm1, %v2630_v50 }
 0x551   : > { %8554 = vmatmul.mubr.msk.f32.gmra.mrb[54].mxu1 %vm1141_vm1, %v8499_v43 }
 0x571   : > { %v8504_v5 = vpop.f32.mrb[40].mxu0 }
 0x572   : > { %v2729_v38 = vpop.f32.mrb[41].mxu0  ;;  %v3162_v54 = vsel %vm668_vm0, %v8504_v5, 0.0 }
 0x573   : > { %v3155_v62 = vsel %vm668_vm0, %v2729_v38, 0.0 }
 0x5aa   : > { %v8507_v36 = vpop.f32.mrb[42].mxu0 }
 0x5ab   : > { %v2739_v42 = vpop.f32.mrb[43].mxu0  ;;  %v3176_v9 = vsel %vm668_vm0, %v8507_v36, 0.0 }
 0x5ac   : > { %v3169_v15 = vsel %vm668_vm0, %v2739_v42, 0.0 }
 0x5ae   : > { %v8510_v55 = vpop.f32.mrb[44].mxu0 }
 0x5af   : > { %v2749_v47 = vpop.f32.mrb[45].mxu0  ;;  %v3190_v3 = vsel %vm668_vm0, %v8510_v55, 0.0 }
 0x5b0   : > { %v3183_v14 = vsel %vm668_vm0, %v2749_v47, 0.0 }
 0x5b2   : > { %v8513_v45 = vpop.f32.mrb[46].mxu0 }
 0x5b3   : > { %v2759_v30 = vpop.f32.mrb[47].mxu0  ;;  %v3204_v46 = vsel %vm668_vm0, %v8513_v45, 0.0  ;;  %v10044_v45 = vld [vmem:[%s10198_s20 + $0x8] sm:$0xff] }
 0x5b4   : > { %v3197_v41 = vsel %vm668_vm0, %v2759_v30, 0.0 }
 0x5cd   : > { %v8518_v40 = vpop.f32.mrb[40].mxu1 }
 0x5ce   : > { %v3163_v57 = vsel %vm668_vm0, %v8518_v40, 0.0  ;;  %v2858_v56 = vpop.f32.mrb[41].mxu1 }
 0x5cf   : > { %v3164_v51 = vadd.f32 %v3163_v57, %v3162_v54  ;;  %v3156_v53 = vsel %vm668_vm0, %v2858_v56, 0.0  ;;  %v10045_v56 = vld [vmem:[%s10198_s20] sm:$0xff] }
 0x5d0   : > { %v3157_v10 = vadd.f32 %v3156_v53, %v3155_v62 }
 0x5da   : > { %v8521_v33 = vpop.f32.mrb[42].mxu1 }
 0x5db   : > { %v3177_v0 = vsel %vm668_vm0, %v8521_v33, 0.0  ;;  %v2868_v63 = vpop.f32.mrb[43].mxu1 }
 0x5dc   : > { %v3178_v12 = vadd.f32 %v3177_v0, %v3176_v9  ;;  %v3170_v20 = vsel %vm668_vm0, %v2868_v63, 0.0 }
 0x5dd   : > { %v3171_v24 = vadd.f32 %v3170_v20, %v3169_v15 }
 0x5e2   : > { %v8524_v37 = vpop.f32.mrb[44].mxu1 }
 0x5e3   : > { %v3191_v18 = vsel %vm668_vm0, %v8524_v37, 0.0  ;;  %v2878_v61 = vpop.f32.mrb[45].mxu1 }
 0x5e4   : > { %v3192_v16 = vadd.f32 %v3191_v18, %v3190_v3  ;;  %v3184_v11 = vsel %vm668_vm0, %v2878_v61, 0.0  ;;  %v10046_v18 = vld [vmem:[%s10198_s20 + $0x18] sm:$0xff] }
 0x5e5   : > { %v3185_v28 = vadd.f32 %v3184_v11, %v3183_v14 }
 0x5e6   : > { %v8527_v6 = vpop.f32.mrb[46].mxu1 }
 0x5e7   : > { %v3205_v8 = vsel %vm668_vm0, %v8527_v6, 0.0  ;;  %v2888_v27 = vpop.f32.mrb[47].mxu1 }
 0x5e8   : > { %v3206_v1 = vadd.f32 %v3205_v8, %v3204_v46  ;;  %v3198_v32 = vsel %vm668_vm0, %v2888_v27, 0.0 }
 0x5e9   : > { %v3199_v13 = vadd.f32 %v3198_v32, %v3197_v41 }
 0x615   : > { %v8532_v2 = vpop.f32.mrb[48].mxu0 }
 0x616   : > { %v3165_v21 = vsel %vm668_vm0, %v8532_v2, 0.0  ;;  %v2987_v52 = vpop.f32.mrb[49].mxu0 }
 0x617   : > { %v3166_v26 = vadd.f32 %v3165_v21, %v3164_v51  ;;  %v3158_v44 = vsel %vm668_vm0, %v2987_v52, 0.0 }
 0x618   : > { %v3159_v39 = vadd.f32 %v3158_v44, %v3157_v10  ;;  %v8546_v29 = vpop.f32.mrb[48].mxu1  ;;  %v10048_v44 = vld [vmem:[%s10198_s20 + $0x28] sm:$0xff] }
 0x619   : > { %v3167_v59 = vsel %vm668_vm0, %v8546_v29, 0.0  ;;  %v8535_v48 = vpop.f32.mrb[50].mxu0  ;;  %v3116_v25 = vpop.f32.mrb[49].mxu1  ;;  %v10049_v29 = vld [vmem:[%s10198_s20 + $0x20] sm:$0xff] }
 0x61a   : > { %v3168_v7 = vadd.f32 %v3167_v59, %v3166_v26  ;;  %v3179_v19 = vsel %vm668_vm0, %v8535_v48, 0.0  ;;  %v3160_v4 = vsel %vm668_vm0, %v3116_v25, 0.0  ;;  %v2997_v49 = vpop.f32.mrb[51].mxu0 }
 0x61b   : > { %v3180_v23 = vadd.f32 %v3179_v19, %v3178_v12  ;;  %v3161_v35 = vadd.f32 %v3160_v4, %v3159_v39  ;;  %v3172_v17 = vsel %vm668_vm0, %v2997_v49, 0.0  ;;  %v10050_v4 = vld [vmem:[%s10198_s20 + $0x38] sm:$0xff] }
 0x61c   : > { %v3218_v22 = vadd.f32 %v11014_v31, %v3168_v7  ;;  %v3173_v58 = vadd.f32 %v3172_v17, %v3171_v24  ;;  %v8549_v60 = vpop.f32.mrb[50].mxu1 }
 0x61d   : > { %v3217_v43 = vadd.f32 %v11014_v31, %v3161_v35  ;;  %v3181_v50 = vsel %vm668_vm0, %v8549_v60, 0.0  ;;  %v8538_v5 = vpop.f32.mrb[52].mxu0  ;;  %v3126_v38 = vpop.f32.mrb[51].mxu1 }
 0x61e   : > { %v3182_v36 = vadd.f32 %v3181_v50, %v3180_v23  ;;  %v3193_v42 = vsel %vm668_vm0, %v8538_v5, 0.0  ;;  %v3174_v55 = vsel %vm668_vm0, %v3126_v38, 0.0  ;;  %v3007_v47 = vpop.f32.mrb[53].mxu0  ;;  %v11026_v30 = vadd.f32 %v10044_v45, %v3218_v22  ;;  %v10051_v23 = vld [vmem:[%s10198_s20 + $0x30] sm:$0xff] }
 0x61f   : > { %v3194_v40 = vadd.f32 %v3193_v42, %v3192_v16  ;;  %v3175_v54 = vadd.f32 %v3174_v55, %v3173_v58  ;;  %v3186_v57 = vsel %vm668_vm0, %v3007_v47, 0.0  ;;  %v3225_v62 = vadd.f32 %v10045_v56, %v3217_v43 }
 0x620   : > { %v3220_v51 = vadd.f32 %v11014_v31, %v3182_v36  ;;  %v3187_v53 = vadd.f32 %v3186_v57, %v3185_v28  ;;  %v8552_v10 = vpop.f32.mrb[52].mxu1  ;;  %v3238_v33 = vsel %vm668_vm0, %v11026_v30, 0.0  ;;  %v10047_v28 = vld [vmem:[%s10198_s20 + $0x10] sm:$0xff]  ;;  %s12547_s20 = smov 96  }
 0x621   : > { %v3219_v9 = vadd.f32 %v11014_v31, %v3175_v54  ;;  %v3195_v0 = vsel %vm668_vm0, %v8552_v10, 0.0  ;;  %v8541_v63 = vpop.f32.mrb[54].mxu0  ;;  %3239 = vadd.xlane.f32.xlu0 %v3238_v33  ;;  %v3136_v15 = vpop.f32.mrb[53].mxu1  ;;  %v3235_v12 = vsel %vm668_vm0, %v3225_v62, 0.0 }
 0x622   : > { %v3196_v20 = vadd.f32 %v3195_v0, %v3194_v40  ;;  %v3207_v24 = vsel %vm668_vm0, %v8541_v63, 0.0  ;;  %v3188_v37 = vsel %vm668_vm0, %v3136_v15, 0.0  ;;  %v3017_v3 = vpop.f32.mrb[55].mxu0  ;;  %3236 = vadd.xlane.f32.xlu1 %v3235_v12  ;;  %v3228_v61 = vadd.f32 %v10046_v18, %v3220_v51 }
 0x623   : > { %v3208_v14 = vadd.f32 %v3207_v24, %v3206_v1  ;;  %v3189_v16 = vadd.f32 %v3188_v37, %v3187_v53  ;;  %v3200_v11 = vsel %vm668_vm0, %v3017_v3, 0.0  ;;  %v3227_v6 = vadd.f32 %v10047_v28, %v3219_v9 }
 0x624   : > { %v3222_v46 = vadd.f32 %v11014_v31, %v3196_v20  ;;  %v3201_v8 = vadd.f32 %v3200_v11, %v3199_v13  ;;  %v8555_v27 = vpop.f32.mrb[54].mxu1  ;;  %v3244_v41 = vsel %vm668_vm0, %v3228_v61, 0.0 }
 0x625   : > { %v3221_v32 = vadd.f32 %v11014_v31, %v3189_v16  ;;  %v3209_v2 = vsel %vm668_vm0, %v8555_v27, 0.0  ;;  %3245 = vadd.xlane.f32.xlu0 %v3244_v41  ;;  %v3146_v21 = vpop.f32.mrb[55].mxu1  ;;  %v3241_v1 = vsel %vm668_vm0, %v3227_v6, 0.0  ;;  %v3368_v27 = vld [vmem:[%s12513_s9] sm:$0xff]  ;;  %v3369_v41 = vld [vmem:[%s12513_s9 + $0x8] sm:$0xff] }
 0x626   : > { %v3210_v52 = vadd.f32 %v3209_v2, %v3208_v14  ;;  %v3202_v26 = vsel %vm668_vm0, %v3146_v21, 0.0  ;;  %3242 = vadd.xlane.f32.xlu1 %v3241_v1  ;;  %v3230_v39 = vadd.f32 %v10048_v44, %v3222_v46  ;;  %v3370_v2 = vld [vmem:[%s12513_s9 + $0x10] sm:$0xff]  ;;  %v3371_v21 = vld [vmem:[%s12513_s9 + $0x18] sm:$0xff] }
 0x627   : > { %v3203_v13 = vadd.f32 %v3202_v26, %v3201_v8  ;;  %v3229_v59 = vadd.f32 %v10049_v29, %v3221_v32  ;;  %v9176_v32 = vpack.c.bf16 %v3369_v41, %v3368_v27  ;;  %v9180_v1 = vpack.c.bf16 %v3371_v21, %v3370_v2  ;;  %v3517_v26 = vld [vmem:[%s12515_s11 + $0x8] sm:$0xff]  ;;  %v3518_v44 = vld [vmem:[%s12515_s11 + $0x10] sm:$0xff] }
 0x628   : > { %v3224_v48 = vadd.f32 %v11014_v31, %v3210_v52  ;;  %v3250_v25 = vsel %vm668_vm0, %v3230_v39, 0.0  ;;  %v3516_v52 = vld [vmem:[%s12515_s11] sm:$0xff] }
 0x629   : > { %v3223_v7 = vadd.f32 %v11014_v31, %v3203_v13  ;;  %3251 = vadd.xlane.f32.xlu0 %v3250_v25  ;;  %v3247_v19 = vsel %vm668_vm0, %v3229_v59, 0.0  ;;  %9177 = vmatprep.subr.bf16.mxu0 %v9176_v32  ;;  %v3519_v13 = vld [vmem:[%s12515_s11 + $0x18] sm:$0xff] }
 0x62a   : > { %3248 = vadd.xlane.f32.xlu1 %v3247_v19  ;;  %v3232_v49 = vadd.f32 %v10050_v4, %v3224_v48  ;;  %9179 = vmatpush3.bf16.msra.mxu0 %v9176_v32  ;;  %v9188_v29 = vpack.c.bf16 %v3519_v13, %v3518_v44  ;;  %v3521_v48 = vld [vmem:[%s12515_s11 + $0x28] sm:$0xff] }
 0x62b   : > { %v3231_v35 = vadd.f32 %v10051_v23, %v3223_v7  ;;  %9181 = vmatprep.subr.bf16.mxu0 %v9180_v1 }
 0x62c   : > { %v3256_v17 = vsel %vm668_vm0, %v3232_v49, 0.0 }
 0x62d   : > { %3257 = vadd.xlane.f32.xlu0 %v3256_v17  ;;  %v3253_v22 = vsel %vm668_vm0, %v3231_v35, 0.0 }
 0x62e   : > { %3254 = vadd.xlane.f32.xlu1 %v3253_v22  ;;  %9183 = vmatpush3.bf16.msra.mxu0 %v9180_v1 }
 0x6ae   : > { %v3240_v58 = vpop.xlane.xlu0 %3239 }
 0x6af   : > { %v3261_v60 = vmul.f32 0.03125, %v3240_v58  ;;  %v3237_v43 = vpop.xlane.xlu1 %3236 }
 0x6b0   : > { %v3260_v50 = vmul.f32 0.03125, %v3237_v43 }
 0x6b1   : > { %v11058_v31 = vsub.f32 %v11026_v30, %v3261_v60 }
 0x6b2   : > { %v11060_v5 = vsub.f32 %v3225_v62, %v3260_v50  ;;  %v3246_v38 = vpop.xlane.xlu0 %3245 }
 0x6b3   : > { %v3263_v36 = vmul.f32 0.03125, %v3246_v38  ;;  %v3243_v42 = vpop.xlane.xlu1 %3242  ;;  %v3277_v55 = vmul.f32 %v11058_v31, %v11058_v31 }
 0x6b4   : > { %v3262_v47 = vmul.f32 0.03125, %v3243_v42  ;;  %v3276_v45 = vmul.f32 %v11060_v5, %v11060_v5 }
 0x6b5   : > { %v11066_v40 = vsub.f32 %v3228_v61, %v3263_v36  ;;  %v3287_v54 = vsel %vm668_vm0, %v3277_v55, 0.0 }
 0x6b6   : > { %v11069_v57 = vsub.f32 %v3227_v6, %v3262_v47  ;;  %v3252_v30 = vpop.xlane.xlu0 %3251  ;;  %3288 = vadd.xlane.f32.xlu0 %v3287_v54  ;;  %v3284_v56 = vsel %vm668_vm0, %v3276_v45, 0.0 }
 0x6b7   : > { %v3265_v62 = vmul.f32 0.03125, %v3252_v30  ;;  %v3249_v51 = vpop.xlane.xlu1 %3248  ;;  %3285 = vadd.xlane.f32.xlu1 %v3284_v56  ;;  %v3279_v53 = vmul.f32 %v11066_v40, %v11066_v40 }
 0x6b8   : > { %v3264_v10 = vmul.f32 0.03125, %v3249_v51  ;;  %v3278_v33 = vmul.f32 %v11069_v57, %v11069_v57 }
 0x6b9   : > { %v11076_v9 = vsub.f32 %v3230_v39, %v3265_v62  ;;  %v3293_v0 = vsel %vm668_vm0, %v3279_v53, 0.0  ;;  %v9184_v39 = vpack.c.bf16 %v3517_v26, %v3516_v52  ;;  %v7545_v53 = vld [vmem:[%s12517_s13] ss:$0 sm:$0xff] }
 0x6ba   : > { %v11079_v63 = vsub.f32 %v3229_v59, %v3264_v10  ;;  %3294 = vadd.xlane.f32.xlu0 %v3293_v0  ;;  %v3258_v15 = vpop.xlane.xlu0 %3257  ;;  %v3290_v12 = vsel %vm668_vm0, %v3278_v33, 0.0  ;;  %v3520_v59 = vld [vmem:[%s12515_s11 + $0x20] sm:$0xff] }
 0x6bb   : > { %v3267_v20 = vmul.f32 0.03125, %v3258_v15  ;;  %3291 = vadd.xlane.f32.xlu1 %v3290_v12  ;;  %v3255_v24 = vpop.xlane.xlu1 %3254  ;;  %v3281_v37 = vmul.f32 %v11076_v9, %v11076_v9  ;;  %9185 = vmatprep.subr.bf16.mxu1 %v9184_v39  ;;  %v9192_v25 = vpack.c.bf16 %v3521_v48, %v3520_v59  ;;  %v7547_v48 = vld [vmem:[%s12514_s10] ss:$0 sm:$0xff] }
 0x6bc   : > { %v3266_v3 = vmul.f32 0.03125, %v3255_v24  ;;  %v3280_v18 = vmul.f32 %v11079_v63, %v11079_v63  ;;  %9187 = vmatpush3.bf16.msra.mxu1 %v9184_v39  ;;  %v7546_v24 = vld [vmem:[%s12518_s14] ss:$0 sm:$0xff] }
 0x6bd   : > { %v11086_v61 = vsub.f32 %v3232_v49, %v3267_v20  ;;  %v3299_v14 = vsel %vm668_vm0, %v3281_v37, 0.0  ;;  %9189 = vmatprep.subr.bf16.mxu1 %v9188_v29 }
 0x6be   : > { %v11089_v16 = vsub.f32 %v3231_v35, %v3266_v3  ;;  %3300 = vadd.xlane.f32.xlu0 %v3299_v14  ;;  %v3296_v11 = vsel %vm668_vm0, %v3280_v18, 0.0 }
 0x6bf   : > { %3297 = vadd.xlane.f32.xlu1 %v3296_v11  ;;  %v3283_v28 = vmul.f32 %v11086_v61, %v11086_v61 }
 0x6c0   : > { %v3282_v6 = vmul.f32 %v11089_v16, %v11089_v16  ;;  %9191 = vmatpush3.bf16.msra.mxu1 %v9188_v29 }
 0x6c1   : > { %v3305_v46 = vsel %vm668_vm0, %v3283_v28, 0.0  ;;  %9193 = vmatprep.subr.bf16.mxu1 %v9192_v25 }
 0x6c2   : > { %3306 = vadd.xlane.f32.xlu0 %v3305_v46  ;;  %v3302_v8 = vsel %vm668_vm0, %v3282_v6, 0.0 }
 0x6c3   : > { %3303 = vadd.xlane.f32.xlu1 %v3302_v8 }
 0x6c4   : > { %9195 = vmatpush3.bf16.msra.mxu1 %v9192_v25 }
 0x743   : > { %v3289_v7 = vpop.xlane.xlu0 %3288 }
 0x744   : > { %v3309_v19 = vmul.f32 0.03125, %v3289_v7  ;;  %v3286_v4 = vpop.xlane.xlu1 %3285 }
 0x745   : > { %v3308_v49 = vmul.f32 0.03125, %v3286_v4 }
 0x746   : > { %v3317_v23 = vadd.f32 1e-05, %v3309_v19 }
 0x747   : > { %v3316_v35 = vadd.f32 1e-05, %v3308_v49  ;;  %v3295_v17 = vpop.xlane.xlu0 %3294 }
 0x748   : > { %9836 = vrsqrt.f32 %v3317_v23  ;;  %v3311_v22 = vmul.f32 0.03125, %v3295_v17  ;;  %v3292_v58 = vpop.xlane.xlu1 %3291 }
 0x749   : > { %9838 = vrsqrt.f32 %v3316_v35  ;;  %v3310_v60 = vmul.f32 0.03125, %v3292_v58 }
 0x74a   : > { %v3319_v43 = vadd.f32 1e-05, %v3311_v22 }
 0x74b   : > { %v3318_v50 = vadd.f32 1e-05, %v3310_v60  ;;  %v3301_v38 = vpop.xlane.xlu0 %3300 }
 0x74c   : > { %9840 = vrsqrt.f32 %v3319_v43  ;;  %v3313_v36 = vmul.f32 0.03125, %v3301_v38  ;;  %v3298_v42 = vpop.xlane.xlu1 %3297 }
 0x74d   : > { %9842 = vrsqrt.f32 %v3318_v50  ;;  %v3312_v55 = vmul.f32 0.03125, %v3298_v42 }
 0x74e   : > { %v3321_v47 = vadd.f32 1e-05, %v3313_v36 }
 0x74f   : > { %v3320_v45 = vadd.f32 1e-05, %v3312_v55  ;;  %v3307_v54 = vpop.xlane.xlu0 %3306 }
 0x750   : > { %9844 = vrsqrt.f32 %v3321_v47  ;;  %v3315_v30 = vmul.f32 0.03125, %v3307_v54  ;;  %v3304_v56 = vpop.xlane.xlu1 %3303 }
 0x751   : > { %9846 = vrsqrt.f32 %v3320_v45  ;;  %v3314_v62 = vmul.f32 0.03125, %v3304_v56 }
 0x752   : > { %v9837_v51 = vpop.eup %9836  ;;  %v3323_v10 = vadd.f32 1e-05, %v3315_v30 }
 0x753   : > { %v9839_v33 = vpop.eup %9838  ;;  %v3333_v0 = vmul.f32 %v9837_v51, %v11058_v31  ;;  %v3322_v15 = vadd.f32 1e-05, %v3314_v62 }
 0x754   : > { %9848 = vrsqrt.f32 %v3323_v10  ;;  %v3332_v12 = vmul.f32 %v9839_v33, %v11060_v5 }
 0x755   : > { %v3347_v20 = vmul.f32 %v7545_v53, %v3333_v0  ;;  %9850 = vrsqrt.f32 %v3322_v15 }
 0x756   : > { %v9841_v37 = vpop.eup %9840  ;;  %v3346_v3 = vmul.f32 %v7545_v53, %v3332_v12 }
 0x757   : > { %v9843_v18 = vpop.eup %9842  ;;  %v3335_v14 = vmul.f32 %v9841_v37, %v11066_v40  ;;  %v11140_v31 = vadd.f32 %v7546_v24, %v3347_v20 }
 0x758   : > { %v11137_v11 = vadd.f32 %v7546_v24, %v3346_v3  ;;  %v3334_v28 = vmul.f32 %v9843_v18, %v11069_v57 }
 0x759   : > { %v3349_v6 = vmul.f32 %v7545_v53, %v3335_v14 }
 0x75a   : > { %v9845_v46 = vpop.eup %9844  ;;  %8564 = vmatprep.mubr.msk.f32.mxu0 %vm668_vm0, %v11137_v11  ;;  %v3348_v5 = vmul.f32 %v7545_v53, %v3334_v28 }
 0x75b   : > { %v9847_v8 = vpop.eup %9846  ;;  %8565 = vmatmul.mubr.msk.f32.vlgmr.msra.gmra.mrb[56].mxu0 %vm668_vm0, %v11140_v31  ;;  %v3337_v27 = vmul.f32 %v9845_v46, %v11076_v9  ;;  %v11150_v32 = vadd.f32 %v7546_v24, %v3349_v6 }
 0x75c   : > { %v11147_v41 = vadd.f32 %v7546_v24, %v3348_v5  ;;  %v3336_v40 = vmul.f32 %v9847_v8, %v11079_v63 }
 0x75d   : > { %v3351_v57 = vmul.f32 %v7545_v53, %v3337_v27 }
 0x75e   : > { %v9849_v2 = vpop.eup %9848  ;;  %8567 = vmatprep.mubr.msk.f32.mxu0 %vm668_vm0, %v11147_v41  ;;  %v3350_v21 = vmul.f32 %v7545_v53, %v3336_v40 }
 0x75f   : > { %v9851_v1 = vpop.eup %9850  ;;  %8568 = vmatmul.mubr.msk.f32.gmra.mrb[58].mxu0 %vm668_vm0, %v11150_v32  ;;  %v3339_v52 = vmul.f32 %v9849_v2, %v11086_v61  ;;  %v3365_v44 = vadd.f32 %v7546_v24, %v3351_v57  ;;  %v3522_v61 = vld [vmem:[%s12515_s11 + $0x30] sm:$0xff] }
 0x760   : > { %v11157_v26 = vadd.f32 %v7546_v24, %v3350_v21  ;;  %v3338_v9 = vmul.f32 %v9851_v1, %v11089_v16  ;;  %v3523_v16 = vld [vmem:[%s12515_s11 + $0x38] sm:$0xff] }
 0x761   : > { %v3353_v63 = vmul.f32 %v7545_v53, %v3339_v52  ;;  %v9196_v59 = vpack.c.bf16 %v3523_v16, %v3522_v61 }
 0x762   : > { %8570 = vmatprep.mubr.msk.f32.mxu0 %vm668_vm0, %v11157_v26  ;;  %v3352_v39 = vmul.f32 %v7545_v53, %v3338_v9  ;;  %v7556_v53 = vld [vmem:[%s12516_s12] ss:$0 sm:$0xff] }
 0x763   : > { %8571 = vmatmul.mubr.msk.f32.gmra.mrb[60].mxu0 %vm668_vm0, %v3365_v44  ;;  %v11165_v29 = vadd.f32 %v7546_v24, %v3353_v63  ;;  %9197 = vmatprep.subr.bf16.mxu1 %v9196_v59 }
 0x764   : > { %v11163_v13 = vadd.f32 %v7546_v24, %v3352_v39  ;;  %9199 = vmatpush3.bf16.msra.mxu1 %v9196_v59 }
 0x766   : > { %8573 = vmatprep.mubr.msk.f32.mxu0 %vm668_vm0, %v11163_v13 }
 0x767   : > { %8574 = vmatmul.mubr.msk.f32.gmra.mrb[62].mxu0 %vm668_vm0, %v11165_v29 }
 0x82e   : > { %v8566_v25 = vpop.f32.mrb[56].mxu0 }
 0x82f   : > { %v3475_v7 = vadd.f32 %v8566_v25, %v7547_v48  ;;  %v3469_v19 = vpop.f32.mrb[57].mxu0 }
 0x830   : > { %v3470_v4 = vadd.f32 %v7547_v48, %v3469_v19 }
 0x831   : > { %v3509_v35 = vmax.f32 %v3475_v7, 0.0 }
 0x832   : > { %v3508_v49 = vmax.f32 %v3470_v4, 0.0  ;;  %v8569_v23 = vpop.f32.mrb[58].mxu0 }
 0x833   : > { %v3485_v17 = vadd.f32 %v8569_v23, %v7547_v48  ;;  %v3479_v22 = vpop.f32.mrb[59].mxu0 }
 0x834   : > { %v3480_v58 = vadd.f32 %v7547_v48, %v3479_v22  ;;  %8592 = vmatprep.mubr.msk.f32.mxu1 %vm1770_vm3, %v3508_v49 }
 0x835   : > { %8593 = vmatmul.mubr.msk.f32.vlgmr.msra.gmra.mrb[56].mxu1 %vm1770_vm3, %v3509_v35  ;;  %v3511_v50 = vmax.f32 %v3485_v17, 0.0 }
 0x836   : > { %v3510_v60 = vmax.f32 %v3480_v58, 0.0  ;;  %v8572_v43 = vpop.f32.mrb[60].mxu0 }
 0x837   : > { %v3495_v38 = vadd.f32 %v8572_v43, %v7547_v48  ;;  %v3489_v36 = vpop.f32.mrb[61].mxu0 }
 0x838   : > { %v3490_v42 = vadd.f32 %v7547_v48, %v3489_v36  ;;  %8595 = vmatprep.mubr.msk.f32.mxu1 %vm1770_vm3, %v3510_v60 }
 0x839   : > { %8596 = vmatmul.mubr.msk.f32.gmra.mrb[58].mxu1 %vm1770_vm3, %v3511_v50  ;;  %v3513_v45 = vmax.f32 %v3495_v38, 0.0 }
 0x83a   : > { %v3512_v55 = vmax.f32 %v3490_v42, 0.0  ;;  %v8575_v47 = vpop.f32.mrb[62].mxu0 }
 0x83b   : > { %v3505_v54 = vadd.f32 %v8575_v47, %v7547_v48  ;;  %v3499_v30 = vpop.f32.mrb[63].mxu0 }
 0x83c   : > { %v3500_v56 = vadd.f32 %v7547_v48, %v3499_v30  ;;  %8598 = vmatprep.mubr.msk.f32.mxu1 %vm1770_vm3, %v3512_v55 }
 0x83d   : > { %8599 = vmatmul.mubr.msk.f32.gmra.mrb[60].mxu1 %vm1770_vm3, %v3513_v45  ;;  %v3515_v51 = vmax.f32 %v3505_v54, 0.0 }
 0x83e   : > { %v3514_v62 = vmax.f32 %v3500_v56, 0.0 }
 0x840   : > { %8601 = vmatprep.mubr.msk.f32.mxu1 %vm1770_vm3, %v3514_v62 }
 0x841   : > { %8602 = vmatmul.mubr.msk.f32.gmra.mrb[62].mxu1 %vm1770_vm3, %v3515_v51 }
 0x908   : > { %v8594_v10 = vpop.f32.mrb[56].mxu1 }
 0x909   : > { %v3627_v33 = vadd.f32 %v8594_v10, %v7556_v53  ;;  %v3621_v0 = vpop.f32.mrb[57].mxu1 }
 0x90a   : > { %v3622_v15 = vadd.f32 %v7556_v53, %v3621_v0 }
 0x90b   : > { %v3661_v22 = vadd.f32 %v3627_v33, %v11140_v31 }
 0x90c   : > { %v8597_v12 = vpop.f32.mrb[58].mxu1  ;;  %v3660_v60 = vadd.f32 %v3622_v15, %v11137_v11  ;;  %v3802_v11 = vld [vmem:[%s12543_s21] sm:$0xff] }
 0x90d   : > { %v3637_v20 = vadd.f32 %v8597_v12, %v7556_v53  ;;  %v3631_v24 = vpop.f32.mrb[59].mxu1  ;;  %v3673_v38 = vsel %vm668_vm0, %v3661_v22, 0.0  ;;  %8612 = vmatprep.mubr.msk.f32.mxu0 %vm668_vm0, %v3802_v11  ;;  %v7579_v11 = vld [vmem:[%s12509_s5 + $0x38] sm:$0xff] }
 0x90e   : > { %v3632_v37 = vadd.f32 %v7556_v53, %v3631_v24  ;;  %v3670_v42 = vsel %vm668_vm0, %v3660_v60, 0.0 }
 0x90f   : > { %v3663_v50 = vadd.f32 %v3637_v20, %v11150_v32 }
 0x910   : > { %v8600_v3 = vpop.f32.mrb[60].mxu1  ;;  %v3662_v36 = vadd.f32 %v3632_v37, %v11147_v41 }
 0x911   : > { %v3647_v18 = vadd.f32 %v8600_v3, %v7556_v53  ;;  %v3641_v14 = vpop.f32.mrb[61].mxu1  ;;  %v3679_v31 = vsel %vm668_vm0, %v3663_v50, 0.0 }
 0x912   : > { %v3642_v28 = vadd.f32 %v7556_v53, %v3641_v14  ;;  %v3676_v55 = vsel %vm668_vm0, %v3662_v36, 0.0 }
 0x913   : > { %v3665_v6 = vadd.f32 %v3647_v18, %v3365_v44 }
 0x914   : > { %v3664_v46 = vadd.f32 %v3642_v28, %v11157_v26  ;;  %v8603_v5 = vpop.f32.mrb[62].mxu1 }
 0x915   : > { %v3657_v8 = vadd.f32 %v8603_v5, %v7556_v53  ;;  %v3651_v27 = vpop.f32.mrb[63].mxu1  ;;  %v3685_v40 = vsel %vm668_vm0, %v3665_v6, 0.0 }
 0x916   : > { %v3652_v57 = vadd.f32 %v7556_v53, %v3651_v27  ;;  %3686 = vadd.xlane.f32.xlu0 %v3685_v40  ;;  %v3682_v2 = vsel %vm668_vm0, %v3664_v46, 0.0  ;;  %v11244_v40 = vld [vmem:[%s12519_s15] ss:$0 sm:$0xff] }
 0x917   : > { %v3667_v21 = vadd.f32 %v3657_v8, %v11165_v29  ;;  %3683 = vadd.xlane.f32.xlu1 %v3682_v2 }
 0x918   : > { %v3666_v1 = vadd.f32 %v3652_v57, %v11163_v13 }
 0x919   : > { %v3691_v52 = vsel %vm668_vm0, %v3667_v21, 0.0 }
 0x91a   : > { %3692 = vadd.xlane.f32.xlu0 %v3691_v52  ;;  %v3688_v9 = vsel %vm668_vm0, %v3666_v1, 0.0 }
 0x91b   : > { %3689 = vadd.xlane.f32.xlu1 %v3688_v9  ;;  %v11255_v9 = vld [vmem:[%s12520_s16] ss:$0 sm:$0xff] }
 0x9a3   : > { %v3687_v26 = vpop.xlane.xlu0 %3686 }
 0x9a4   : > { %v3699_v44 = vmul.f32 0.03125, %v3687_v26  ;;  %v3684_v63 = vpop.xlane.xlu1 %3683 }
 0x9a5   : > { %v3698_v39 = vmul.f32 0.03125, %v3684_v63 }
 0x9a6   : > { %v11198_v61 = vsub.f32 %v3665_v6, %v3699_v44 }
 0x9a7   : > { %v11200_v16 = vsub.f32 %v3664_v46, %v3698_v39  ;;  %v3693_v59 = vpop.xlane.xlu0 %3692 }
 0x9a8   : > { %v3701_v48 = vmul.f32 0.03125, %v3693_v59  ;;  %v3690_v29 = vpop.xlane.xlu1 %3689  ;;  %v3715_v13 = vmul.f32 %v11198_v61, %v11198_v61 }
 0x9a9   : > { %v3700_v25 = vmul.f32 0.03125, %v3690_v29  ;;  %v3714_v7 = vmul.f32 %v11200_v16, %v11200_v16 }
 0x9aa   : > { %v11206_v19 = vsub.f32 %v3667_v21, %v3701_v48  ;;  %v3733_v4 = vsel %vm668_vm0, %v3715_v13, 0.0 }
 0x9ab   : > { %v11209_v49 = vsub.f32 %v3666_v1, %v3700_v25  ;;  %3734 = vadd.xlane.f32.xlu0 %v3733_v4  ;;  %v3730_v23 = vsel %vm668_vm0, %v3714_v7, 0.0 }
 0x9ac   : > { %3731 = vadd.xlane.f32.xlu1 %v3730_v23  ;;  %v3717_v35 = vmul.f32 %v11206_v19, %v11206_v19 }
 0x9ad   : > { %v3716_v17 = vmul.f32 %v11209_v49, %v11209_v49 }
 0x9ae   : > { %v3739_v58 = vsel %vm668_vm0, %v3717_v35, 0.0 }
 0x9af   : > { %3740 = vadd.xlane.f32.xlu0 %v3739_v58  ;;  %v3736_v43 = vsel %vm668_vm0, %v3716_v17, 0.0 }
 0x9b0   : > { %3737 = vadd.xlane.f32.xlu1 %v3736_v43  ;;  %v7576_v43 = vld [vmem:[%s12509_s5 + $0x20] sm:$0xff] }
 0x9b3   : > { %3674 = vadd.xlane.f32.xlu0 %v3673_v38 }
 0x9b4   : > { %3671 = vadd.xlane.f32.xlu1 %v3670_v42  ;;  %v7572_v42 = vld [vmem:[%s12538_s1 + $0x28] sm:$0xff] }
 0x9b7   : > { %3680 = vadd.xlane.f32.xlu0 %v3679_v31 }
 0x9b8   : > { %3677 = vadd.xlane.f32.xlu1 %v3676_v55  ;;  %v7578_v55 = vld [vmem:[%s12509_s5 + $0x30] sm:$0xff] }
 0xa38   : > { %v3735_v32 = vpop.xlane.xlu0 %3734 }
 0xa39   : > { %v3747_v47 = vmul.f32 0.03125, %v3735_v32  ;;  %v3732_v45 = vpop.xlane.xlu1 %3731  ;;  %v7573_v32 = vld [vmem:[%s12538_s1 + $0x30] sm:$0xff] }
 0xa3a   : > { %v3746_v41 = vmul.f32 0.03125, %v3732_v45  ;;  %v7574_v45 = vld [vmem:[%s12538_s1 + $0x38] sm:$0xff] }
 0xa3b   : > { %v3755_v54 = vadd.f32 1e-05, %v3747_v47  ;;  %v9220_v47 = vpack.c.bf16 %v7579_v11, %v7578_v55 }
 0xa3c   : > { %v3754_v30 = vadd.f32 1e-05, %v3746_v41  ;;  %v3741_v56 = vpop.xlane.xlu0 %3740  ;;  %v9212_v41 = vpack.c.bf16 %v7574_v45, %v7573_v32 }
 0xa3d   : > { %9852 = vrsqrt.f32 %v3755_v54  ;;  %v3749_v62 = vmul.f32 0.03125, %v3741_v56  ;;  %v3738_v51 = vpop.xlane.xlu1 %3737 }
 0xa3e   : > { %9854 = vrsqrt.f32 %v3754_v30  ;;  %v3748_v53 = vmul.f32 0.03125, %v3738_v51 }
 0xa3f   : > { %v3757_v10 = vadd.f32 1e-05, %v3749_v62 }
 0xa40   : > { %v3756_v33 = vadd.f32 1e-05, %v3748_v53  ;;  %v3675_v0 = vpop.xlane.xlu0 %3674 }
 0xa41   : > { %9856 = vrsqrt.f32 %v3757_v10  ;;  %v3695_v15 = vmul.f32 0.03125, %v3675_v0  ;;  %v3672_v12 = vpop.xlane.xlu1 %3671 }
 0xa42   : > { %9858 = vrsqrt.f32 %v3756_v33  ;;  %v3694_v20 = vmul.f32 0.03125, %v3672_v12 }
 0xa43   : > { %v11230_v24 = vsub.f32 %v3661_v22, %v3695_v15 }
 0xa44   : > { %v11232_v37 = vsub.f32 %v3660_v60, %v3694_v20  ;;  %v3681_v3 = vpop.xlane.xlu0 %3680  ;;  %v3805_v60 = vld [vmem:[%s12543_s21 + $0x18] sm:$0xff] }
 0xa45   : > { %v3697_v18 = vmul.f32 0.03125, %v3681_v3  ;;  %v3678_v14 = vpop.xlane.xlu1 %3677  ;;  %v3711_v28 = vmul.f32 %v11230_v24, %v11230_v24 }
 0xa46   : > { %v3696_v6 = vmul.f32 0.03125, %v3678_v14  ;;  %v3710_v46 = vmul.f32 %v11232_v37, %v11232_v37 }
 0xa47   : > { %v9853_v5 = vpop.eup %9852  ;;  %v11238_v8 = vsub.f32 %v3663_v50, %v3697_v18  ;;  %v3721_v27 = vsel %vm668_vm0, %v3711_v28, 0.0  ;;  %v7577_v50 = vld [vmem:[%s12509_s5 + $0x28] sm:$0xff] }
 0xa48   : > { %v9855_v57 = vpop.eup %9854  ;;  %v11246_v2 = vsub.f32 %v3662_v36, %v3696_v6  ;;  %3722 = vadd.xlane.f32.xlu0 %v3721_v27  ;;  %v3718_v21 = vsel %vm668_vm0, %v3710_v46, 0.0  ;;  %v3771_v1 = vmul.f32 %v9853_v5, %v11198_v61  ;;  %v9216_v38 = vpack.c.bf16 %v7577_v50, %v7576_v43  ;;  %v7571_v36 = vld [vmem:[%s12538_s1 + $0x20] sm:$0xff] }
 0xa49   : > { %3719 = vadd.xlane.f32.xlu1 %v3718_v21  ;;  %v3713_v52 = vmul.f32 %v11238_v8, %v11238_v8  ;;  %v3770_v26 = vmul.f32 %v9855_v57, %v11200_v16  ;;  %v9208_v31 = vpack.c.bf16 %v7572_v42, %v7571_v36 }
 0xa4a   : > { %v3712_v44 = vmul.f32 %v11246_v2, %v11246_v2  ;;  %v3785_v63 = vmul.f32 %v11244_v40, %v3771_v1 }
 0xa4b   : > { %v9857_v39 = vpop.eup %9856  ;;  %v3727_v59 = vsel %vm668_vm0, %v3713_v52, 0.0  ;;  %v3784_v61 = vmul.f32 %v11244_v40, %v3770_v26  ;;  %9209 = vmatprep.subr.bf16.mxu1 %v9208_v31 }
 0xa4c   : > { %v9859_v48 = vpop.eup %9858  ;;  %3728 = vadd.xlane.f32.xlu0 %v3727_v59  ;;  %v3724_v29 = vsel %vm668_vm0, %v3712_v44, 0.0  ;;  %v3799_v13 = vadd.f32 %v11255_v9, %v3785_v63  ;;  %v3773_v25 = vmul.f32 %v9857_v39, %v11206_v19  ;;  %v3803_v19 = vld [vmem:[%s12543_s21 + $0x8] sm:$0xff]  ;;  %9211 = vmatpush3.bf16.msra.mxu1 %v9208_v31 }
 0xa4d   : > { %3725 = vadd.xlane.f32.xlu1 %v3724_v29  ;;  %v3798_v16 = vadd.f32 %v11255_v9, %v3784_v61  ;;  %v3772_v7 = vmul.f32 %v9859_v48, %v11209_v49  ;;  %v3804_v49 = vld [vmem:[%s12543_s21 + $0x10] sm:$0xff]  ;;  %9213 = vmatprep.subr.bf16.mxu1 %v9212_v41  ;;  %v10055_v61 = vld [vmem:[%s10204_s23 + $0x18] sm:$0xff] }
 0xa4e   : > { %v3787_v4 = vmul.f32 %v11244_v40, %v3773_v25 }
 0xa4f   : > { %v9200_v23 = vpack.c.bf16 %v3799_v13, %v3798_v16  ;;  %v3786_v35 = vmul.f32 %v11244_v40, %v3772_v7  ;;  %v10056_v13 = vld [vmem:[%s10204_s23 + $0x20] sm:$0xff]  ;;  %v10057_v16 = vld [vmem:[%s10204_s23 + $0x28] sm:$0xff] }
 0xa50   : > { %v3801_v17 = vadd.f32 %v11255_v9, %v3787_v4  ;;  %9215 = vmatpush3.bf16.msra.mxu1 %v9212_v41 }
 0xa51   : > { %9201 = vmatprep.subr.bf16.mxu0 %v9200_v23  ;;  %v3800_v22 = vadd.f32 %v11255_v9, %v3786_v35 }
 0xa52   : > { %9203 = vmatpush3.bf16.msra.mxu0 %v9200_v23  ;;  %v10058_v23 = vld [vmem:[%s10204_s23 + $0x38] sm:$0xff] }
 0xa53   : > { %v9204_v58 = vpack.c.bf16 %v3801_v17, %v3800_v22  ;;  %v10059_v22 = vld [vmem:[%s10204_s23 + $0x30] sm:$0xff] }
 0xa55   : > { %9205 = vmatprep.subr.bf16.mxu0 %v9204_v58 }
 0xa56   : > { %9207 = vmatpush3.bf16.msra.mxu0 %v9204_v58 }
 0xa57   : > { %9217 = vmatprep.subr.bf16.mxu0 %v9216_v38 }
 0xa59   : > { %8613 = vmatmul.mubr.msk.f32.vlgmr.msra.gmra.mrb[64].mxu0 %vm668_vm0, %v3803_v19  ;;  %v7595_v19 = vld [vmem:[%s12510_s6 + $0x1] ss:$0 sm:$0xff] }
 0xa5a   : > { %8615 = vmatprep.mubr.msk.f32.mxu0 %vm668_vm0, %v3804_v49  ;;  %9219 = vmatpush3.bf16.msra.mxu0 %v9216_v38 }
 0xa5b   : > { %9221 = vmatprep.subr.bf16.mxu0 %v9220_v47 }
 0xa5d   : > { %8616 = vmatmul.mubr.msk.f32.gmra.mrb[66].mxu0 %vm668_vm0, %v3805_v60  ;;  %v7586_v60 = vld [vmem:[%s12508_s4 + $0x1] ss:$0 sm:$0xff] }
 0xa5e   : > { %9223 = vmatpush3.bf16.msra.mxu0 %v9220_v47 }
 0xad5   : > { %v3723_v54 = vpop.xlane.xlu0 %3722 }
 0xad6   : > { %v3743_v30 = vmul.f32 0.03125, %v3723_v54  ;;  %v3720_v56 = vpop.xlane.xlu1 %3719 }
 0xad7   : > { %v3742_v62 = vmul.f32 0.03125, %v3720_v56 }
 0xad8   : > { %v3751_v51 = vadd.f32 1e-05, %v3743_v30 }
 0xad9   : > { %v3750_v53 = vadd.f32 1e-05, %v3742_v62  ;;  %v3729_v10 = vpop.xlane.xlu0 %3728 }
 0xada   : > { %9860 = vrsqrt.f32 %v3751_v51  ;;  %v3745_v33 = vmul.f32 0.03125, %v3729_v10  ;;  %v3726_v0 = vpop.xlane.xlu1 %3725 }
 0xadb   : > { %9862 = vrsqrt.f32 %v3750_v53  ;;  %v3744_v15 = vmul.f32 0.03125, %v3726_v0 }
 0xadc   : > { %v3753_v12 = vadd.f32 1e-05, %v3745_v33 }
 0xadd   : > { %v3752_v20 = vadd.f32 1e-05, %v3744_v15 }
 0xade   : > { %9864 = vrsqrt.f32 %v3753_v12 }
 0xadf   : > { %9866 = vrsqrt.f32 %v3752_v20 }
 0xae4   : > { %v9861_v3 = vpop.eup %9860 }
 0xae5   : > { %v9863_v18 = vpop.eup %9862  ;;  %v3767_v14 = vmul.f32 %v9861_v3, %v11230_v24 }
 0xae6   : > { %v3766_v28 = vmul.f32 %v9863_v18, %v11232_v37  ;;  %v10052_v37 = vld [vmem:[%s10204_s23] sm:$0xff] }
 0xae7   : > { %v3781_v6 = vmul.f32 %v11244_v40, %v3767_v14 }
 0xae8   : > { %v9865_v46 = vpop.eup %9864  ;;  %v3780_v5 = vmul.f32 %v11244_v40, %v3766_v28 }
 0xae9   : > { %v9867_v27 = vpop.eup %9866  ;;  %v11313_v57 = vadd.f32 %v11255_v9, %v3781_v6  ;;  %v3769_v21 = vmul.f32 %v9865_v46, %v11238_v8  ;;  %v10053_v8 = vld [vmem:[%s10204_s23 + $0x8] sm:$0xff] }
 0xaea   : > { %v11317_v1 = vadd.f32 %v11255_v9, %v3780_v5  ;;  %v3768_v24 = vmul.f32 %v9867_v27, %v11246_v2 }
 0xaeb   : > { %v3783_v52 = vmul.f32 %v11244_v40, %v3769_v21  ;;  %v3904_v63 = vadd.f32 %v10053_v8, %v11313_v57 }
 0xaec   : > { %8646 = vmatprep.mubr.msk.f32.mxu0 %vm668_vm0, %v11317_v1  ;;  %v3903_v26 = vadd.f32 %v10052_v37, %v11317_v1  ;;  %v3782_v44 = vmul.f32 %v11244_v40, %v3768_v24  ;;  %v10054_v40 = vld [vmem:[%s10204_s23 + $0x10] sm:$0xff]  ;;  %s12544_s23 = smov 120  }
 0xaed   : > { %8647 = vmatmul.mubr.msk.f32.vlgmr.msra.gmra.mrb[68].mxu0 %vm668_vm0, %v11313_v57  ;;  %v11331_v2 = vadd.f32 %v11255_v9, %v3783_v52 }
 0xaee   : > { %8626 = vmatprep.mubr.msk.f32.mxu1 %vm668_vm0, %v3903_v26  ;;  %v11335_v39 = vadd.f32 %v11255_v9, %v3782_v44 }
 0xaef   : > { %8627 = vmatmul.mubr.msk.f32.vlgmr.msra.gmra.mrb[64].mxu1 %vm668_vm0, %v3904_v63  ;;  %v3906_v48 = vadd.f32 %v10055_v61, %v11331_v2 }
 0xaf0   : > { %8649 = vmatprep.mubr.msk.f32.mxu0 %vm668_vm0, %v11335_v39  ;;  %v3905_v59 = vadd.f32 %v10054_v40, %v11335_v39 }
 0xaf1   : > { %8650 = vmatmul.mubr.msk.f32.gmra.mrb[70].mxu0 %vm668_vm0, %v11331_v2 }
 0xaf2   : > { %8629 = vmatprep.mubr.msk.f32.mxu1 %vm668_vm0, %v3905_v59 }
 0xaf3   : > { %8630 = vmatmul.mubr.msk.f32.gmra.mrb[66].mxu1 %vm668_vm0, %v3906_v48 }
 0xb2c   : > { %v11348_v9 = vpop.f32.mrb[64].mxu0 }
 0xb2d   : > { %v11350_v29 = vpop.f32.mrb[65].mxu0  ;;  %v3908_v7 = vadd.f32 %v10057_v16, %v11348_v9 }
 0xb2e   : > { %v3907_v25 = vadd.f32 %v10056_v13, %v11350_v29  ;;  %8652 = vmatprep.mubr.msk.f32.mxu0 %vm668_vm0, %v11350_v29 }
 0xb2f   : > { %8653 = vmatmul.mubr.msk.f32.gmra.mrb[72].mxu0 %vm668_vm0, %v11348_v9 }
 0xb30   : > { %v11360_v4 = vpop.f32.mrb[66].mxu0  ;;  %8632 = vmatprep.mubr.msk.f32.mxu1 %vm668_vm0, %v3907_v25 }
 0xb31   : > { %v3910_v35 = vadd.f32 %v10058_v23, %v11360_v4  ;;  %v11365_v17 = vpop.f32.mrb[67].mxu0  ;;  %8633 = vmatmul.mubr.msk.f32.gmra.mrb[68].mxu1 %vm668_vm0, %v3908_v7 }
 0xb32   : > { %v3909_v58 = vadd.f32 %v10059_v22, %v11365_v17  ;;  %8655 = vmatprep.mubr.msk.f32.mxu0 %vm668_vm0, %v11365_v17 }
 0xb33   : > { %8656 = vmatmul.mubr.msk.f32.gmra.mrb[74].mxu0 %vm668_vm0, %v11360_v4 }
 0xb34   : > { %8635 = vmatprep.mubr.msk.f32.mxu1 %vm668_vm0, %v3909_v58 }
 0xb35   : > { %8636 = vmatmul.mubr.msk.f32.gmra.mrb[70].mxu1 %vm668_vm0, %v3910_v35 }
 0xbc0   : > { %v8648_v49 = vpop.f32.mrb[68].mxu0 }
 0xbc1   : > { %v4169_v43 = vadd.f32 %v8648_v49, %v7595_v19  ;;  %v4163_v50 = vpop.f32.mrb[69].mxu0 }
 0xbc2   : > { %v4164_v38 = vadd.f32 %v7595_v19, %v4163_v50  ;;  %v8628_v36 = vpop.f32.mrb[64].mxu1 }
 0xbc3   : > { %v11382_v42 = vadd.f32 %v8628_v36, %v7586_v60  ;;  %v4028_v31 = vpop.f32.mrb[65].mxu1 }
 0xbc4   : > { %v4029_v55 = vadd.f32 %v7586_v60, %v4028_v31  ;;  %v8651_v11 = vpop.f32.mrb[70].mxu0  ;;  %v11384_v32 = vpack.i.bf16 %v4169_v43, %v4164_v38  ;;  %v11388_v41 = vpack.c.bf16 %v4169_v43, %v4164_v38 }
 0xbc5   : > { %v4179_v47 = vadd.f32 %v8651_v11, %v7595_v19  ;;  %4212 = vrot.lane.b32.xlu0 %v11382_v42, %s12544_s23  ;;  %v4173_v45 = vpop.f32.mrb[71].mxu0 }
 0xbc6   : > { %v4174_v54 = vadd.f32 %v7595_v19, %v4173_v45  ;;  %4210 = vrot.lane.b32.xlu1 %v4029_v55, %s12544_s23  ;;  %v8631_v30 = vpop.f32.mrb[66].mxu1  ;;  %v4282_v56 = vmul.f32 0.35355338, %v4029_v55  ;;  %v9568_v61 = vpack.i.bf16 %v11382_v42, %v4029_v55 }
 0xbc7   : > { %v4038_v62 = vpop.f32.mrb[67].mxu1  ;;  %v11400_v33 = vadd.f32 %v8631_v30, %v7586_v60 }
 0xbc8   : > { %v11391_v51 = vadd.f32 %v7586_v60, %v4038_v62  ;;  %8674 = vmatprep.mubr.msk.f32.mxu1 %vm1141_vm1, %v4282_v56  ;;  %v11394_v53 = vpack.i.bf16 %v4179_v47, %v4174_v54  ;;  %v11396_v10 = vpack.c.bf16 %v4179_v47, %v4174_v54 }
 0xbca   : > { %4214 = vrot.lane.b32.xlu1 %v11391_v51, %s12544_s23  ;;  %v9578_v48 = vpack.i.bf16 %v11400_v33, %v11391_v51 }
 0xbce   : > { %4216 = vrot.lane.b32.xlu1 %v11400_v33, %s12544_s23 }
 0xc02   : > { %v8654_v0 = vpop.f32.mrb[72].mxu0 }
 0xc03   : > { %v4189_v15 = vadd.f32 %v8654_v0, %v7595_v19  ;;  %v4183_v12 = vpop.f32.mrb[73].mxu0 }
 0xc04   : > { %v4184_v20 = vadd.f32 %v7595_v19, %v4183_v12  ;;  %v8634_v3 = vpop.f32.mrb[68].mxu1 }
 0xc05   : > { %v11404_v18 = vadd.f32 %v8634_v3, %v7586_v60  ;;  %v4048_v14 = vpop.f32.mrb[69].mxu1 }
 0xc06   : > { %v11406_v28 = vadd.f32 %v7586_v60, %v4048_v14  ;;  %v8657_v6 = vpop.f32.mrb[74].mxu0  ;;  %v11408_v46 = vpack.i.bf16 %v4189_v15, %v4184_v20  ;;  %v11410_v5 = vpack.c.bf16 %v4189_v15, %v4184_v20 }
 0xc07   : > { %v4199_v27 = vadd.f32 %v8657_v6, %v7595_v19  ;;  %4220 = vrot.lane.b32.xlu1 %v11404_v18, %s12544_s23  ;;  %v4193_v21 = vpop.f32.mrb[75].mxu0 }
 0xc08   : > { %v8637_v24 = vpop.f32.mrb[70].mxu1  ;;  %v4194_v52 = vadd.f32 %v7595_v19, %v4193_v21  ;;  %4218 = vrot.lane.b32.xlu0 %v11406_v28, %s12544_s23  ;;  %v9588_v37 = vpack.i.bf16 %v11404_v18, %v11406_v28 }
 0xc09   : > { %v11418_v26 = vadd.f32 %v8637_v24, %v7586_v60  ;;  %v4058_v44 = vpop.f32.mrb[71].mxu1 }
 0xc0a   : > { %v11420_v8 = vadd.f32 %v7586_v60, %v4058_v44  ;;  %v11422_v63 = vpack.i.bf16 %v4199_v27, %v4194_v52  ;;  %v11424_v40 = vpack.c.bf16 %v4199_v27, %v4194_v52 }
 0xc0b   : > { %4224 = vrot.lane.b32.xlu1 %v11418_v26, %s12544_s23 }
 0xc0c   : > { %4234 = vrot.lane.b32.xlu0 %v4029_v55, %s12545_s22  ;;  %v9598_v59 = vpack.i.bf16 %v11418_v26, %v11420_v8 }
 0xc0f   : > { %4236 = vrot.lane.b32.xlu1 %v11382_v42, %s12545_s22 }
 0xc10   : > { %4222 = vrot.lane.b32.xlu0 %v11420_v8, %s12544_s23 }
 0xc13   : > { %4260 = vrot.lane.b32.xlu1 %v11382_v42, %s12546_s2 }
 0xc14   : > { %4258 = vrot.lane.b32.xlu0 %v4029_v55, %s12546_s2 }
 0xc17   : > { %4240 = vrot.lane.b32.xlu1 %v11400_v33, %s12545_s22 }
 0xc18   : > { %4238 = vrot.lane.b32.xlu0 %v11391_v51, %s12545_s22 }
 0xc1b   : > { %4264 = vrot.lane.b32.xlu1 %v11400_v33, %s12546_s2 }
 0xc1c   : > { %4262 = vrot.lane.b32.xlu0 %v11391_v51, %s12546_s2 }
 0xc1f   : > { %4244 = vrot.lane.b32.xlu1 %v11404_v18, %s12545_s22 }
 0xc20   : > { %4242 = vrot.lane.b32.xlu0 %v11406_v28, %s12545_s22 }
 0xc23   : > { %4268 = vrot.lane.b32.xlu1 %v11404_v18, %s12546_s2 }
 0xc24   : > { %4266 = vrot.lane.b32.xlu0 %v11406_v28, %s12546_s2 }
 0xc27   : > { %4248 = vrot.lane.b32.xlu1 %v11418_v26, %s12545_s22 }
 0xc28   : > { %4246 = vrot.lane.b32.xlu0 %v11420_v8, %s12545_s22 }
 0xc2b   : > { %4272 = vrot.lane.b32.xlu1 %v11418_v26, %s12546_s2 }
 0xc2c   : > { %4270 = vrot.lane.b32.xlu0 %v11420_v8, %s12546_s2 }
 0xc30   : > { %9569 = vrot.lane.b32.xlu0 %v9568_v61, %s12547_s20 }
 0xc34   : > { %9579 = vrot.lane.b32.xlu0 %v9578_v48, %s12547_s20 }
 0xc37   : > { %v11467_v13 = vpop.permute.xlu0 %4212 }
 0xc38   : > { %9589 = vrot.lane.b32.xlu0 %v9588_v37, %s12547_s20  ;;  %v4211_v25 = vpop.permute.xlu1 %4210 }
 0xc39   : > { %v4290_v16 = vmul.f32 0.35355338, %v4211_v25  ;;  %v9573_v7 = vpack.i.bf16 %v11467_v13, %v4211_v25 }
 0xc3b   : > { %8702 = vmatprep.mubr.msk.f32.mxu0 %vm1141_vm1, %v4290_v16  ;;  %9574 = vrot.lane.b32.xlu1 %v9573_v7, %s12547_s20 }
 0xc3c   : > { %9599 = vrot.lane.b32.xlu0 %v9598_v59, %s12547_s20  ;;  %v11474_v23 = vpop.permute.xlu1 %4214 }
 0xc40   : > { %v11476_v35 = vpop.permute.xlu1 %4216 }
 0xc41   : > { %v9583_v22 = vpack.i.bf16 %v11476_v35, %v11474_v23 }
 0xc43   : > { %9584 = vrot.lane.b32.xlu1 %v9583_v22, %s12547_s20 }
 0xc79   : > { %v11481_v58 = vpop.permute.xlu1 %4220 }
 0xc7a   : > { %v11483_v19 = vpop.permute.xlu0 %4218 }
 0xc7b   : > { %v9593_v49 = vpack.i.bf16 %v11481_v58, %v11483_v19 }
 0xc7d   : > { %9594 = vrot.lane.b32.xlu1 %v9593_v49, %s12547_s20  ;;  %v11488_v60 = vpop.permute.xlu1 %4224 }
 0xc7e   : > { %v11490_v43 = vpop.permute.xlu0 %4234 }
 0xc81   : > { %v11492_v50 = vpop.permute.xlu1 %4236 }
 0xc82   : > { %v9608_v38 = vpack.i.bf16 %v11492_v50, %v11490_v43  ;;  %v11496_v36 = vpop.permute.xlu0 %4222 }
 0xc83   : > { %v9603_v31 = vpack.i.bf16 %v11488_v60, %v11496_v36 }
 0xc84   : > { %9609 = vrot.lane.b32.xlu0 %v9608_v38, %s12547_s20 }
 0xc85   : > { %9604 = vrot.lane.b32.xlu1 %v9603_v31, %s12547_s20  ;;  %v11502_v55 = vpop.permute.xlu1 %4260 }
 0xc86   : > { %v11504_v11 = vpop.permute.xlu0 %4258  ;;  %v4307_v34 = vmul.f32 0.35355338, %v11502_v55 }
 0xc87   : > { %v9613_v47 = vpack.i.bf16 %v11502_v55, %v11504_v11 }
 0xc89   : > { %9614 = vrot.lane.b32.xlu1 %v9613_v47, %s12547_s20  ;;  %v11509_v45 = vpop.permute.xlu1 %4240 }
 0xc8a   : > { %v11511_v54 = vpop.permute.xlu0 %4238 }
 0xc8b   : > { %v9618_v30 = vpack.i.bf16 %v11509_v45, %v11511_v54 }
 0xc8d   : > { %9619 = vrot.lane.b32.xlu0 %v9618_v30, %s12547_s20  ;;  %v11516_v56 = vpop.permute.xlu1 %4264 }
 0xc8e   : > { %v11518_v62 = vpop.permute.xlu0 %4262 }
 0xc8f   : > { %v9623_v0 = vpack.i.bf16 %v11516_v56, %v11518_v62 }
 0xc91   : > { %9624 = vrot.lane.b32.xlu1 %v9623_v0, %s12547_s20  ;;  %v11523_v15 = vpop.permute.xlu1 %4244 }
 0xc92   : > { %v11525_v12 = vpop.permute.xlu0 %4242 }
 0xc93   : > { %v9628_v20 = vpack.i.bf16 %v11523_v15, %v11525_v12 }
 0xc95   : > { %9629 = vrot.lane.b32.xlu0 %v9628_v20, %s12547_s20  ;;  %v11530_v3 = vpop.permute.xlu1 %4268 }
 0xc96   : > { %v11532_v14 = vpop.permute.xlu0 %4266 }
 0xc97   : > { %v9633_v6 = vpack.i.bf16 %v11530_v3, %v11532_v14 }
 0xc99   : > { %9634 = vrot.lane.b32.xlu1 %v9633_v6, %s12547_s20  ;;  %v11537_v27 = vpop.permute.xlu1 %4248 }
 0xc9a   : > { %v11539_v21 = vpop.permute.xlu0 %4246 }
 0xc9b   : > { %v9638_v24 = vpack.i.bf16 %v11537_v27, %v11539_v21 }
 0xc9d   : > { %9639 = vrot.lane.b32.xlu0 %v9638_v24, %s12547_s20  ;;  %v11544_v52 = vpop.permute.xlu1 %4272 }
 0xc9e   : > { %v11546_v37 = vpop.permute.xlu0 %4270 }
 0xc9f   : > { %v9643_v44 = vpack.i.bf16 %v11544_v52, %v11546_v37 }
 0xca1   : > { %9659 = vrot.lane.b32.xlu0 %v11408_v46, %s12544_s23  ;;  %9644 = vrot.lane.b32.xlu1 %v9643_v44, %s12547_s20 }
 0xca2   : > { %v9570_v59 = vpop.permute.xlu0 %9569 }
 0xca3   : > { %v9572_v61 = vunpack.i.h.bf16 %v9570_v59  ;;  %v9571_v48 = vunpack.i.l.bf16 %v9570_v59 }
 0xca5   : > { %v9224_v25 = vpack.c.bf16 %v9572_v61, %v9571_v48  ;;  %9669 = vrot.lane.b32.xlu0 %v11384_v32, %s12545_s22  ;;  %9649 = vrot.lane.b32.xlu1 %v11384_v32, %s12544_s23 }
 0xca6   : > { %v9580_v16 = vpop.permute.xlu0 %9579 }
 0xca7   : > { %v9582_v7 = vunpack.i.h.bf16 %v9580_v16  ;;  %v9581_v22 = vunpack.i.l.bf16 %v9580_v16  ;;  %9226 = vmatprep.subr.msk.bf16.mxu1 %vm10407_vm2, %v9224_v25 }
 0xca8   : > { %9229 = vmatpush3.bf16.xpose.msk.msra.mxu1 %vm10407_vm2, %v9224_v25 }
 0xca9   : > { %v9230_v49 = vpack.c.bf16 %v9582_v7, %v9581_v22  ;;  %9679 = vrot.lane.b32.xlu0 %v11394_v53, %s12545_s22  ;;  %9654 = vrot.lane.b32.xlu1 %v11394_v53, %s12544_s23 }
 0xcaa   : > { %v9590_v38 = vpop.permute.xlu0 %9589 }
 0xcab   : > { %v9592_v31 = vunpack.i.h.bf16 %v9590_v38  ;;  %v9591_v47 = vunpack.i.l.bf16 %v9590_v38  ;;  %9232 = vmatprep.subr.msk.bf16.mxu1 %vm10407_vm2, %v9230_v49  ;;  %v4285_v38 = vmul.f32 0.35355338, %v11400_v33 }
 0xcad   : > { %9664 = vrot.lane.b32.xlu1 %v11422_v63, %s12544_s23  ;;  %v9575_v30 = vpop.permute.xlu1 %9574  ;;  %v9236_v6 = vpack.c.bf16 %v9592_v31, %v9591_v47  ;;  %v4286_v31 = vmul.f32 0.35355338, %v11406_v28  ;;  %v4287_v47 = vmul.f32 0.35355338, %v11404_v18 }
 0xcae   : > { %v9577_v0 = vunpack.i.h.bf16 %v9575_v30  ;;  %v9576_v20 = vunpack.i.l.bf16 %v9575_v30  ;;  %v9600_v44 = vpop.permute.xlu0 %9599  ;;  %v4288_v30 = vmul.f32 0.35355338, %v11420_v8 }
 0xcaf   : > { %v9602_v59 = vunpack.i.h.bf16 %v9600_v44  ;;  %v9601_v61 = vunpack.i.l.bf16 %v9600_v44 }
 0xcb0   : > { %v9248_v24 = vpack.c.bf16 %v9577_v0, %v9576_v20  ;;  %9235 = vmatpush3.bf16.xpose.msk.msra.mxu1 %vm10407_vm2, %v9230_v49  ;;  %v4284_v49 = vmul.f32 0.35355338, %v11391_v51  ;;  %v4298_v51 = vmul.f32 0.35355338, %v11490_v43 }
 0xcb1   : > { %9238 = vmatprep.subr.msk.bf16.mxu1 %vm10407_vm2, %v9236_v6  ;;  %9674 = vrot.lane.b32.xlu1 %v11384_v32, %s12546_s2  ;;  %v9242_v7 = vpack.c.bf16 %v9602_v59, %v9601_v61  ;;  %v4283_v32 = vmul.f32 0.35355338, %v11382_v42  ;;  %v4289_v42 = vmul.f32 0.35355338, %v11418_v26 }
 0xcb2   : > { %9250 = vmatprep.subr.msk.bf16.mxu0 %vm10407_vm2, %v9248_v24 }
 0xcb3   : > { %9253 = vmatpush3.bf16.xpose.msk.msra.mxu0 %vm10407_vm2, %v9248_v24 }
 0xcb5   : > { %v9585_v48 = vpop.permute.xlu1 %9584 }
 0xcb6   : > { %v9587_v25 = vunpack.i.h.bf16 %v9585_v48  ;;  %v9586_v16 = vunpack.i.l.bf16 %v9585_v48 }
 0xcb8   : > { %v9254_v22 = vpack.c.bf16 %v9587_v25, %v9586_v16  ;;  %9241 = vmatpush3.bf16.xpose.msk.msra.mxu1 %vm10407_vm2, %v9236_v6 }
 0xcb9   : > { %9244 = vmatprep.subr.msk.bf16.mxu1 %vm10407_vm2, %v9242_v7 }
 0xcba   : > { %9256 = vmatprep.subr.msk.bf16.mxu0 %vm10407_vm2, %v9254_v22 }
 0xcbb   : > { %9259 = vmatpush3.bf16.xpose.msk.msra.mxu0 %vm10407_vm2, %v9254_v22 }
 0xcc0   : > { %9247 = vmatpush3.bf16.xpose.msk.msra.mxu1 %vm10407_vm2, %v9242_v7 }
 0xcc7   : > { %8675 = vmatmul.mubr.msk.f32.vlgmr.msra.gmra.mrb[72].mxu1 %vm1141_vm1, %v4283_v32 }
 0xcc8   : > { %8677 = vmatprep.mubr.msk.f32.mxu1 %vm1141_vm1, %v4284_v49  ;;  %v4291_v49 = vmul.f32 0.35355338, %v11467_v13  ;;  %v4294_v13 = vmul.f32 0.35355338, %v11483_v19  ;;  %v4297_v19 = vmul.f32 0.35355338, %v11488_v60 }
 0xccb   : > { %8678 = vmatmul.mubr.msk.f32.gmra.mrb[74].mxu1 %vm1141_vm1, %v4285_v38 }
 0xccc   : > { %8680 = vmatprep.mubr.msk.f32.mxu1 %vm1141_vm1, %v4286_v31  ;;  %v4292_v31 = vmul.f32 0.35355338, %v11474_v23 }
 0xccf   : > { %8681 = vmatmul.mubr.msk.f32.gmra.mrb[76].mxu1 %vm1141_vm1, %v4287_v47 }
 0xcd0   : > { %8683 = vmatprep.mubr.msk.f32.mxu1 %vm1141_vm1, %v4288_v30 }
 0xcd3   : > { %8684 = vmatmul.mubr.msk.f32.gmra.mrb[78].mxu1 %vm1141_vm1, %v4289_v42 }
 0xcd4   : > { %8730 = vmatprep.mubr.msk.f32.mxu1 %vm1141_vm1, %v4298_v51  ;;  %v4293_v51 = vmul.f32 0.35355338, %v11476_v35  ;;  %v4296_v35 = vmul.f32 0.35355338, %v11496_v36 }
 0xcef   : > { %v9595_v33 = vpop.permute.xlu1 %9594 }
 0xcf0   : > { %v9597_v28 = vunpack.i.h.bf16 %v9595_v33  ;;  %v9596_v0 = vunpack.i.l.bf16 %v9595_v33 }
 0xcf2   : > { %v9260_v20 = vpack.c.bf16 %v9597_v28, %v9596_v0 }
 0xcf4   : > { %9262 = vmatprep.subr.msk.bf16.mxu0 %vm10407_vm2, %v9260_v20 }
 0xcf5   : > { %9265 = vmatpush3.bf16.xpose.msk.msra.mxu0 %vm10407_vm2, %v9260_v20  ;;  %v4295_v20 = vmul.f32 0.35355338, %v11481_v58  ;;  %v4306_v58 = vmul.f32 0.35355338, %v11504_v11 }
 0xcf6   : > { %v9610_v18 = vpop.permute.xlu0 %9609 }
 0xcf7   : > { %v9612_v8 = vunpack.i.h.bf16 %v9610_v18  ;;  %v9611_v6 = vunpack.i.l.bf16 %v9610_v18  ;;  %v9605_v26 = vpop.permute.xlu1 %9604 }
 0xcf8   : > { %v9607_v24 = vunpack.i.h.bf16 %v9605_v26  ;;  %v9606_v43 = vunpack.i.l.bf16 %v9605_v26 }
 0xcf9   : > { %v9272_v44 = vpack.c.bf16 %v9612_v8, %v9611_v6 }
 0xcfa   : > { %v9266_v59 = vpack.c.bf16 %v9607_v24, %v9606_v43 }
 0xcfb   : > { %9274 = vmatprep.subr.msk.bf16.mxu1 %vm10407_vm2, %v9272_v44  ;;  %v9615_v61 = vpop.permute.xlu1 %9614 }
 0xcfc   : > { %v9617_v48 = vunpack.i.h.bf16 %v9615_v61  ;;  %v9616_v25 = vunpack.i.l.bf16 %v9615_v61  ;;  %9268 = vmatprep.subr.msk.bf16.mxu0 %vm10407_vm2, %v9266_v59  ;;  %9277 = vmatpush3.bf16.xpose.msk.msra.mxu1 %vm10407_vm2, %v9272_v44 }
 0xcfd   : > { %9271 = vmatpush3.bf16.xpose.msk.msra.mxu0 %vm10407_vm2, %v9266_v59 }
 0xcfe   : > { %v9296_v16 = vpack.c.bf16 %v9617_v48, %v9616_v25 }
 0xcff   : > { %v9620_v7 = vpop.permute.xlu0 %9619 }
 0xd00   : > { %v9622_v22 = vunpack.i.h.bf16 %v9620_v7  ;;  %v9621_v32 = vunpack.i.l.bf16 %v9620_v7  ;;  %9298 = vmatprep.subr.msk.bf16.mxu0 %vm10407_vm2, %v9296_v16 }
 0xd02   : > { %v9278_v38 = vpack.c.bf16 %v9622_v22, %v9621_v32  ;;  %v4299_v22 = vmul.f32 0.35355338, %v11492_v50  ;;  %v4300_v32 = vmul.f32 0.35355338, %v11511_v54 }
 0xd03   : > { %v9625_v47 = vpop.permute.xlu1 %9624 }
 0xd04   : > { %v9627_v30 = vunpack.i.h.bf16 %v9625_v47  ;;  %v9626_v42 = vunpack.i.l.bf16 %v9625_v47  ;;  %8703 = vmatmul.mubr.msk.f32.vlgmr.msra.gmra.mrb[76].mxu0 %vm1141_vm1, %v4291_v49  ;;  %9280 = vmatprep.subr.msk.bf16.mxu1 %vm10407_vm2, %v9278_v38  ;;  %v4302_v47 = vmul.f32 0.35355338, %v11525_v12  ;;  %v4308_v12 = vmul.f32 0.35355338, %v11518_v62 }
 0xd05   : > { %8705 = vmatprep.mubr.msk.f32.mxu0 %vm1141_vm1, %v4292_v31  ;;  %9283 = vmatpush3.bf16.xpose.msk.msra.mxu1 %vm10407_vm2, %v9278_v38  ;;  %v4301_v31 = vmul.f32 0.35355338, %v11509_v45  ;;  %v4309_v62 = vmul.f32 0.35355338, %v11516_v56  ;;  %v4311_v56 = vmul.f32 0.35355338, %v11530_v3 }
 0xd06   : > { %v9302_v33 = vpack.c.bf16 %v9627_v30, %v9626_v42  ;;  %9301 = vmatpush3.bf16.xpose.msk.msra.mxu0 %vm10407_vm2, %v9296_v16  ;;  %v4304_v42 = vmul.f32 0.35355338, %v11539_v21  ;;  %v4310_v21 = vmul.f32 0.35355338, %v11532_v14  ;;  %v4312_v14 = vmul.f32 0.35355338, %v11546_v37 }
 0xd07   : > { %v9630_v23 = vpop.permute.xlu0 %9629 }
 0xd08   : > { %v9632_v28 = vunpack.i.h.bf16 %v9630_v23  ;;  %v9631_v0 = vunpack.i.l.bf16 %v9630_v23  ;;  %8706 = vmatmul.mubr.msk.f32.gmra.mrb[78].mxu0 %vm1141_vm1, %v4293_v51  ;;  %9304 = vmatprep.subr.msk.bf16.mxu0 %vm10407_vm2, %v9302_v33 }
 0xd09   : > { %8708 = vmatprep.mubr.msk.f32.mxu0 %vm1141_vm1, %v4294_v13 }
 0xd0a   : > { %v9284_v18 = vpack.c.bf16 %v9632_v28, %v9631_v0 }
 0xd0b   : > { %v9635_v8 = vpop.permute.xlu1 %9634 }
 0xd0c   : > { %v9637_v6 = vunpack.i.h.bf16 %v9635_v8  ;;  %v9636_v26 = vunpack.i.l.bf16 %v9635_v8  ;;  %8709 = vmatmul.mubr.msk.f32.gmra.mrb[80].mxu0 %vm1141_vm1, %v4295_v20  ;;  %9286 = vmatprep.subr.msk.bf16.mxu1 %vm10407_vm2, %v9284_v18 }
 0xd0d   : > { %8711 = vmatprep.mubr.msk.f32.mxu0 %vm1141_vm1, %v4296_v35  ;;  %9289 = vmatpush3.bf16.xpose.msk.msra.mxu1 %vm10407_vm2, %v9284_v18 }
 0xd0e   : > { %v9308_v24 = vpack.c.bf16 %v9637_v6, %v9636_v26  ;;  %9307 = vmatpush3.bf16.xpose.msk.msra.mxu0 %vm10407_vm2, %v9302_v33  ;;  %v4313_v6 = vmul.f32 0.35355338, %v11544_v52 }
 0xd0f   : > { %v9640_v36 = vpop.permute.xlu0 %9639 }
 0xd10   : > { %v9642_v43 = vunpack.i.h.bf16 %v9640_v36  ;;  %v9641_v44 = vunpack.i.l.bf16 %v9640_v36  ;;  %8712 = vmatmul.mubr.msk.f32.gmra.mrb[82].mxu0 %vm1141_vm1, %v4297_v19  ;;  %9310 = vmatprep.subr.msk.bf16.mxu0 %vm10407_vm2, %v9308_v24 }
 0xd11   : > { %8758 = vmatprep.mubr.msk.f32.mxu0 %vm1141_vm1, %v4306_v58 }
 0xd12   : > { %v9290_v59 = vpack.c.bf16 %v9642_v43, %v9641_v44 }
 0xd13   : > { %v9645_v61 = vpop.permute.xlu1 %9644  ;;  %v9660_v49 = vpop.permute.xlu0 %9659 }
 0xd14   : > { %v9647_v48 = vunpack.i.h.bf16 %v9645_v61  ;;  %v9646_v60 = vunpack.i.l.bf16 %v9645_v61  ;;  %9292 = vmatprep.subr.msk.bf16.mxu1 %vm10407_vm2, %v9290_v59  ;;  %v9661_v23 = vunpack.i.l.bf16 %v9660_v49 }
 0xd15   : > { %9295 = vmatpush3.bf16.xpose.msk.msra.mxu1 %vm10407_vm2, %v9290_v59 }
 0xd16   : > { %v9314_v11 = vpack.c.bf16 %v9647_v48, %v9646_v60  ;;  %9313 = vmatpush3.bf16.xpose.msk.msra.mxu0 %vm10407_vm2, %v9308_v24  ;;  %9321 = vmatprep.subr.bf16.mxu1 %v11388_v41 }
 0xd17   : > { %v9650_v25 = vpop.permute.xlu1 %9649  ;;  %v9670_v54 = vpop.permute.xlu0 %9669 }
 0xd18   : > { %9316 = vmatprep.subr.msk.bf16.mxu0 %vm10407_vm2, %v9314_v11  ;;  %v9652_v16 = vunpack.i.h.bf16 %v9650_v25  ;;  %v9651_v7 = vunpack.i.l.bf16 %v9650_v25  ;;  %v9672_v51 = vunpack.i.h.bf16 %v9670_v54  ;;  %v9671_v33 = vunpack.i.l.bf16 %v9670_v54 }
 0xd1a   : > { %v9336_v38 = vpack.c.bf16 %v9652_v16, %v9651_v7 }
 0xd1b   : > { %v9655_v50 = vpop.permute.xlu1 %9654 }
 0xd1c   : > { %8731 = vmatmul.mubr.msk.f32.vlgmr.msra.gmra.mrb[80].mxu1 %vm1141_vm1, %v4299_v22  ;;  %v9657_v30 = vunpack.i.h.bf16 %v9655_v50  ;;  %v9656_v45 = vunpack.i.l.bf16 %v9655_v50 }
 0xd1d   : > { %8733 = vmatprep.mubr.msk.f32.mxu1 %vm1141_vm1, %v4300_v32  ;;  %9323 = vmatpush3.bf16.msra.mxu1 %v11388_v41  ;;  %v4303_v41 = vmul.f32 0.35355338, %v11523_v15  ;;  %v9662_v15 = vunpack.i.h.bf16 %v9660_v49 }
 0xd1e   : > { %9319 = vmatpush3.bf16.xpose.msk.msra.mxu0 %vm10407_vm2, %v9314_v11  ;;  %9325 = vmatprep.subr.bf16.mxu1 %v11396_v10  ;;  %v9340_v55 = vpack.c.bf16 %v9657_v30, %v9656_v45 }
 0xd1f   : > { %9337 = vmatprep.subr.bf16.mxu0 %v9336_v38  ;;  %v9665_v13 = vpop.permute.xlu1 %9664 }
 0xd20   : > { %8734 = vmatmul.mubr.msk.f32.gmra.mrb[82].mxu1 %vm1141_vm1, %v4301_v31  ;;  %v9667_v28 = vunpack.i.h.bf16 %v9665_v13  ;;  %v9666_v0 = vunpack.i.l.bf16 %v9665_v13 }
 0xd21   : > { %8736 = vmatprep.mubr.msk.f32.mxu1 %vm1141_vm1, %v4302_v47  ;;  %9327 = vmatpush3.bf16.msra.mxu1 %v11396_v10  ;;  %v4305_v10 = vmul.f32 0.35355338, %v11537_v27  ;;  %v11689_v27 = vpack.c.bf16 %v9672_v51, %v9671_v33 }
 0xd22   : > { %9329 = vmatprep.subr.bf16.mxu1 %v11410_v5  ;;  %v9348_v8 = vpack.c.bf16 %v9667_v28, %v9666_v0 }
 0xd23   : > { %v9675_v20 = vpop.permute.xlu1 %9674 }
 0xd24   : > { %8737 = vmatmul.mubr.msk.f32.gmra.mrb[84].mxu1 %vm1141_vm1, %v4303_v41  ;;  %v9677_v18 = vunpack.i.h.bf16 %v9675_v20  ;;  %v9676_v35 = vunpack.i.l.bf16 %v9675_v20 }
 0xd25   : > { %8759 = vmatmul.mubr.msk.f32.vlgmr.msra.gmra.mrb[84].mxu0 %vm1141_vm1, %v4307_v34  ;;  %8739 = vmatprep.mubr.msk.f32.mxu1 %vm1141_vm1, %v4304_v42 }
 0xd26   : > { %8761 = vmatprep.mubr.msk.f32.mxu0 %vm1141_vm1, %v4308_v12  ;;  %9331 = vmatpush3.bf16.msra.mxu1 %v11410_v5  ;;  %v9344_v5 = vpack.c.bf16 %v9662_v15, %v9661_v23 }
 0xd27   : > { %9339 = vmatpush3.bf16.msra.mxu0 %v9336_v38  ;;  %9333 = vmatprep.subr.bf16.mxu1 %v11424_v40 }
 0xd28   : > { %9341 = vmatprep.subr.bf16.mxu0 %v9340_v55  ;;  %8740 = vmatmul.mubr.msk.f32.gmra.mrb[86].mxu1 %vm1141_vm1, %v4305_v10 }
 0xd29   : > { %8762 = vmatmul.mubr.msk.f32.gmra.mrb[86].mxu0 %vm1141_vm1, %v4309_v62 }
 0xd2a   : > { %8764 = vmatprep.mubr.msk.f32.mxu0 %vm1141_vm1, %v4310_v21  ;;  %9335 = vmatpush3.bf16.msra.mxu1 %v11424_v40  ;;  %v11700_v40 = vpack.c.bf16 %v9677_v18, %v9676_v35 }
 0xd2b   : > { %9343 = vmatpush3.bf16.msra.mxu0 %v9340_v55  ;;  %9353 = vmatprep.subr.bf16.mxu1 %v11689_v27 }
 0xd2c   : > { %9345 = vmatprep.subr.bf16.mxu0 %v9344_v5 }
 0xd2d   : > { %8765 = vmatmul.mubr.msk.f32.gmra.mrb[88].mxu0 %vm1141_vm1, %v4311_v56 }
 0xd2e   : > { %8767 = vmatprep.mubr.msk.f32.mxu0 %vm1141_vm1, %v4312_v14 }
 0xd2f   : > { %9347 = vmatpush3.bf16.msra.mxu0 %v9344_v5 }
 0xd30   : > { %9349 = vmatprep.subr.bf16.mxu0 %v9348_v8 }
 0xd31   : > { %8768 = vmatmul.mubr.msk.f32.gmra.mrb[90].mxu0 %vm1141_vm1, %v4313_v6 }
 0xd33   : > { %9351 = vmatpush3.bf16.msra.mxu0 %v9348_v8 }
 0xd34   : > { %9369 = vmatprep.subr.bf16.mxu0 %v11700_v40 }
 0xd9a   : > { %v11703_v3 = vpop.f32.mrb[72].mxu1 }
 0xd9b   : > { %v11705_v37 = vpop.f32.mrb[73].mxu1  ;;  %v5041_v26 = vsel %vm1770_vm3, %v11703_v3, -inf }
 0xd9c   : > { %5042 = vmax.xlane.f32.xlu1 %v5041_v26  ;;  %v5038_v52 = vsel %vm1770_vm3, %v11705_v37, -inf }
 0xd9d   : > { %5039 = vmax.xlane.f32.xlu0 %v5038_v52 }
 0xd9e   : > { %v11711_v19 = vpop.f32.mrb[74].mxu1 }
 0xd9f   : > { %v11713_v24 = vpop.f32.mrb[75].mxu1  ;;  %v5047_v58 = vsel %vm1770_vm3, %v11711_v19, -inf }
 0xda0   : > { %v5044_v36 = vsel %vm1770_vm3, %v11713_v24, -inf }
 0xda1   : > { %5048 = vmax.xlane.f32.xlu0 %v5047_v58  ;;  %5045 = vmax.xlane.f32.xlu1 %v5044_v36 }
 0xda2   : > { %v11719_v43 = vpop.f32.mrb[76].mxu1 }
 0xda3   : > { %v11721_v44 = vpop.f32.mrb[77].mxu1  ;;  %v5053_v59 = vsel %vm1770_vm3, %v11719_v43, -inf }
 0xda4   : > { %v5050_v61 = vsel %vm1770_vm3, %v11721_v44, -inf }
 0xda5   : > { %5054 = vmax.xlane.f32.xlu0 %v5053_v59  ;;  %5051 = vmax.xlane.f32.xlu1 %v5050_v61 }
 0xda6   : > { %v11727_v48 = vpop.f32.mrb[78].mxu1 }
 0xda7   : > { %v11729_v60 = vpop.f32.mrb[79].mxu1  ;;  %v5059_v11 = vsel %vm1770_vm3, %v11727_v48, -inf }
 0xda8   : > { %v5056_v25 = vsel %vm1770_vm3, %v11729_v60, -inf }
 0xda9   : > { %5060 = vmax.xlane.f32.xlu0 %v5059_v11  ;;  %5057 = vmax.xlane.f32.xlu1 %v5056_v25 }
 0xdd7   : > { %v11735_v16 = vpop.f32.mrb[76].mxu0 }
 0xdd8   : > { %v11737_v7 = vpop.f32.mrb[77].mxu0  ;;  %v5065_v22 = vsel %vm1770_vm3, %v11735_v16, -inf }
 0xdd9   : > { %5066 = vmax.xlane.f32.xlu0 %v5065_v22  ;;  %v5062_v12 = vsel %vm1770_vm3, %v11737_v7, -inf }
 0xddb   : > { %v11741_v32 = vpop.f32.mrb[78].mxu0 }
 0xddc   : > { %v11743_v49 = vpop.f32.mrb[79].mxu0  ;;  %v5071_v15 = vsel %vm1770_vm3, %v11741_v32, -inf }
 0xddd   : > { %v5068_v51 = vsel %vm1770_vm3, %v11743_v49, -inf }
 0xddf   : > { %v11745_v38 = vpop.f32.mrb[80].mxu0 }
 0xde0   : > { %v11747_v31 = vpop.f32.mrb[81].mxu0  ;;  %v5077_v14 = vsel %vm1770_vm3, %v11745_v38, -inf }
 0xde1   : > { %v5074_v56 = vsel %vm1770_vm3, %v11747_v31, -inf }
 0xde3   : > { %v11749_v47 = vpop.f32.mrb[82].mxu0 }
 0xde4   : > { %v11751_v50 = vpop.f32.mrb[83].mxu0  ;;  %v5083_v58 = vsel %vm1770_vm3, %v11749_v47, -inf }
 0xde5   : > { %v5080_v52 = vsel %vm1770_vm3, %v11751_v50, -inf }
 0xdef   : > { %v11753_v41 = vpop.f32.mrb[80].mxu1 }
 0xdf0   : > { %v11755_v54 = vpop.f32.mrb[81].mxu1  ;;  %v5089_v30 = vsel %vm1770_vm3, %v11753_v41, -inf }
 0xdf1   : > { %5090 = vmax.xlane.f32.xlu0 %v5089_v30  ;;  %v5086_v45 = vsel %vm1770_vm3, %v11755_v54, -inf }
 0xdf2   : > { %5087 = vmax.xlane.f32.xlu1 %v5086_v45 }
 0xdf3   : > { %v11761_v34 = vpop.f32.mrb[82].mxu1 }
 0xdf4   : > { %v11763_v42 = vpop.f32.mrb[83].mxu1  ;;  %v5095_v0 = vsel %vm1770_vm3, %v11761_v34, -inf }
 0xdf5   : > { %5063 = vmax.xlane.f32.xlu0 %v5062_v12  ;;  %v5092_v55 = vsel %vm1770_vm3, %v11763_v42, -inf  ;;  %v11827_v12 = vpop.permute.xlu0 %9679 }
 0xdf6   : > { %5069 = vmax.xlane.f32.xlu1 %v5068_v51 }
 0xdf7   : > { %v11769_v33 = vpop.f32.mrb[84].mxu1 }
 0xdf8   : > { %v11771_v13 = vpop.f32.mrb[84].mxu0  ;;  %v11773_v10 = vpop.f32.mrb[85].mxu1  ;;  %v5101_v6 = vsel %vm1770_vm3, %v11769_v33, -inf }
 0xdf9   : > { %v11777_v23 = vpop.f32.mrb[85].mxu0  ;;  %5072 = vmax.xlane.f32.xlu0 %v5071_v15  ;;  %v5098_v35 = vsel %vm1770_vm3, %v11773_v10, -inf  ;;  %v5113_v11 = vsel %vm1770_vm3, %v11771_v13, -inf }
 0xdfa   : > { %5093 = vmax.xlane.f32.xlu1 %v5092_v55  ;;  %v5110_v61 = vsel %vm1770_vm3, %v11777_v23, -inf }
 0xdfb   : > { %v11781_v62 = vpop.f32.mrb[86].mxu1 }
 0xdfc   : > { %v11783_v21 = vpop.f32.mrb[86].mxu0  ;;  %v11785_v28 = vpop.f32.mrb[87].mxu1  ;;  %v5107_v59 = vsel %vm1770_vm3, %v11781_v62, -inf }
 0xdfd   : > { %v11789_v5 = vpop.f32.mrb[87].mxu0  ;;  %5096 = vmax.xlane.f32.xlu0 %v5095_v0  ;;  %v5104_v36 = vsel %vm1770_vm3, %v11785_v28, -inf  ;;  %v5119_v22 = vsel %vm1770_vm3, %v11783_v21, -inf }
 0xdfe   : > { %5075 = vmax.xlane.f32.xlu1 %v5074_v56  ;;  %v5116_v25 = vsel %vm1770_vm3, %v11789_v5, -inf }
 0xe00   : > { %v11793_v20 = vpop.f32.mrb[88].mxu0 }
 0xe01   : > { %v11797_v18 = vpop.f32.mrb[89].mxu0  ;;  %5078 = vmax.xlane.f32.xlu0 %v5077_v14  ;;  %v5125_v45 = vsel %vm1770_vm3, %v11793_v20, -inf }
 0xe02   : > { %5099 = vmax.xlane.f32.xlu1 %v5098_v35  ;;  %v5122_v30 = vsel %vm1770_vm3, %v11797_v18, -inf }
 0xe04   : > { %v11801_v8 = vpop.f32.mrb[90].mxu0 }
 0xe05   : > { %v11805_v26 = vpop.f32.mrb[91].mxu0  ;;  %5102 = vmax.xlane.f32.xlu0 %v5101_v6 }
 0xe06   : > { %5081 = vmax.xlane.f32.xlu1 %v5080_v52 }
 0xe09   : > { %5084 = vmax.xlane.f32.xlu0 %v5083_v58 }
 0xe0a   : > { %5105 = vmax.xlane.f32.xlu1 %v5104_v36 }
 0xe0d   : > { %5108 = vmax.xlane.f32.xlu0 %v5107_v59 }
 0xe0e   : > { %5111 = vmax.xlane.f32.xlu1 %v5110_v61 }
 0xe11   : > { %5114 = vmax.xlane.f32.xlu0 %v5113_v11 }
 0xe12   : > { %5117 = vmax.xlane.f32.xlu1 %v5116_v25 }
 0xe15   : > { %5120 = vmax.xlane.f32.xlu0 %v5119_v22 }
 0xe16   : > { %5123 = vmax.xlane.f32.xlu1 %v5122_v30 }
 0xe19   : > { %5126 = vmax.xlane.f32.xlu0 %v5125_v45 }
 0xe29   : > { %v5043_v51 = vpop.xlane.xlu1 %5042 }
 0xe2a   : > { %v5135_v15 = vsub.f32 %v11703_v3, %v5043_v51  ;;  %v5040_v55 = vpop.xlane.xlu0 %5039 }
 0xe2b   : > { %v5134_v0 = vsub.f32 %v11705_v37, %v5040_v55 }
 0xe2c   : > { %v5168_v56 = vmul.f32 1.442695, %v5135_v15 }
 0xe2d   : > { %v5166_v14 = vmul.f32 1.442695, %v5134_v0 }
 0xe2e   : > { %9868 = vpow2.f32 %v5168_v56  ;;  %v5049_v35 = vpop.xlane.xlu0 %5048  ;;  %v5046_v6 = vpop.xlane.xlu1 %5045 }
 0xe2f   : > { %9870 = vpow2.f32 %v5166_v14  ;;  %v5137_v52 = vsub.f32 %v11711_v19, %v5049_v35 }
 0xe31   : > { %v5172_v58 = vmul.f32 1.442695, %v5137_v52 }
 0xe32   : > { %v5055_v36 = vpop.xlane.xlu0 %5054  ;;  %v5052_v59 = vpop.xlane.xlu1 %5051 }
 0xe33   : > { %v5139_v61 = vsub.f32 %v11719_v43, %v5055_v36  ;;  %9872 = vpow2.f32 %v5172_v58 }
 0xe35   : > { %v5176_v11 = vmul.f32 1.442695, %v5139_v61  ;;  %v5136_v61 = vsub.f32 %v11713_v24, %v5046_v6 }
 0xe36   : > { %v5061_v25 = vpop.xlane.xlu0 %5060  ;;  %v5058_v3 = vpop.xlane.xlu1 %5057 }
 0xe37   : > { %v5141_v22 = vsub.f32 %v11727_v48, %v5061_v25  ;;  %9874 = vpow2.f32 %v5176_v11  ;;  %v5140_v30 = vsub.f32 %v11729_v60, %v5058_v3  ;;  %v5131_v48 = vsel %vm1770_vm3, %v11801_v8, -inf }
 0xe38   : > { %v11834_v37 = vpop.eup %9868  ;;  %v5128_v60 = vsel %vm1770_vm3, %v11805_v26, -inf  ;;  %v5170_v11 = vmul.f32 1.442695, %v5136_v61  ;;  %v5138_v25 = vsub.f32 %v11721_v44, %v5052_v59 }
 0xe39   : > { %v11837_v45 = vpop.eup %9870  ;;  %v5180_v51 = vmul.f32 1.442695, %v5141_v22  ;;  %v5233_v19 = vsel %vm1770_vm3, %v11834_v37, 0.0  ;;  %v5178_v15 = vmul.f32 1.442695, %v5140_v30 }
 0xe3a   : > { %5234 = vadd.xlane.f32.xlu0 %v5233_v19  ;;  %v5230_v43 = vsel %vm1770_vm3, %v11837_v45, 0.0  ;;  %v5174_v3 = vmul.f32 1.442695, %v5138_v25 }
 0xe3b   : > { %5231 = vadd.xlane.f32.xlu1 %v5230_v43  ;;  %9876 = vpow2.f32 %v5180_v51 }
 0xe3c   : > { %9878 = vpow2.f32 %v5178_v15 }
 0xe3d   : > { %v11845_v55 = vpop.eup %9872  ;;  %9880 = vpow2.f32 %v5170_v11 }
 0xe3e   : > { %5132 = vmax.xlane.f32.xlu0 %v5131_v48  ;;  %v5239_v0 = vsel %vm1770_vm3, %v11845_v55, 0.0  ;;  %9882 = vpow2.f32 %v5174_v3 }
 0xe3f   : > { %5129 = vmax.xlane.f32.xlu1 %v5128_v60 }
 0xe41   : > { %v11851_v56 = vpop.eup %9874 }
 0xe42   : > { %5240 = vadd.xlane.f32.xlu0 %v5239_v0  ;;  %v5245_v14 = vsel %vm1770_vm3, %v11851_v56, 0.0 }
 0xe45   : > { %v11855_v35 = vpop.eup %9876 }
 0xe46   : > { %5246 = vadd.xlane.f32.xlu0 %v5245_v14  ;;  %v5251_v52 = vsel %vm1770_vm3, %v11855_v35, 0.0  ;;  %v11859_v58 = vpop.eup %9878 }
 0xe47   : > { %v5248_v36 = vsel %vm1770_vm3, %v11859_v58, 0.0  ;;  %v11868_v19 = vpop.eup %9880 }
 0xe48   : > { %v5236_v43 = vsel %vm1770_vm3, %v11868_v19, 0.0  ;;  %v11872_v15 = vpop.eup %9882 }
 0xe49   : > { %v5242_v44 = vsel %vm1770_vm3, %v11872_v15, 0.0 }
 0xe4a   : > { %5252 = vadd.xlane.f32.xlu0 %v5251_v52 }
 0xe4e   : > { %5249 = vadd.xlane.f32.xlu0 %v5248_v36 }
 0xe50   : > { %9684 = vrot.lane.b32.xlu1 %v11394_v53, %s12546_s2 }
 0xe66   : > { %v5067_v22 = vpop.xlane.xlu0 %5066 }
 0xe67   : > { %v5143_v30 = vsub.f32 %v11735_v16, %v5067_v22 }
 0xe69   : > { %v5184_v51 = vmul.f32 1.442695, %v5143_v30 }
 0xe6b   : > { %9884 = vpow2.f32 %v5184_v51 }
 0xe74   : > { %5237 = vadd.xlane.f32.xlu1 %v5236_v43 }
 0xe75   : > { %v11874_v53 = vpop.eup %9884 }
 0xe76   : > { %v5257_v24 = vsel %vm1770_vm3, %v11874_v53, 0.0 }
 0xe77   : > { %5258 = vadd.xlane.f32.xlu0 %v5257_v24 }
 0xe78   : > { %5243 = vadd.xlane.f32.xlu1 %v5242_v44 }
 0xe7e   : > { %v5091_v16 = vpop.xlane.xlu0 %5090 }
 0xe7f   : > { %v5151_v6 = vsub.f32 %v11753_v41, %v5091_v16  ;;  %v5088_v59 = vpop.xlane.xlu1 %5087 }
 0xe80   : > { %v5150_v48 = vsub.f32 %v11755_v54, %v5088_v59 }
 0xe81   : > { %v5200_v60 = vmul.f32 1.442695, %v5151_v6 }
 0xe82   : > { %v5198_v0 = vmul.f32 1.442695, %v5150_v48  ;;  %v5064_v14 = vpop.xlane.xlu0 %5063 }
 0xe83   : > { %9886 = vpow2.f32 %v5200_v60  ;;  %v5142_v52 = vsub.f32 %v11737_v7, %v5064_v14  ;;  %v5070_v36 = vpop.xlane.xlu1 %5069 }
 0xe84   : > { %9888 = vpow2.f32 %v5198_v0  ;;  %v5144_v41 = vsub.f32 %v11743_v49, %v5070_v36 }
 0xe85   : > { %v5182_v61 = vmul.f32 1.442695, %v5142_v52 }
 0xe86   : > { %v5073_v11 = vpop.xlane.xlu0 %5072  ;;  %v5186_v44 = vmul.f32 1.442695, %v5144_v41 }
 0xe87   : > { %9890 = vpow2.f32 %v5182_v61  ;;  %v5145_v25 = vsub.f32 %v11741_v32, %v5073_v11  ;;  %v5094_v3 = vpop.xlane.xlu1 %5093 }
 0xe88   : > { %v5152_v22 = vsub.f32 %v11763_v42, %v5094_v3 }
 0xe89   : > { %v5188_v30 = vmul.f32 1.442695, %v5145_v25 }
 0xe8a   : > { %v5202_v54 = vmul.f32 1.442695, %v5152_v22  ;;  %v5097_v51 = vpop.xlane.xlu0 %5096 }
 0xe8b   : > { %9892 = vpow2.f32 %v5188_v30  ;;  %v5153_v43 = vsub.f32 %v11761_v34, %v5097_v51  ;;  %v5076_v24 = vpop.xlane.xlu1 %5075 }
 0xe8c   : > { %9894 = vpow2.f32 %v5202_v54  ;;  %v5146_v0 = vsub.f32 %v11747_v31, %v5076_v24 }
 0xe8d   : > { %v11887_v7 = vpop.eup %9886  ;;  %v5204_v16 = vmul.f32 1.442695, %v5153_v43 }
 0xe8e   : > { %v11889_v6 = vpop.eup %9888  ;;  %v5079_v32 = vpop.xlane.xlu0 %5078  ;;  %v5281_v42 = vsel %vm1770_vm3, %v11887_v7, 0.0 }
 0xe8f   : > { %9896 = vpow2.f32 %v5204_v16  ;;  %v5147_v49 = vsub.f32 %v11745_v38, %v5079_v32  ;;  %v5100_v59 = vpop.xlane.xlu1 %5099  ;;  %5282 = vadd.xlane.f32.xlu1 %v5281_v42  ;;  %v5278_v34 = vsel %vm1770_vm3, %v11889_v6, 0.0 }
 0xe90   : > { %v5154_v48 = vsub.f32 %v11773_v10, %v5100_v59  ;;  %5279 = vadd.xlane.f32.xlu0 %v5278_v34  ;;  %9898 = vpow2.f32 %v5186_v44  ;;  %v5190_v10 = vmul.f32 1.442695, %v5146_v0 }
 0xe91   : > { %v11897_v60 = vpop.eup %9890  ;;  %v5192_v14 = vmul.f32 1.442695, %v5147_v49 }
 0xe92   : > { %v5206_v52 = vmul.f32 1.442695, %v5154_v48  ;;  %v5103_v36 = vpop.xlane.xlu0 %5102  ;;  %v5254_v61 = vsel %vm1770_vm3, %v11897_v60, 0.0 }
 0xe93   : > { %9900 = vpow2.f32 %v5192_v14  ;;  %v5155_v38 = vsub.f32 %v11769_v33, %v5103_v36  ;;  %v5082_v11 = vpop.xlane.xlu1 %5081  ;;  %5255 = vadd.xlane.f32.xlu1 %v5254_v61 }
 0xe94   : > { %9902 = vpow2.f32 %v5206_v52  ;;  %v5148_v22 = vsub.f32 %v11751_v50, %v5082_v11 }
 0xe95   : > { %v11903_v25 = vpop.eup %9892  ;;  %v5208_v3 = vmul.f32 1.442695, %v5155_v38 }
 0xe96   : > { %v5085_v41 = vpop.xlane.xlu0 %5084  ;;  %v5263_v31 = vsel %vm1770_vm3, %v11903_v25, 0.0  ;;  %v11908_v30 = vpop.eup %9894  ;;  %v5194_v43 = vmul.f32 1.442695, %v5148_v22 }
 0xe97   : > { %9904 = vpow2.f32 %v5208_v3  ;;  %v5149_v54 = vsub.f32 %v11749_v47, %v5085_v41  ;;  %v5106_v51 = vpop.xlane.xlu1 %5105  ;;  %5264 = vadd.xlane.f32.xlu0 %v5263_v31  ;;  %v5284_v50 = vsel %vm1770_vm3, %v11908_v30, 0.0 }
 0xe98   : > { %9906 = vpow2.f32 %v5190_v10  ;;  %v5156_v44 = vsub.f32 %v11785_v28, %v5106_v51 }
 0xe99   : > { %v11911_v33 = vpop.eup %9896  ;;  %v5196_v24 = vmul.f32 1.442695, %v5149_v54 }
 0xe9a   : > { %v5109_v16 = vpop.xlane.xlu0 %5108  ;;  %v5287_v32 = vsel %vm1770_vm3, %v11911_v33, 0.0  ;;  %v11918_v42 = vpop.eup %9898  ;;  %v5210_v34 = vmul.f32 1.442695, %v5156_v44 }
 0xe9b   : > { %9908 = vpow2.f32 %v5196_v24  ;;  %v5157_v47 = vsub.f32 %v11781_v62, %v5109_v16  ;;  %v5112_v49 = vpop.xlane.xlu1 %5111  ;;  %5285 = vadd.xlane.f32.xlu0 %v5284_v50  ;;  %5288 = vadd.xlane.f32.xlu1 %v5287_v32  ;;  %v5260_v14 = vsel %vm1770_vm3, %v11918_v42, 0.0 }
 0xe9c   : > { %9910 = vpow2.f32 %v5194_v43  ;;  %v5158_v61 = vsub.f32 %v11777_v23, %v5112_v49 }
 0xe9d   : > { %v11921_v59 = vpop.eup %9900  ;;  %v5212_v28 = vmul.f32 1.442695, %v5157_v47 }
 0xe9e   : > { %v5115_v48 = vpop.xlane.xlu0 %5114  ;;  %v5269_v0 = vsel %vm1770_vm3, %v11921_v59, 0.0  ;;  %v11927_v52 = vpop.eup %9902  ;;  %v5214_v23 = vmul.f32 1.442695, %v5158_v61 }
 0xe9f   : > { %9912 = vpow2.f32 %v5212_v28  ;;  %v5159_v62 = vsub.f32 %v11771_v13, %v5115_v48  ;;  %v5118_v36 = vpop.xlane.xlu1 %5117  ;;  %5270 = vadd.xlane.f32.xlu0 %v5269_v0  ;;  %5261 = vadd.xlane.f32.xlu1 %v5260_v14  ;;  %v5290_v22 = vsel %vm1770_vm3, %v11927_v52, 0.0 }
 0xea0   : > { %9914 = vpow2.f32 %v5210_v34  ;;  %v5160_v10 = vsub.f32 %v11789_v5, %v5118_v36 }
 0xea1   : > { %v11931_v38 = vpop.eup %9904  ;;  %v5216_v11 = vmul.f32 1.442695, %v5159_v62 }
 0xea2   : > { %v5121_v3 = vpop.xlane.xlu0 %5120  ;;  %v5293_v41 = vsel %vm1770_vm3, %v11931_v38, 0.0  ;;  %v11938_v31 = vpop.eup %9906  ;;  %v5218_v5 = vmul.f32 1.442695, %v5160_v10 }
 0xea3   : > { %v5161_v13 = vsub.f32 %v11783_v21, %v5121_v3  ;;  %v5124_v54 = vpop.xlane.xlu1 %5123  ;;  %5291 = vadd.xlane.f32.xlu0 %v5290_v22  ;;  %5294 = vadd.xlane.f32.xlu1 %v5293_v41  ;;  %9916 = vpow2.f32 %v5216_v11  ;;  %v5266_v50 = vsel %vm1770_vm3, %v11938_v31, 0.0 }
 0xea4   : > { %v5162_v51 = vsub.f32 %v11797_v18, %v5124_v54 }
 0xea5   : > { %v11942_v43 = vpop.eup %9908  ;;  %v5220_v24 = vmul.f32 1.442695, %v5161_v13 }
 0xea6   : > { %v5127_v44 = vpop.xlane.xlu0 %5126  ;;  %v5275_v16 = vsel %vm1770_vm3, %v11942_v43, 0.0  ;;  %v11948_v32 = vpop.eup %9910  ;;  %v5222_v18 = vmul.f32 1.442695, %v5162_v51 }
 0xea7   : > { %9918 = vpow2.f32 %v5220_v24  ;;  %v5163_v21 = vsub.f32 %v11793_v20, %v5127_v44  ;;  %5276 = vadd.xlane.f32.xlu0 %v5275_v16  ;;  %5267 = vadd.xlane.f32.xlu1 %v5266_v50  ;;  %v5272_v34 = vsel %vm1770_vm3, %v11948_v32, 0.0 }
 0xea8   : > { %9920 = vpow2.f32 %v5214_v23 }
 0xea9   : > { %v11951_v47 = vpop.eup %9912  ;;  %9922 = vpow2.f32 %v5218_v5  ;;  %v5224_v49 = vmul.f32 1.442695, %v5163_v21 }
 0xeaa   : > { %v5299_v28 = vsel %vm1770_vm3, %v11951_v47, 0.0  ;;  %v11957_v48 = vpop.eup %9914  ;;  %9924 = vpow2.f32 %v5222_v18 }
 0xeab   : > { %5273 = vadd.xlane.f32.xlu0 %v5272_v34  ;;  %5300 = vadd.xlane.f32.xlu1 %v5299_v28  ;;  %9926 = vpow2.f32 %v5224_v49  ;;  %v5296_v20 = vsel %vm1770_vm3, %v11957_v48, 0.0  ;;  %v9682_v34 = vunpack.i.h.bf16 %v11827_v12  ;;  %v9681_v28 = vunpack.i.l.bf16 %v11827_v12 }
 0xead   : > { %v11961_v0 = vpop.eup %9916 }
 0xeae   : > { %v5305_v36 = vsel %vm1770_vm3, %v11961_v0, 0.0 }
 0xeaf   : > { %5297 = vadd.xlane.f32.xlu0 %v5296_v20 }
 0xeb1   : > { %v11963_v14 = vpop.eup %9918 }
 0xeb2   : > { %v11965_v62 = vpop.eup %9920  ;;  %v5311_v61 = vsel %vm1770_vm3, %v11963_v14, 0.0 }
 0xeb3   : > { %v11971_v11 = vpop.eup %9922  ;;  %5306 = vadd.xlane.f32.xlu0 %v5305_v36  ;;  %5312 = vadd.xlane.f32.xlu1 %v5311_v61  ;;  %v5302_v3 = vsel %vm1770_vm3, %v11965_v62, 0.0 }
 0xeb4   : > { %v11973_v10 = vpop.eup %9924  ;;  %v5308_v22 = vsel %vm1770_vm3, %v11971_v11, 0.0 }
 0xeb5   : > { %v11979_v41 = vpop.eup %9926  ;;  %v5314_v13 = vsel %vm1770_vm3, %v11973_v10, 0.0 }
 0xeb6   : > { %v5317_v54 = vsel %vm1770_vm3, %v11979_v41, 0.0 }
 0xeb7   : > { %5303 = vadd.xlane.f32.xlu0 %v5302_v3  ;;  %5309 = vadd.xlane.f32.xlu1 %v5308_v22 }
 0xebb   : > { %5315 = vadd.xlane.f32.xlu0 %v5314_v13  ;;  %5318 = vadd.xlane.f32.xlu1 %v5317_v54 }
 0xec7   : > { %v5235_v23 = vpop.xlane.xlu0 %5234 }
 0xec8   : > { %9928 = vrcp.f32 %v5235_v23  ;;  %v5232_v51 = vpop.xlane.xlu1 %5231 }
 0xec9   : > { %9930 = vrcp.f32 %v5232_v51 }
 0xecb   : > { %v5133_v5 = vpop.xlane.xlu0 %5132 }
 0xecc   : > { %v5165_v24 = vsub.f32 %v11801_v8, %v5133_v5  ;;  %v5130_v44 = vpop.xlane.xlu1 %5129  ;;  %v9356_v8 = vpack.c.bf16 %v9682_v34, %v9681_v28 }
 0xecd   : > { %v5164_v16 = vsub.f32 %v11805_v26, %v5130_v44 }
 0xece   : > { %v5228_v50 = vmul.f32 1.442695, %v5165_v24 }
 0xecf   : > { %v5226_v21 = vmul.f32 1.442695, %v5164_v16 }
 0xed0   : > { %9932 = vpow2.f32 %v5228_v50  ;;  %v9685_v22 = vpop.permute.xlu1 %9684 }
 0xed1   : > { %9934 = vpow2.f32 %v5226_v21 }
 0xed2   : > { %v9929_v18 = vpop.eup %9928 }
 0xed3   : > { %v9931_v49 = vpop.eup %9930  ;;  %v5359_v36 = vmul.f32 %v9929_v18, %v11834_v37  ;;  %v5241_v37 = vpop.xlane.xlu0 %5240 }
 0xed4   : > { %v5358_v20 = vmul.f32 %v9931_v49, %v11837_v45  ;;  %9936 = vrcp.f32 %v5241_v37  ;;  %v9687_v37 = vunpack.i.h.bf16 %v9685_v22 }
 0xed6   : > { %8786 = vmatprep.mubr.msk.f32.mxu1 %vm1770_vm3, %v5358_v20 }
 0xed7   : > { %8787 = vmatmul.mubr.msk.f32.vlgmr.msra.gmra.mrb[88].mxu1 %vm1770_vm3, %v5359_v36 }
 0xed8   : > { %9355 = vmatpush3.bf16.msra.mxu1 %v11689_v27  ;;  %v5247_v27 = vpop.xlane.xlu0 %5246 }
 0xed9   : > { %9357 = vmatprep.subr.bf16.mxu1 %v9356_v8 }
 0xeda   : > { %v11994_v26 = vpop.eup %9932 }
 0xedb   : > { %v11996_v61 = vpop.eup %9934  ;;  %v5323_v3 = vsel %vm1770_vm3, %v11994_v26, 0.0 }
 0xedc   : > { %9359 = vmatpush3.bf16.msra.mxu1 %v9356_v8  ;;  %5324 = vadd.xlane.f32.xlu1 %v5323_v3  ;;  %v5320_v12 = vsel %vm1770_vm3, %v11996_v61, 0.0  ;;  %v5253_v45 = vpop.xlane.xlu0 %5252 }
 0xedd   : > { %5321 = vadd.xlane.f32.xlu0 %v5320_v12 }
 0xede   : > { %v9937_v51 = vpop.eup %9936 }
 0xedf   : > { %v5361_v44 = vmul.f32 %v9937_v51, %v11845_v55 }
 0xee0   : > { %v5250_v54 = vpop.xlane.xlu0 %5249 }
 0xeed   : > { %9694 = vrot.lane.b32.xlu1 %v11408_v46, %s12546_s2 }
 0xef1   : > { %9699 = vrot.lane.b32.xlu1 %v11422_v63, %s12545_s22 }
 0xef3   : > { %9689 = vrot.lane.b32.xlu0 %v11408_v46, %s12545_s22 }
 0xef5   : > { %9704 = vrot.lane.b32.xlu1 %v11422_v63, %s12546_s2 }
 0xf01   : > { %v5238_v13 = vpop.xlane.xlu1 %5237 }
 0xf02   : > { %9938 = vrcp.f32 %v5238_v13 }
 0xf03   : > { %9940 = vrcp.f32 %v5247_v27 }
 0xf04   : > { %9942 = vrcp.f32 %v5250_v54 }
 0xf05   : > { %v5244_v23 = vpop.xlane.xlu1 %5243 }
 0xf06   : > { %9944 = vrcp.f32 %v5244_v23 }
 0xf07   : > { %9946 = vrcp.f32 %v5253_v45 }
 0xf0c   : > { %v9939_v5 = vpop.eup %9938 }
 0xf0d   : > { %v5360_v24 = vmul.f32 %v9939_v5, %v11868_v19  ;;  %v9941_v46 = vpop.eup %9940  ;;  %v5259_v19 = vpop.xlane.xlu0 %5258 }
 0xf0e   : > { %v9943_v63 = vpop.eup %9942  ;;  %v5363_v21 = vmul.f32 %v9941_v46, %v11851_v56 }
 0xf0f   : > { %8789 = vmatprep.mubr.msk.f32.mxu1 %vm1770_vm3, %v5360_v24  ;;  %v5364_v49 = vmul.f32 %v9943_v63, %v11859_v58 }
 0xf10   : > { %v9945_v16 = vpop.eup %9944  ;;  %8790 = vmatmul.mubr.msk.f32.gmra.mrb[90].mxu1 %vm1770_vm3, %v5361_v44 }
 0xf11   : > { %v5362_v50 = vmul.f32 %v9945_v16, %v11872_v15  ;;  %v9947_v18 = vpop.eup %9946 }
 0xf12   : > { %v5365_v55 = vmul.f32 %v9947_v18, %v11855_v35  ;;  %v9686_v35 = vunpack.i.l.bf16 %v9685_v22 }
 0xf13   : > { %8792 = vmatprep.mubr.msk.f32.mxu1 %vm1770_vm3, %v5362_v50 }
 0xf14   : > { %8793 = vmatmul.mubr.msk.f32.gmra.mrb[92].mxu1 %vm1770_vm3, %v5363_v21  ;;  %v9372_v23 = vpack.c.bf16 %v9687_v37, %v9686_v35 }
 0xf15   : > { %8795 = vmatprep.mubr.msk.f32.mxu1 %vm1770_vm3, %v5364_v49 }
 0xf18   : > { %8796 = vmatmul.mubr.msk.f32.gmra.mrb[94].mxu1 %vm1770_vm3, %v5365_v55 }
 0xf1c   : > { %v12022_v34 = vpop.xlane.xlu1 %5282 }
 0xf1d   : > { %v5280_v28 = vpop.xlane.xlu0 %5279 }
 0xf1e   : > { %9948 = vrcp.f32 %v5280_v28 }
 0xf1f   : > { %9950 = vrcp.f32 %v5259_v19 }
 0xf20   : > { %v5256_v56 = vpop.xlane.xlu1 %5255 }
 0xf21   : > { %9952 = vrcp.f32 %v5256_v56 }
 0xf24   : > { %v5265_v15 = vpop.xlane.xlu0 %5264 }
 0xf25   : > { %9954 = vrcp.f32 %v5265_v15 }
 0xf28   : > { %v9949_v20 = vpop.eup %9948  ;;  %v5286_v36 = vpop.xlane.xlu0 %5285 }
 0xf29   : > { %v5289_v58 = vpop.xlane.xlu1 %5288  ;;  %v5374_v8 = vmul.f32 %v9949_v20, %v11889_v6  ;;  %v9951_v3 = vpop.eup %9950 }
 0xf2a   : > { %v5367_v54 = vmul.f32 %v9951_v3, %v11874_v53 }
 0xf2b   : > { %v9953_v12 = vpop.eup %9952  ;;  %8842 = vmatprep.mubr.msk.f32.mxu1 %vm1770_vm3, %v5374_v8 }
 0xf2c   : > { %v5271_v27 = vpop.xlane.xlu0 %5270  ;;  %v5366_v13 = vmul.f32 %v9953_v12, %v11897_v60 }
 0xf2d   : > { %v5262_v45 = vpop.xlane.xlu1 %5261 }
 0xf2e   : > { %9956 = vrcp.f32 %v5262_v45  ;;  %8814 = vmatprep.mubr.msk.f32.mxu0 %vm1770_vm3, %v5366_v13 }
 0xf2f   : > { %8815 = vmatmul.mubr.msk.f32.vlgmr.msra.gmra.mrb[92].mxu0 %vm1770_vm3, %v5367_v54  ;;  %9958 = vrcp.f32 %v5271_v27  ;;  %v9955_v60 = vpop.eup %9954 }
 0xf30   : > { %9371 = vmatpush3.bf16.msra.mxu0 %v11700_v40  ;;  %v5292_v6 = vpop.xlane.xlu0 %5291  ;;  %v5369_v44 = vmul.f32 %v9955_v60, %v11903_v25 }
 0xf31   : > { %v5295_v51 = vpop.xlane.xlu1 %5294  ;;  %9373 = vmatprep.subr.bf16.mxu0 %v9372_v23 }
 0xf34   : > { %9375 = vmatpush3.bf16.msra.mxu0 %v9372_v23  ;;  %v5277_v22 = vpop.xlane.xlu0 %5276 }
 0xf35   : > { %v5268_v5 = vpop.xlane.xlu1 %5267 }
 0xf36   : > { %9960 = vrcp.f32 %v5268_v5 }
 0xf37   : > { %9962 = vrcp.f32 %v5277_v22 }
 0xf38   : > { %v9957_v24 = vpop.eup %9956  ;;  %v5274_v53 = vpop.xlane.xlu0 %5273 }
 0xf39   : > { %9964 = vrcp.f32 %v5274_v53  ;;  %v5368_v46 = vmul.f32 %v9957_v24, %v11918_v42  ;;  %v9959_v63 = vpop.eup %9958 }
 0xf3a   : > { %v5371_v49 = vmul.f32 %v9959_v63, %v11921_v59  ;;  %v5301_v59 = vpop.xlane.xlu1 %5300 }
 0xf3b   : > { %8817 = vmatprep.mubr.msk.f32.mxu0 %vm1770_vm3, %v5368_v46 }
 0xf3c   : > { %8818 = vmatmul.mubr.msk.f32.gmra.mrb[94].mxu0 %vm1770_vm3, %v5369_v44  ;;  %v5298_v40 = vpop.xlane.xlu0 %5297 }
 0xf40   : > { %v9961_v16 = vpop.eup %9960  ;;  %v5307_v50 = vpop.xlane.xlu0 %5306 }
 0xf41   : > { %v5370_v21 = vmul.f32 %v9961_v16, %v11938_v31  ;;  %v9963_v18 = vpop.eup %9962  ;;  %v5313_v56 = vpop.xlane.xlu1 %5312 }
 0xf42   : > { %v5373_v19 = vmul.f32 %v9963_v18, %v11942_v43 }
 0xf43   : > { %v9965_v55 = vpop.eup %9964  ;;  %8820 = vmatprep.mubr.msk.f32.mxu0 %vm1770_vm3, %v5370_v21 }
 0xf44   : > { %8821 = vmatmul.mubr.msk.f32.gmra.mrb[96].mxu0 %vm1770_vm3, %v5371_v49  ;;  %v5304_v42 = vpop.xlane.xlu0 %5303  ;;  %v5372_v25 = vmul.f32 %v9965_v55, %v11948_v32 }
 0xf45   : > { %9966 = vrcp.f32 %v5304_v42  ;;  %v5310_v15 = vpop.xlane.xlu1 %5309 }
 0xf46   : > { %8823 = vmatprep.mubr.msk.f32.mxu0 %vm1770_vm3, %v5372_v25  ;;  %9968 = vrcp.f32 %v12022_v34 }
 0xf47   : > { %9970 = vrcp.f32 %v5286_v36 }
 0xf48   : > { %8824 = vmatmul.mubr.msk.f32.gmra.mrb[98].mxu0 %vm1770_vm3, %v5373_v19  ;;  %v5316_v8 = vpop.xlane.xlu0 %5315  ;;  %9972 = vrcp.f32 %v5289_v58 }
 0xf49   : > { %v5319_v20 = vpop.xlane.xlu1 %5318  ;;  %9974 = vrcp.f32 %v5307_v50 }
 0xf4a   : > { %9976 = vrcp.f32 %v5310_v15 }
 0xf4b   : > { %9978 = vrcp.f32 %v5292_v6  ;;  %v7581_v6 = vld [vmem:[%s12511_s7 + $0x20] sm:$0xff] }
 0xf4c   : > { %9980 = vrcp.f32 %v5295_v51 }
 0xf4d   : > { %9982 = vrcp.f32 %v5313_v56 }
 0xf4e   : > { %9984 = vrcp.f32 %v5316_v8 }
 0xf4f   : > { %v9967_v28 = vpop.eup %9966  ;;  %9986 = vrcp.f32 %v5298_v40 }
 0xf50   : > { %v5382_v31 = vmul.f32 %v9967_v28, %v11965_v62  ;;  %v9969_v58 = vpop.eup %9968  ;;  %9988 = vrcp.f32 %v5301_v59 }
 0xf51   : > { %v9971_v51 = vpop.eup %9970  ;;  %9990 = vrcp.f32 %v5319_v20  ;;  %v5375_v44 = vmul.f32 %v9969_v58, %v11887_v7 }
 0xf52   : > { %8870 = vmatprep.mubr.msk.f32.mxu0 %vm1770_vm3, %v5382_v31  ;;  %v9973_v24 = vpop.eup %9972  ;;  %v5376_v63 = vmul.f32 %v9971_v51, %v11908_v30  ;;  %v7582_v31 = vld [vmem:[%s12511_s7 + $0x28] sm:$0xff] }
 0xf53   : > { %v9975_v46 = vpop.eup %9974  ;;  %v5377_v49 = vmul.f32 %v9973_v24, %v11911_v33 }
 0xf54   : > { %v9977_v40 = vpop.eup %9976  ;;  %v5383_v21 = vmul.f32 %v9975_v46, %v11961_v0 }
 0xf55   : > { %v9979_v16 = vpop.eup %9978  ;;  %v5384_v7 = vmul.f32 %v9977_v40, %v11971_v11 }
 0xf56   : > { %v9981_v50 = vpop.eup %9980  ;;  %v5378_v30 = vmul.f32 %v9979_v16, %v11927_v52 }
 0xf57   : > { %v9983_v18 = vpop.eup %9982  ;;  %v5379_v33 = vmul.f32 %v9981_v50, %v11931_v38 }
 0xf58   : > { %v9985_v55 = vpop.eup %9984  ;;  %v5385_v0 = vmul.f32 %v9983_v18, %v11963_v14 }
 0xf59   : > { %v9987_v42 = vpop.eup %9986  ;;  %v5386_v11 = vmul.f32 %v9985_v55, %v11973_v10 }
 0xf5a   : > { %v9989_v25 = vpop.eup %9988  ;;  %v5380_v52 = vmul.f32 %v9987_v42, %v11957_v48 }
 0xf5b   : > { %v9991_v19 = vpop.eup %9990  ;;  %v5381_v10 = vmul.f32 %v9989_v25, %v11951_v47  ;;  %v7584_v47 = vld [vmem:[%s12511_s7 + $0x38] sm:$0xff] }
 0xf5c   : > { %v5387_v14 = vmul.f32 %v9991_v19, %v11979_v41  ;;  %v7583_v41 = vld [vmem:[%s12511_s7 + $0x30] sm:$0xff] }
 0xf69   : > { %v5325_v3 = vpop.xlane.xlu1 %5324 }
 0xf6a   : > { %v5322_v12 = vpop.xlane.xlu0 %5321 }
 0xf6b   : > { %9992 = vrcp.f32 %v5322_v12 }
 0xf6c   : > { %9994 = vrcp.f32 %v5325_v3 }
 0xf6d   : > { %v9695_v32 = vpop.permute.xlu1 %9694 }
 0xf6e   : > { %v9697_v43 = vunpack.i.h.bf16 %v9695_v32  ;;  %v9696_v37 = vunpack.i.l.bf16 %v9695_v32  ;;  %v9690_v35 = vpop.permute.xlu0 %9689 }
 0xf6f   : > { %v9692_v27 = vunpack.i.h.bf16 %v9690_v35  ;;  %v9691_v62 = vunpack.i.l.bf16 %v9690_v35 }
 0xf70   : > { %v9376_v45 = vpack.c.bf16 %v9697_v43, %v9696_v37 }
 0xf71   : > { %v9360_v13 = vpack.c.bf16 %v9692_v27, %v9691_v62  ;;  %v9700_v54 = vpop.permute.xlu1 %9699 }
 0xf72   : > { %v9702_v23 = vunpack.i.h.bf16 %v9700_v54  ;;  %v9701_v22 = vunpack.i.l.bf16 %v9700_v54  ;;  %9377 = vmatprep.subr.bf16.mxu0 %v9376_v45 }
 0xf73   : > { %9361 = vmatprep.subr.bf16.mxu1 %v9360_v13  ;;  %9379 = vmatpush3.bf16.msra.mxu0 %v9376_v45 }
 0xf74   : > { %v9364_v34 = vpack.c.bf16 %v9702_v23, %v9701_v22  ;;  %9363 = vmatpush3.bf16.msra.mxu1 %v9360_v13 }
 0xf75   : > { %v9705_v36 = vpop.permute.xlu1 %9704  ;;  %v9993_v28 = vpop.eup %9992 }
 0xf76   : > { %v9707_v5 = vunpack.i.h.bf16 %v9705_v36  ;;  %v9706_v60 = vunpack.i.l.bf16 %v9705_v36  ;;  %9365 = vmatprep.subr.bf16.mxu1 %v9364_v34  ;;  %v9995_v38 = vpop.eup %9994  ;;  %v5388_v59 = vmul.f32 %v9993_v28, %v11996_v61 }
 0xf77   : > { %v5389_v48 = vmul.f32 %v9995_v38, %v11994_v26 }
 0xf78   : > { %v9380_v53 = vpack.c.bf16 %v9707_v5, %v9706_v60  ;;  %9367 = vmatpush3.bf16.msra.mxu1 %v9364_v34 }
 0xf79   : > { %8882 = vmatprep.subr.mxu1 %v7581_v6 }
 0xf7a   : > { %9381 = vmatprep.subr.bf16.mxu0 %v9380_v53 }
 0xf7b   : > { %8843 = vmatmul.mubr.msk.f32.vlgmr.msra.gmra.mrb[96].mxu1 %vm1770_vm3, %v5375_v44  ;;  %9383 = vmatpush3.bf16.msra.mxu0 %v9380_v53 }
 0xf7c   : > { %8845 = vmatprep.mubr.msk.f32.mxu1 %vm1770_vm3, %v5376_v63  ;;  %8883 = vmatpush3.msra.mxu1 %v7581_v6 }
 0xf7d   : > { %8896 = vmatprep.subr.mxu0 %v7582_v31  ;;  %8910 = vmatprep.subr.mxu1 %v7583_v41 }
 0xf7e   : > { %8871 = vmatmul.mubr.msk.f32.vlgmr.msra.gmra.mrb[100].mxu0 %vm1770_vm3, %v5383_v21 }
 0xf7f   : > { %8846 = vmatmul.mubr.msk.f32.gmra.mrb[98].mxu1 %vm1770_vm3, %v5377_v49  ;;  %8873 = vmatprep.mubr.msk.f32.mxu0 %vm1770_vm3, %v5384_v7 }
 0xf80   : > { %8848 = vmatprep.mubr.msk.f32.mxu1 %vm1770_vm3, %v5378_v30  ;;  %8897 = vmatpush3.msra.mxu0 %v7582_v31 }
 0xf81   : > { %8924 = vmatprep.subr.mxu0 %v7584_v47 }
 0xf82   : > { %8874 = vmatmul.mubr.msk.f32.gmra.mrb[102].mxu0 %vm1770_vm3, %v5385_v0 }
 0xf83   : > { %8849 = vmatmul.mubr.msk.f32.gmra.mrb[100].mxu1 %vm1770_vm3, %v5379_v33  ;;  %8876 = vmatprep.mubr.msk.f32.mxu0 %vm1770_vm3, %v5386_v11 }
 0xf84   : > { %8851 = vmatprep.mubr.msk.f32.mxu1 %vm1770_vm3, %v5380_v52 }
 0xf86   : > { %8877 = vmatmul.mubr.msk.f32.gmra.mrb[104].mxu0 %vm1770_vm3, %v5387_v14 }
 0xf87   : > { %8852 = vmatmul.mubr.msk.f32.gmra.mrb[102].mxu1 %vm1770_vm3, %v5381_v10  ;;  %8879 = vmatprep.mubr.msk.f32.mxu0 %vm1770_vm3, %v5388_v59 }
 0xf8a   : > { %8880 = vmatmul.mubr.msk.f32.gmra.mrb[106].mxu0 %vm1770_vm3, %v5389_v48 }
 0xfaa   : > { %v8788_v61 = vpop.f32.mrb[88].mxu1 }
 0xfab   : > { %v5480_v56 = vpop.f32.mrb[89].mxu1 }
 0xfac   : > { %8884 = vmatprep.mubr.msk.f32.mxu1 %vm1141_vm1, %v5480_v56 }
 0xfad   : > { %8885 = vmatmul.mubr.msk.f32.vlgmr.msra.gmra.mrb[104].mxu1 %vm1141_vm1, %v8788_v61 }
 0xfae   : > { %8911 = vmatpush3.msra.mxu1 %v7583_v41 }
 0xfe3   : > { %v8791_v26 = vpop.f32.mrb[90].mxu1 }
 0xfe4   : > { %v5490_v15 = vpop.f32.mrb[91].mxu1 }
 0xfe5   : > { %8887 = vmatprep.mubr.msk.f32.mxu1 %vm1141_vm1, %v5490_v15 }
 0xfe6   : > { %8888 = vmatmul.mubr.msk.f32.gmra.mrb[106].mxu1 %vm1141_vm1, %v8791_v26 }
 0xfe7   : > { %v8794_v20 = vpop.f32.mrb[92].mxu1 }
 0xfe8   : > { %v5500_v8 = vpop.f32.mrb[93].mxu1 }
 0xfe9   : > { %8890 = vmatprep.mubr.msk.f32.mxu1 %vm1141_vm1, %v5500_v8 }
 0xfea   : > { %8891 = vmatmul.mubr.msk.f32.gmra.mrb[108].mxu1 %vm1141_vm1, %v8794_v20 }
 0xfeb   : > { %v8797_v3 = vpop.f32.mrb[94].mxu1 }
 0xfec   : > { %v5510_v12 = vpop.f32.mrb[95].mxu1 }
 0xfed   : > { %8893 = vmatprep.mubr.msk.f32.mxu1 %vm1141_vm1, %v5510_v12 }
 0xfee   : > { %8894 = vmatmul.mubr.msk.f32.gmra.mrb[110].mxu1 %vm1141_vm1, %v8797_v3 }
0x1002   : > { %v8816_v32 = vpop.f32.mrb[92].mxu0 }
0x1003   : > { %v5609_v43 = vpop.f32.mrb[93].mxu0 }
0x1004   : > { %8898 = vmatprep.mubr.msk.f32.mxu0 %vm1141_vm1, %v5609_v43 }
0x1005   : > { %8899 = vmatmul.mubr.msk.f32.vlgmr.msra.gmra.mrb[108].mxu0 %vm1141_vm1, %v8816_v32 }
0x1006   : > { %8925 = vmatpush3.msra.mxu0 %v7584_v47 }
0x100f   : > { %v8819_v37 = vpop.f32.mrb[94].mxu0 }
0x1010   : > { %v5619_v35 = vpop.f32.mrb[95].mxu0 }
0x1011   : > { %8901 = vmatprep.mubr.msk.f32.mxu0 %vm1141_vm1, %v5619_v35 }
0x1012   : > { %8902 = vmatmul.mubr.msk.f32.gmra.mrb[110].mxu0 %vm1141_vm1, %v8819_v37 }
0x1017   : > { %v8822_v27 = vpop.f32.mrb[96].mxu0 }
0x1018   : > { %v5629_v62 = vpop.f32.mrb[97].mxu0 }
0x1019   : > { %8904 = vmatprep.mubr.msk.f32.mxu0 %vm1141_vm1, %v5629_v62 }
0x101a   : > { %8905 = vmatmul.mubr.msk.f32.gmra.mrb[112].mxu0 %vm1141_vm1, %v8822_v27 }
0x101b   : > { %v8825_v45 = vpop.f32.mrb[98].mxu0 }
0x101c   : > { %v5639_v13 = vpop.f32.mrb[99].mxu0 }
0x101d   : > { %8907 = vmatprep.mubr.msk.f32.mxu0 %vm1141_vm1, %v5639_v13 }
0x101e   : > { %8908 = vmatmul.mubr.msk.f32.gmra.mrb[114].mxu0 %vm1141_vm1, %v8825_v45 }
0x104e   : > { %v8844_v54 = vpop.f32.mrb[96].mxu1 }
0x104f   : > { %v5738_v23 = vpop.f32.mrb[97].mxu1 }
0x1050   : > { %8912 = vmatprep.mubr.msk.f32.mxu1 %vm1141_vm1, %v5738_v23 }
0x1051   : > { %v8872_v22 = vpop.f32.mrb[100].mxu0  ;;  %8913 = vmatmul.mubr.msk.f32.vlgmr.msra.gmra.mrb[112].mxu1 %vm1141_vm1, %v8844_v54 }
0x1052   : > { %v8847_v34 = vpop.f32.mrb[98].mxu1  ;;  %v5867_v36 = vpop.f32.mrb[101].mxu0 }
0x1053   : > { %v5748_v58 = vpop.f32.mrb[99].mxu1  ;;  %8926 = vmatprep.mubr.msk.f32.mxu0 %vm1141_vm1, %v5867_v36 }
0x1054   : > { %8915 = vmatprep.mubr.msk.f32.mxu1 %vm1141_vm1, %v5748_v58  ;;  %8927 = vmatmul.mubr.msk.f32.vlgmr.msra.gmra.mrb[116].mxu0 %vm1141_vm1, %v8872_v22 }
0x1055   : > { %v8875_v5 = vpop.f32.mrb[102].mxu0  ;;  %8916 = vmatmul.mubr.msk.f32.gmra.mrb[114].mxu1 %vm1141_vm1, %v8847_v34 }
0x1056   : > { %v8850_v60 = vpop.f32.mrb[100].mxu1  ;;  %v5877_v6 = vpop.f32.mrb[103].mxu0 }
0x1057   : > { %v5758_v51 = vpop.f32.mrb[101].mxu1  ;;  %8929 = vmatprep.mubr.msk.f32.mxu0 %vm1141_vm1, %v5877_v6 }
0x1058   : > { %8918 = vmatprep.mubr.msk.f32.mxu1 %vm1141_vm1, %v5758_v51  ;;  %8930 = vmatmul.mubr.msk.f32.gmra.mrb[118].mxu0 %vm1141_vm1, %v8875_v5 }
0x1059   : > { %v8878_v24 = vpop.f32.mrb[104].mxu0  ;;  %8919 = vmatmul.mubr.msk.f32.gmra.mrb[116].mxu1 %vm1141_vm1, %v8850_v60  ;;  %v12139_v60 = vld [vmem:[%s12512_s8 + $0x1] ss:$0 sm:$0xff] }
0x105a   : > { %v8853_v53 = vpop.f32.mrb[102].mxu1  ;;  %v5887_v46 = vpop.f32.mrb[105].mxu0 }
0x105b   : > { %v5768_v44 = vpop.f32.mrb[103].mxu1  ;;  %8932 = vmatprep.mubr.msk.f32.mxu0 %vm1141_vm1, %v5887_v46 }
0x105c   : > { %8921 = vmatprep.mubr.msk.f32.mxu1 %vm1141_vm1, %v5768_v44  ;;  %8933 = vmatmul.mubr.msk.f32.gmra.mrb[120].mxu0 %vm1141_vm1, %v8878_v24 }
0x105d   : > { %v8881_v40 = vpop.f32.mrb[106].mxu0  ;;  %8922 = vmatmul.mubr.msk.f32.gmra.mrb[118].mxu1 %vm1141_vm1, %v8853_v53 }
0x105e   : > { %v5897_v63 = vpop.f32.mrb[107].mxu0 }
0x105f   : > { %8935 = vmatprep.mubr.msk.f32.mxu0 %vm1141_vm1, %v5897_v63 }
0x1060   : > { %8936 = vmatmul.mubr.msk.f32.gmra.mrb[122].mxu0 %vm1141_vm1, %v8881_v40 }
0x1080   : > { %v8886_v16 = vpop.f32.mrb[104].mxu1 }
0x1081   : > { %v5996_v50 = vpop.f32.mrb[105].mxu1  ;;  %v6429_v25 = vsel %vm668_vm0, %v8886_v16, 0.0 }
0x1082   : > { %v6422_v33 = vsel %vm668_vm0, %v5996_v50, 0.0 }
0x10b9   : > { %v8889_v21 = vpop.f32.mrb[106].mxu1 }
0x10ba   : > { %v6006_v18 = vpop.f32.mrb[107].mxu1  ;;  %v6443_v14 = vsel %vm668_vm0, %v8889_v21, 0.0 }
0x10bb   : > { %v6436_v59 = vsel %vm668_vm0, %v6006_v18, 0.0 }
0x10bd   : > { %v8892_v49 = vpop.f32.mrb[108].mxu1 }
0x10be   : > { %v6016_v7 = vpop.f32.mrb[109].mxu1  ;;  %v6457_v56 = vsel %vm668_vm0, %v8892_v49, 0.0 }
0x10bf   : > { %v6450_v20 = vsel %vm668_vm0, %v6016_v7, 0.0 }
0x10c1   : > { %v8895_v55 = vpop.f32.mrb[110].mxu1 }
0x10c2   : > { %v6026_v30 = vpop.f32.mrb[111].mxu1  ;;  %v6471_v43 = vsel %vm668_vm0, %v8895_v55, 0.0 }
0x10c3   : > { %v6464_v27 = vsel %vm668_vm0, %v6026_v30, 0.0 }
0x10d8   : > { %v8900_v42 = vpop.f32.mrb[108].mxu0 }
0x10d9   : > { %v6430_v0 = vsel %vm668_vm0, %v8900_v42, 0.0  ;;  %v6125_v19 = vpop.f32.mrb[109].mxu0 }
0x10da   : > { %v6431_v11 = vadd.f32 %v6430_v0, %v6429_v25  ;;  %v6423_v28 = vsel %vm668_vm0, %v6125_v19, 0.0 }
0x10db   : > { %v6424_v52 = vadd.f32 %v6423_v28, %v6422_v33 }
0x10e5   : > { %v8903_v31 = vpop.f32.mrb[110].mxu0 }
0x10e6   : > { %v6444_v38 = vsel %vm668_vm0, %v8903_v31, 0.0  ;;  %v6135_v10 = vpop.f32.mrb[111].mxu0 }
0x10e7   : > { %v6445_v48 = vadd.f32 %v6444_v38, %v6443_v14  ;;  %v6437_v41 = vsel %vm668_vm0, %v6135_v10, 0.0 }
0x10e8   : > { %v6438_v47 = vadd.f32 %v6437_v41, %v6436_v59 }
0x10ed   : > { %v8906_v61 = vpop.f32.mrb[112].mxu0 }
0x10ee   : > { %v6458_v26 = vsel %vm668_vm0, %v8906_v61, 0.0  ;;  %v6145_v15 = vpop.f32.mrb[113].mxu0 }
0x10ef   : > { %v6459_v8 = vadd.f32 %v6458_v26, %v6457_v56  ;;  %v6451_v3 = vsel %vm668_vm0, %v6145_v15, 0.0 }
0x10f0   : > { %v6452_v12 = vadd.f32 %v6451_v3, %v6450_v20 }
0x10f1   : > { %v8909_v32 = vpop.f32.mrb[114].mxu0 }
0x10f2   : > { %v6472_v37 = vsel %vm668_vm0, %v8909_v32, 0.0  ;;  %v6155_v35 = vpop.f32.mrb[115].mxu0 }
0x10f3   : > { %v6473_v62 = vadd.f32 %v6472_v37, %v6471_v43  ;;  %v6465_v45 = vsel %vm668_vm0, %v6155_v35, 0.0 }
0x10f4   : > { %v6466_v13 = vadd.f32 %v6465_v45, %v6464_v27 }
0x1124   : > { %v8914_v54 = vpop.f32.mrb[112].mxu1 }
0x1125   : > { %v6432_v23 = vsel %vm668_vm0, %v8914_v54, 0.0  ;;  %v6254_v22 = vpop.f32.mrb[113].mxu1 }
0x1126   : > { %v6433_v34 = vadd.f32 %v6432_v23, %v6431_v11  ;;  %v6425_v36 = vsel %vm668_vm0, %v6254_v22, 0.0 }
0x1127   : > { %v6426_v58 = vadd.f32 %v6425_v36, %v6424_v52  ;;  %v8928_v5 = vpop.f32.mrb[116].mxu0 }
0x1128   : > { %v6434_v6 = vsel %vm668_vm0, %v8928_v5, 0.0  ;;  %v8917_v51 = vpop.f32.mrb[114].mxu1  ;;  %v6383_v24 = vpop.f32.mrb[117].mxu0 }
0x1129   : > { %v6435_v53 = vadd.f32 %v6434_v6, %v6433_v34  ;;  %v6446_v46 = vsel %vm668_vm0, %v8917_v51, 0.0  ;;  %v6427_v44 = vsel %vm668_vm0, %v6383_v24, 0.0  ;;  %v6264_v40 = vpop.f32.mrb[115].mxu1 }
0x112a   : > { %v6447_v63 = vadd.f32 %v6446_v46, %v6445_v48  ;;  %v6428_v16 = vadd.f32 %v6427_v44, %v6426_v58  ;;  %v6439_v50 = vsel %vm668_vm0, %v6264_v40, 0.0 }
0x112b   : > { %v6485_v21 = vadd.f32 %v12139_v60, %v6435_v53  ;;  %v6440_v18 = vadd.f32 %v6439_v50, %v6438_v47  ;;  %v8931_v49 = vpop.f32.mrb[118].mxu0 }
0x112c   : > { %v6484_v7 = vadd.f32 %v12139_v60, %v6428_v16  ;;  %v6448_v55 = vsel %vm668_vm0, %v8931_v49, 0.0  ;;  %v8920_v30 = vpop.f32.mrb[116].mxu1  ;;  %v6393_v42 = vpop.f32.mrb[119].mxu0 }
0x112d   : > { %v6449_v25 = vadd.f32 %v6448_v55, %v6447_v63  ;;  %v6460_v0 = vsel %vm668_vm0, %v8920_v30, 0.0  ;;  %v6441_v19 = vsel %vm668_vm0, %v6393_v42, 0.0  ;;  %v6274_v33 = vpop.f32.mrb[117].mxu1  ;;  %v6493_v11 = vadd.f32 %v6485_v21, %v11313_v57 }
0x112e   : > { %v6461_v28 = vadd.f32 %v6460_v0, %v6459_v8  ;;  %v6442_v52 = vadd.f32 %v6441_v19, %v6440_v18  ;;  %v6453_v31 = vsel %vm668_vm0, %v6274_v33, 0.0  ;;  %v6492_v14 = vadd.f32 %v6484_v7, %v11317_v1 }
0x112f   : > { %v6487_v38 = vadd.f32 %v12139_v60, %v6449_v25  ;;  %v6454_v10 = vadd.f32 %v6453_v31, %v6452_v12  ;;  %v8934_v59 = vpop.f32.mrb[120].mxu0  ;;  %v6507_v48 = vsel %vm668_vm0, %v6493_v11, 0.0 }
0x1130   : > { %v6486_v41 = vadd.f32 %v12139_v60, %v6442_v52  ;;  %v6462_v47 = vsel %vm668_vm0, %v8934_v59, 0.0  ;;  %v8923_v61 = vpop.f32.mrb[118].mxu1  ;;  %6508 = vadd.xlane.f32.xlu0 %v6507_v48  ;;  %v6403_v56 = vpop.f32.mrb[121].mxu0  ;;  %v6504_v57 = vsel %vm668_vm0, %v6492_v14, 0.0 }
0x1131   : > { %v6463_v26 = vadd.f32 %v6462_v47, %v6461_v28  ;;  %v6474_v15 = vsel %vm668_vm0, %v8923_v61, 0.0  ;;  %v6455_v1 = vsel %vm668_vm0, %v6403_v56, 0.0  ;;  %v6284_v20 = vpop.f32.mrb[119].mxu1  ;;  %6505 = vadd.xlane.f32.xlu1 %v6504_v57  ;;  %v6495_v8 = vadd.f32 %v6487_v38, %v11331_v2 }
0x1132   : > { %v6475_v3 = vadd.f32 %v6474_v15, %v6473_v62  ;;  %v6456_v12 = vadd.f32 %v6455_v1, %v6454_v10  ;;  %v6467_v32 = vsel %vm668_vm0, %v6284_v20, 0.0  ;;  %v6494_v43 = vadd.f32 %v6486_v41, %v11335_v39 }
0x1133   : > { %v6489_v37 = vadd.f32 %v12139_v60, %v6463_v26  ;;  %v6468_v35 = vadd.f32 %v6467_v32, %v6466_v13  ;;  %v8937_v27 = vpop.f32.mrb[122].mxu0  ;;  %v6513_v45 = vsel %vm668_vm0, %v6495_v8, 0.0  ;;  %v7738_v32 = vld [vmem:[%s12513_s9 + $0x28] sm:$0xff] }
0x1134   : > { %v6488_v54 = vadd.f32 %v12139_v60, %v6456_v12  ;;  %v6476_v23 = vsel %vm668_vm0, %v8937_v27, 0.0  ;;  %6514 = vadd.xlane.f32.xlu0 %v6513_v45  ;;  %v6413_v22 = vpop.f32.mrb[123].mxu0  ;;  %v6510_v2 = vsel %vm668_vm0, %v6494_v43, 0.0  ;;  %v7737_v12 = vld [vmem:[%s12513_s9 + $0x20] sm:$0xff] }
0x1135   : > { %v6477_v62 = vadd.f32 %v6476_v23, %v6475_v3  ;;  %v6469_v34 = vsel %vm668_vm0, %v6413_v22, 0.0  ;;  %6511 = vadd.xlane.f32.xlu1 %v6510_v2  ;;  %v6497_v39 = vadd.f32 %v11348_v9, %v6489_v37  ;;  %v7739_v37 = vld [vmem:[%s12513_s9 + $0x30] sm:$0xff]  ;;  %v7751_v45 = vld [vmem:[%s12515_s11 + $0x40] sm:$0xff]  ;;  %v7754_v2 = vld [vmem:[%s12515_s11 + $0x58] sm:$0xff] }
0x1136   : > { %v6470_v36 = vadd.f32 %v6469_v34, %v6468_v35  ;;  %v6496_v13 = vadd.f32 %v6488_v54, %v11350_v29  ;;  %v7740_v35 = vld [vmem:[%s12513_s9 + $0x38] sm:$0xff]  ;;  %v7752_v54 = vld [vmem:[%s12515_s11 + $0x48] sm:$0xff]  ;;  %v7753_v23 = vld [vmem:[%s12515_s11 + $0x50] sm:$0xff] }
0x1137   : > { %v6491_v58 = vadd.f32 %v12139_v60, %v6477_v62  ;;  %v6519_v5 = vsel %vm668_vm0, %v6497_v39, 0.0  ;;  %v9388_v27 = vpack.c.bf16 %v7740_v35, %v7739_v37  ;;  %v9392_v22 = vpack.c.bf16 %v7752_v54, %v7751_v45  ;;  %v7755_v34 = vld [vmem:[%s12515_s11 + $0x60] sm:$0xff] }
0x1138   : > { %v6490_v6 = vadd.f32 %v12139_v60, %v6470_v36  ;;  %6520 = vadd.xlane.f32.xlu0 %v6519_v5  ;;  %v6516_v51 = vsel %vm668_vm0, %v6496_v13, 0.0  ;;  %v9396_v62 = vpack.c.bf16 %v7754_v2, %v7753_v23 }
0x1139   : > { %6517 = vadd.xlane.f32.xlu1 %v6516_v51  ;;  %v6499_v24 = vadd.f32 %v11360_v4, %v6491_v58  ;;  %9393 = vmatprep.subr.bf16.mxu0 %v9392_v22 }
0x113a   : > { %v6498_v53 = vadd.f32 %v6490_v6, %v11365_v17  ;;  %9395 = vmatpush3.bf16.msra.mxu0 %v9392_v22 }
0x113b   : > { %v6525_v46 = vsel %vm668_vm0, %v6499_v24, 0.0  ;;  %9397 = vmatprep.subr.bf16.mxu0 %v9396_v62 }
0x113c   : > { %6526 = vadd.xlane.f32.xlu0 %v6525_v46  ;;  %v6522_v9 = vsel %vm668_vm0, %v6498_v53, 0.0 }
0x113d   : > { %6523 = vadd.xlane.f32.xlu1 %v6522_v9 }
0x113e   : > { %9399 = vmatpush3.bf16.msra.mxu0 %v9396_v62 }
0x11bd   : > { %v6509_v29 = vpop.xlane.xlu0 %6508 }
0x11be   : > { %v6529_v44 = vmul.f32 0.03125, %v6509_v29  ;;  %v6506_v40 = vpop.xlane.xlu1 %6505 }
0x11bf   : > { %v6528_v63 = vmul.f32 0.03125, %v6506_v40 }
0x11c0   : > { %v12179_v16 = vsub.f32 %v6493_v11, %v6529_v44 }
0x11c1   : > { %v12181_v60 = vsub.f32 %v6492_v14, %v6528_v63  ;;  %v6515_v50 = vpop.xlane.xlu0 %6514 }
0x11c2   : > { %v6531_v21 = vmul.f32 0.03125, %v6515_v50  ;;  %v6512_v18 = vpop.xlane.xlu1 %6511  ;;  %v6545_v4 = vmul.f32 %v12179_v16, %v12179_v16 }
0x11c3   : > { %v6530_v17 = vmul.f32 0.03125, %v6512_v18  ;;  %v6544_v49 = vmul.f32 %v12181_v60, %v12181_v60 }
0x11c4   : > { %v12187_v7 = vsub.f32 %v6495_v8, %v6531_v21  ;;  %v6555_v55 = vsel %vm668_vm0, %v6545_v4, 0.0 }
0x11c5   : > { %v12190_v30 = vsub.f32 %v6494_v43, %v6530_v17  ;;  %v6521_v42 = vpop.xlane.xlu0 %6520  ;;  %6556 = vadd.xlane.f32.xlu0 %v6555_v55  ;;  %v6552_v25 = vsel %vm668_vm0, %v6544_v49, 0.0  ;;  %v9384_v43 = vpack.c.bf16 %v7738_v32, %v7737_v12 }
0x11c6   : > { %v6533_v0 = vmul.f32 0.03125, %v6521_v42  ;;  %v6518_v19 = vpop.xlane.xlu1 %6517  ;;  %6553 = vadd.xlane.f32.xlu1 %v6552_v25  ;;  %v6547_v33 = vmul.f32 %v12187_v7, %v12187_v7 }
0x11c7   : > { %v6532_v11 = vmul.f32 0.03125, %v6518_v19  ;;  %v6546_v28 = vmul.f32 %v12190_v30, %v12190_v30  ;;  %9385 = vmatprep.subr.bf16.mxu1 %v9384_v43  ;;  %v7735_v19 = vld [vmem:[%s12517_s13 + $0x1] ss:$0 sm:$0xff] }
0x11c8   : > { %v12197_v52 = vsub.f32 %v6497_v39, %v6533_v0  ;;  %v6561_v31 = vsel %vm668_vm0, %v6547_v33, 0.0  ;;  %9387 = vmatpush3.bf16.msra.mxu1 %v9384_v43  ;;  %v7756_v39 = vld [vmem:[%s12515_s11 + $0x68] sm:$0xff] }
0x11c9   : > { %v12200_v14 = vsub.f32 %v6496_v13, %v6532_v11  ;;  %6562 = vadd.xlane.f32.xlu0 %v6561_v31  ;;  %v6527_v38 = vpop.xlane.xlu0 %6526  ;;  %v6558_v10 = vsel %vm668_vm0, %v6546_v28, 0.0  ;;  %9389 = vmatprep.subr.bf16.mxu1 %v9388_v27  ;;  %v9400_v36 = vpack.c.bf16 %v7756_v39, %v7755_v34  ;;  %v7742_v34 = vld [vmem:[%s12514_s10 + $0x1] ss:$0 sm:$0xff] }
0x11ca   : > { %v6535_v59 = vmul.f32 0.03125, %v6527_v38  ;;  %6559 = vadd.xlane.f32.xlu1 %v6558_v10  ;;  %v6524_v48 = vpop.xlane.xlu1 %6523  ;;  %v6549_v41 = vmul.f32 %v12197_v52, %v12197_v52  ;;  %v7736_v10 = vld [vmem:[%s12518_s14 + $0x1] ss:$0 sm:$0xff] }
0x11cb   : > { %v6534_v47 = vmul.f32 0.03125, %v6524_v48  ;;  %v6548_v61 = vmul.f32 %v12200_v14, %v12200_v14  ;;  %9401 = vmatprep.subr.bf16.mxu0 %v9400_v36 }
0x11cc   : > { %v12207_v56 = vsub.f32 %v6499_v24, %v6535_v59  ;;  %v6567_v57 = vsel %vm668_vm0, %v6549_v41, 0.0  ;;  %9391 = vmatpush3.bf16.msra.mxu1 %v9388_v27  ;;  %9403 = vmatpush3.bf16.msra.mxu0 %v9400_v36 }
0x11cd   : > { %v12210_v26 = vsub.f32 %v6498_v53, %v6534_v47  ;;  %6568 = vadd.xlane.f32.xlu0 %v6567_v57  ;;  %v6564_v15 = vsel %vm668_vm0, %v6548_v61, 0.0 }
0x11ce   : > { %6565 = vadd.xlane.f32.xlu1 %v6564_v15  ;;  %v6551_v1 = vmul.f32 %v12207_v56, %v12207_v56 }
0x11cf   : > { %v6550_v20 = vmul.f32 %v12210_v26, %v12210_v26 }
0x11d0   : > { %v6573_v8 = vsel %vm668_vm0, %v6551_v1, 0.0 }
0x11d1   : > { %6574 = vadd.xlane.f32.xlu0 %v6573_v8  ;;  %v6570_v3 = vsel %vm668_vm0, %v6550_v20, 0.0 }
0x11d2   : > { %6571 = vadd.xlane.f32.xlu1 %v6570_v3 }
0x1252   : > { %v6557_v13 = vpop.xlane.xlu0 %6556 }
0x1253   : > { %v6577_v58 = vmul.f32 0.03125, %v6557_v13  ;;  %v6554_v5 = vpop.xlane.xlu1 %6553 }
0x1254   : > { %v6576_v6 = vmul.f32 0.03125, %v6554_v5 }
0x1255   : > { %v6585_v51 = vadd.f32 1e-05, %v6577_v58 }
0x1256   : > { %v6584_v24 = vadd.f32 1e-05, %v6576_v6  ;;  %v6563_v53 = vpop.xlane.xlu0 %6562 }
0x1257   : > { %9996 = vrsqrt.f32 %v6585_v51  ;;  %v6579_v46 = vmul.f32 0.03125, %v6563_v53  ;;  %v6560_v9 = vpop.xlane.xlu1 %6559 }
0x1258   : > { %9998 = vrsqrt.f32 %v6584_v24  ;;  %v6578_v29 = vmul.f32 0.03125, %v6560_v9 }
0x1259   : > { %v6587_v44 = vadd.f32 1e-05, %v6579_v46 }
0x125a   : > { %v6586_v40 = vadd.f32 1e-05, %v6578_v29  ;;  %v6569_v63 = vpop.xlane.xlu0 %6568 }
0x125b   : > { %10000 = vrsqrt.f32 %v6587_v44  ;;  %v6581_v50 = vmul.f32 0.03125, %v6569_v63  ;;  %v6566_v21 = vpop.xlane.xlu1 %6565 }
0x125c   : > { %10002 = vrsqrt.f32 %v6586_v40  ;;  %v6580_v18 = vmul.f32 0.03125, %v6566_v21 }
0x125d   : > { %v6589_v4 = vadd.f32 1e-05, %v6581_v50 }
0x125e   : > { %v6588_v17 = vadd.f32 1e-05, %v6580_v18  ;;  %v6575_v49 = vpop.xlane.xlu0 %6574 }
0x125f   : > { %10004 = vrsqrt.f32 %v6589_v4  ;;  %v6583_v55 = vmul.f32 0.03125, %v6575_v49  ;;  %v6572_v42 = vpop.xlane.xlu1 %6571 }
0x1260   : > { %10006 = vrsqrt.f32 %v6588_v17  ;;  %v6582_v25 = vmul.f32 0.03125, %v6572_v42 }
0x1261   : > { %v9997_v0 = vpop.eup %9996  ;;  %v6591_v33 = vadd.f32 1e-05, %v6583_v55 }
0x1262   : > { %v9999_v11 = vpop.eup %9998  ;;  %v6601_v28 = vmul.f32 %v9997_v0, %v12179_v16  ;;  %v6590_v31 = vadd.f32 1e-05, %v6582_v25  ;;  %v7760_v0 = vld [vmem:[%s12516_s12 + $0x1] ss:$0 sm:$0xff] }
0x1263   : > { %10008 = vrsqrt.f32 %v6591_v33  ;;  %v6600_v38 = vmul.f32 %v9999_v11, %v12181_v60 }
0x1264   : > { %v6615_v59 = vmul.f32 %v7735_v19, %v6601_v28  ;;  %10010 = vrsqrt.f32 %v6590_v31 }
0x1265   : > { %v10001_v48 = vpop.eup %10000  ;;  %v6614_v41 = vmul.f32 %v7735_v19, %v6600_v38 }
0x1266   : > { %v10003_v47 = vpop.eup %10002  ;;  %v6603_v61 = vmul.f32 %v10001_v48, %v12187_v7  ;;  %v12261_v16 = vadd.f32 %v7736_v10, %v6615_v59 }
0x1267   : > { %v12258_v57 = vadd.f32 %v7736_v10, %v6614_v41  ;;  %v6602_v15 = vmul.f32 %v10003_v47, %v12190_v30 }
0x1268   : > { %v6617_v1 = vmul.f32 %v7735_v19, %v6603_v61 }
0x1269   : > { %v10005_v20 = vpop.eup %10004  ;;  %8946 = vmatprep.mubr.msk.f32.mxu1 %vm668_vm0, %v12258_v57  ;;  %v6616_v60 = vmul.f32 %v7735_v19, %v6602_v15 }
0x126a   : > { %v10007_v8 = vpop.eup %10006  ;;  %8947 = vmatmul.mubr.msk.f32.vlgmr.msra.gmra.mrb[120].mxu1 %vm668_vm0, %v12261_v16  ;;  %v6605_v3 = vmul.f32 %v10005_v20, %v12197_v52  ;;  %v12271_v32 = vadd.f32 %v7736_v10, %v6617_v1 }
0x126b   : > { %v12268_v12 = vadd.f32 %v7736_v10, %v6616_v60  ;;  %v6604_v7 = vmul.f32 %v10007_v8, %v12200_v14 }
0x126c   : > { %v6619_v30 = vmul.f32 %v7735_v19, %v6605_v3 }
0x126d   : > { %v10009_v43 = vpop.eup %10008  ;;  %8949 = vmatprep.mubr.msk.f32.mxu1 %vm668_vm0, %v12268_v12  ;;  %v6618_v37 = vmul.f32 %v7735_v19, %v6604_v7 }
0x126e   : > { %v10011_v35 = vpop.eup %10010  ;;  %8950 = vmatmul.mubr.msk.f32.gmra.mrb[122].mxu1 %vm668_vm0, %v12271_v32  ;;  %v6607_v27 = vmul.f32 %v10009_v43, %v12207_v56  ;;  %v6633_v54 = vadd.f32 %v7736_v10, %v6619_v30  ;;  %v7757_v56 = vld [vmem:[%s12515_s11 + $0x70] sm:$0xff] }
0x126f   : > { %v12278_v45 = vadd.f32 %v7736_v10, %v6618_v37  ;;  %v6606_v52 = vmul.f32 %v10011_v35, %v12210_v26  ;;  %v7758_v26 = vld [vmem:[%s12515_s11 + $0x78] sm:$0xff] }
0x1270   : > { %v6621_v14 = vmul.f32 %v7735_v19, %v6607_v27  ;;  %v9404_v62 = vpack.c.bf16 %v7758_v26, %v7757_v56 }
0x1271   : > { %8952 = vmatprep.mubr.msk.f32.mxu1 %vm668_vm0, %v12278_v45  ;;  %v6620_v23 = vmul.f32 %v7735_v19, %v6606_v52 }
0x1272   : > { %8953 = vmatmul.mubr.msk.f32.gmra.mrb[124].mxu1 %vm668_vm0, %v6633_v54  ;;  %v12286_v2 = vadd.f32 %v7736_v10, %v6621_v14  ;;  %9405 = vmatprep.subr.bf16.mxu0 %v9404_v62 }
0x1273   : > { %v12284_v22 = vadd.f32 %v7736_v10, %v6620_v23  ;;  %9407 = vmatpush3.bf16.msra.mxu0 %v9404_v62 }
0x1275   : > { %8955 = vmatprep.mubr.msk.f32.mxu1 %vm668_vm0, %v12284_v22 }
0x1276   : > { %8956 = vmatmul.mubr.msk.f32.gmra.mrb[126].mxu1 %vm668_vm0, %v12286_v2 }
0x133d   : > { %v8948_v39 = vpop.f32.mrb[120].mxu1 }
0x133e   : > { %v6745_v36 = vadd.f32 %v8948_v39, %v7742_v34  ;;  %v6739_v13 = vpop.f32.mrb[121].mxu1 }
0x133f   : > { %v6740_v58 = vadd.f32 %v7742_v34, %v6739_v13 }
0x1340   : > { %v6779_v51 = vmax.f32 %v6745_v36, 0.0 }
0x1341   : > { %v6778_v5 = vmax.f32 %v6740_v58, 0.0  ;;  %v8951_v6 = vpop.f32.mrb[122].mxu1 }
0x1342   : > { %v6755_v24 = vadd.f32 %v8951_v6, %v7742_v34  ;;  %v6749_v53 = vpop.f32.mrb[123].mxu1 }
0x1343   : > { %v6750_v46 = vadd.f32 %v7742_v34, %v6749_v53  ;;  %8974 = vmatprep.mubr.msk.f32.mxu0 %vm1770_vm3, %v6778_v5 }
0x1344   : > { %8975 = vmatmul.mubr.msk.f32.vlgmr.msra.gmra.mrb[124].mxu0 %vm1770_vm3, %v6779_v51  ;;  %v6781_v44 = vmax.f32 %v6755_v24, 0.0 }
0x1345   : > { %v6780_v9 = vmax.f32 %v6750_v46, 0.0  ;;  %v8954_v29 = vpop.f32.mrb[124].mxu1 }
0x1346   : > { %v6765_v40 = vadd.f32 %v8954_v29, %v7742_v34  ;;  %v6759_v63 = vpop.f32.mrb[125].mxu1 }
0x1347   : > { %v6760_v50 = vadd.f32 %v7742_v34, %v6759_v63  ;;  %8977 = vmatprep.mubr.msk.f32.mxu0 %vm1770_vm3, %v6780_v9 }
0x1348   : > { %8978 = vmatmul.mubr.msk.f32.gmra.mrb[126].mxu0 %vm1770_vm3, %v6781_v44  ;;  %v6783_v4 = vmax.f32 %v6765_v40, 0.0 }
0x1349   : > { %v6782_v21 = vmax.f32 %v6760_v50, 0.0  ;;  %v8957_v18 = vpop.f32.mrb[126].mxu1 }
0x134a   : > { %v6775_v17 = vadd.f32 %v8957_v18, %v7742_v34  ;;  %v6769_v49 = vpop.f32.mrb[127].mxu1 }
0x134b   : > { %v6770_v55 = vadd.f32 %v7742_v34, %v6769_v49  ;;  %8980 = vmatprep.mubr.msk.f32.mxu0 %vm1770_vm3, %v6782_v21 }
0x134c   : > { %8981 = vmatmul.mubr.msk.f32.gmra.mrb[128].mxu0 %vm1770_vm3, %v6783_v4  ;;  %v6785_v25 = vmax.f32 %v6775_v17, 0.0 }
0x134d   : > { %v6784_v42 = vmax.f32 %v6770_v55, 0.0 }
0x134f   : > { %8983 = vmatprep.mubr.msk.f32.mxu0 %vm1770_vm3, %v6784_v42 }
0x1350   : > { %8984 = vmatmul.mubr.msk.f32.gmra.mrb[130].mxu0 %vm1770_vm3, %v6785_v25 }
0x1417   : > { %v8976_v19 = vpop.f32.mrb[124].mxu0 }
0x1418   : > { %v6899_v33 = vadd.f32 %v8976_v19, %v7760_v0  ;;  %v6893_v11 = vpop.f32.mrb[125].mxu0 }
0x1419   : > { %v6894_v28 = vadd.f32 %v7760_v0, %v6893_v11 }
0x141a   : > { %v6933_v24 = vadd.f32 %v6899_v33, %v12261_v16 }
0x141b   : > { %v8979_v31 = vpop.f32.mrb[126].mxu0  ;;  %v6932_v46 = vadd.f32 %v6894_v28, %v12258_v57  ;;  %v7773_v57 = vld [vmem:[%s12543_s21 + $0x20] sm:$0xff] }
0x141c   : > { %v6909_v38 = vadd.f32 %v8979_v31, %v7760_v0  ;;  %v6903_v10 = vpop.f32.mrb[127].mxu0  ;;  %v6947_v44 = vsel %vm668_vm0, %v6933_v24, 0.0  ;;  %8994 = vmatprep.mubr.msk.f32.mxu1 %vm668_vm0, %v7773_v57 }
0x141d   : > { %v6904_v59 = vadd.f32 %v7760_v0, %v6903_v10  ;;  %v6944_v63 = vsel %vm668_vm0, %v6932_v46, 0.0 }
0x141e   : > { %v6935_v29 = vadd.f32 %v6909_v38, %v12271_v32 }
0x141f   : > { %v8982_v48 = vpop.f32.mrb[128].mxu0  ;;  %v6934_v40 = vadd.f32 %v6904_v59, %v12268_v12 }
0x1420   : > { %v6919_v41 = vadd.f32 %v8982_v48, %v7760_v0  ;;  %v6913_v47 = vpop.f32.mrb[129].mxu0  ;;  %v6953_v16 = vsel %vm668_vm0, %v6935_v29, 0.0 }
0x1421   : > { %v6914_v61 = vadd.f32 %v7760_v0, %v6913_v47  ;;  %v6950_v50 = vsel %vm668_vm0, %v6934_v40, 0.0 }
0x1422   : > { %v6937_v15 = vadd.f32 %v6919_v41, %v6633_v54 }
0x1423   : > { %v6936_v1 = vadd.f32 %v6914_v61, %v12278_v45  ;;  %v8985_v20 = vpop.f32.mrb[130].mxu0 }
0x1424   : > { %v6929_v60 = vadd.f32 %v8985_v20, %v7760_v0  ;;  %v6923_v8 = vpop.f32.mrb[131].mxu0  ;;  %v6959_v3 = vsel %vm668_vm0, %v6937_v15, 0.0 }
0x1425   : > { %v6924_v7 = vadd.f32 %v7760_v0, %v6923_v8  ;;  %6960 = vadd.xlane.f32.xlu0 %v6959_v3  ;;  %v6956_v30 = vsel %vm668_vm0, %v6936_v1, 0.0  ;;  %v12365_v8 = vld [vmem:[%s12519_s15 + $0x1] ss:$0 sm:$0xff] }
0x1426   : > { %v6939_v43 = vadd.f32 %v6929_v60, %v12286_v2  ;;  %6957 = vadd.xlane.f32.xlu1 %v6956_v30 }
0x1427   : > { %v6938_v37 = vadd.f32 %v6924_v7, %v12284_v22 }
0x1428   : > { %v6965_v35 = vsel %vm668_vm0, %v6939_v43, 0.0 }
0x1429   : > { %6966 = vadd.xlane.f32.xlu0 %v6965_v35  ;;  %v6962_v27 = vsel %vm668_vm0, %v6938_v37, 0.0  ;;  %v12376_v35 = vld [vmem:[%s12520_s16 + $0x1] ss:$0 sm:$0xff] }
0x142a   : > { %6963 = vadd.xlane.f32.xlu1 %v6962_v27 }
0x14b2   : > { %v6961_v45 = vpop.xlane.xlu0 %6960 }
0x14b3   : > { %v6973_v52 = vmul.f32 0.03125, %v6961_v45  ;;  %v6958_v54 = vpop.xlane.xlu1 %6957 }
0x14b4   : > { %v6972_v14 = vmul.f32 0.03125, %v6958_v54 }
0x14b5   : > { %v12319_v23 = vsub.f32 %v6937_v15, %v6973_v52 }
0x14b6   : > { %v12321_v56 = vsub.f32 %v6936_v1, %v6972_v14  ;;  %v6967_v26 = vpop.xlane.xlu0 %6966 }
0x14b7   : > { %v6975_v62 = vmul.f32 0.03125, %v6967_v26  ;;  %v6964_v2 = vpop.xlane.xlu1 %6963  ;;  %v6989_v22 = vmul.f32 %v12319_v23, %v12319_v23 }
0x14b8   : > { %v6974_v34 = vmul.f32 0.03125, %v6964_v2  ;;  %v6988_v39 = vmul.f32 %v12321_v56, %v12321_v56 }
0x14b9   : > { %v12327_v36 = vsub.f32 %v6939_v43, %v6975_v62  ;;  %v7007_v13 = vsel %vm668_vm0, %v6989_v22, 0.0 }
0x14ba   : > { %v12330_v58 = vsub.f32 %v6938_v37, %v6974_v34  ;;  %7008 = vadd.xlane.f32.xlu0 %v7007_v13  ;;  %v7004_v5 = vsel %vm668_vm0, %v6988_v39, 0.0 }
0x14bb   : > { %7005 = vadd.xlane.f32.xlu1 %v7004_v5  ;;  %v6991_v6 = vmul.f32 %v12327_v36, %v12327_v36 }
0x14bc   : > { %v6990_v51 = vmul.f32 %v12330_v58, %v12330_v58 }
0x14bd   : > { %v7013_v53 = vsel %vm668_vm0, %v6991_v6, 0.0 }
0x14be   : > { %7014 = vadd.xlane.f32.xlu0 %v7013_v53  ;;  %v7010_v9 = vsel %vm668_vm0, %v6990_v51, 0.0  ;;  %v7776_v53 = vld [vmem:[%s12543_s21 + $0x38] sm:$0xff] }
0x14bf   : > { %7011 = vadd.xlane.f32.xlu1 %v7010_v9 }
0x14c2   : > { %6948 = vadd.xlane.f32.xlu0 %v6947_v44 }
0x14c3   : > { %6945 = vadd.xlane.f32.xlu1 %v6944_v63 }
0x14c6   : > { %6954 = vadd.xlane.f32.xlu0 %v6953_v16 }
0x14c7   : > { %6951 = vadd.xlane.f32.xlu1 %v6950_v50 }
0x1547   : > { %v7009_v32 = vpop.xlane.xlu0 %7008 }
0x1548   : > { %v7021_v21 = vmul.f32 0.03125, %v7009_v32  ;;  %v7006_v18 = vpop.xlane.xlu1 %7005 }
0x1549   : > { %v7020_v12 = vmul.f32 0.03125, %v7006_v18 }
0x154a   : > { %v7029_v4 = vadd.f32 1e-05, %v7021_v21 }
0x154b   : > { %v7028_v17 = vadd.f32 1e-05, %v7020_v12  ;;  %v7015_v49 = vpop.xlane.xlu0 %7014 }
0x154c   : > { %10012 = vrsqrt.f32 %v7029_v4  ;;  %v7023_v55 = vmul.f32 0.03125, %v7015_v49  ;;  %v7012_v42 = vpop.xlane.xlu1 %7011 }
0x154d   : > { %10014 = vrsqrt.f32 %v7028_v17  ;;  %v7022_v25 = vmul.f32 0.03125, %v7012_v42 }
0x154e   : > { %v7031_v0 = vadd.f32 1e-05, %v7023_v55 }
0x154f   : > { %v7030_v19 = vadd.f32 1e-05, %v7022_v25  ;;  %v6949_v33 = vpop.xlane.xlu0 %6948 }
0x1550   : > { %10016 = vrsqrt.f32 %v7031_v0  ;;  %v6969_v11 = vmul.f32 0.03125, %v6949_v33  ;;  %v6946_v28 = vpop.xlane.xlu1 %6945 }
0x1551   : > { %10018 = vrsqrt.f32 %v7030_v19  ;;  %v6968_v31 = vmul.f32 0.03125, %v6946_v28 }
0x1552   : > { %v12351_v38 = vsub.f32 %v6933_v24, %v6969_v11 }
0x1553   : > { %v12353_v10 = vsub.f32 %v6932_v46, %v6968_v31  ;;  %v6955_v59 = vpop.xlane.xlu0 %6954 }
0x1554   : > { %v6971_v48 = vmul.f32 0.03125, %v6955_v59  ;;  %v6952_v41 = vpop.xlane.xlu1 %6951  ;;  %v6985_v47 = vmul.f32 %v12351_v38, %v12351_v38 }
0x1555   : > { %v6970_v61 = vmul.f32 0.03125, %v6952_v41  ;;  %v6984_v15 = vmul.f32 %v12353_v10, %v12353_v10 }
0x1556   : > { %v10013_v1 = vpop.eup %10012  ;;  %v12359_v20 = vsub.f32 %v6935_v29, %v6971_v48  ;;  %v6995_v60 = vsel %vm668_vm0, %v6985_v47, 0.0 }
0x1557   : > { %v10015_v3 = vpop.eup %10014  ;;  %v12367_v7 = vsub.f32 %v6934_v40, %v6970_v61  ;;  %6996 = vadd.xlane.f32.xlu0 %v6995_v60  ;;  %v6992_v30 = vsel %vm668_vm0, %v6984_v15, 0.0  ;;  %v7045_v43 = vmul.f32 %v10013_v1, %v12319_v23 }
0x1558   : > { %6993 = vadd.xlane.f32.xlu1 %v6992_v30  ;;  %v6987_v37 = vmul.f32 %v12359_v20, %v12359_v20  ;;  %v7044_v27 = vmul.f32 %v10015_v3, %v12321_v56 }
0x1559   : > { %v6986_v45 = vmul.f32 %v12367_v7, %v12367_v7  ;;  %v7059_v52 = vmul.f32 %v12365_v8, %v7045_v43 }
0x155a   : > { %v10017_v54 = vpop.eup %10016  ;;  %v7001_v14 = vsel %vm668_vm0, %v6987_v37, 0.0  ;;  %v7058_v23 = vmul.f32 %v12365_v8, %v7044_v27 }
0x155b   : > { %v10019_v26 = vpop.eup %10018  ;;  %7002 = vadd.xlane.f32.xlu0 %v7001_v14  ;;  %v6998_v62 = vsel %vm668_vm0, %v6986_v45, 0.0  ;;  %v7073_v2 = vadd.f32 %v12376_v35, %v7059_v52  ;;  %v7047_v22 = vmul.f32 %v10017_v54, %v12327_v36  ;;  %v7774_v36 = vld [vmem:[%s12543_s21 + $0x28] sm:$0xff] }
0x155c   : > { %6999 = vadd.xlane.f32.xlu1 %v6998_v62  ;;  %v7072_v56 = vadd.f32 %v12376_v35, %v7058_v23  ;;  %v7046_v34 = vmul.f32 %v10019_v26, %v12330_v58  ;;  %v7775_v58 = vld [vmem:[%s12543_s21 + $0x30] sm:$0xff] }
0x155d   : > { %v7061_v39 = vmul.f32 %v12365_v8, %v7047_v22 }
0x155e   : > { %v9408_v13 = vpack.c.bf16 %v7073_v2, %v7072_v56  ;;  %v7060_v5 = vmul.f32 %v12365_v8, %v7046_v34 }
0x155f   : > { %v7075_v6 = vadd.f32 %v12376_v35, %v7061_v39 }
0x1560   : > { %9409 = vmatprep.subr.bf16.mxu1 %v9408_v13  ;;  %v7074_v51 = vadd.f32 %v12376_v35, %v7060_v5 }
0x1561   : > { %9411 = vmatpush3.bf16.msra.mxu1 %v9408_v13 }
0x1562   : > { %v9412_v24 = vpack.c.bf16 %v7075_v6, %v7074_v51 }
0x1564   : > { %9413 = vmatprep.subr.bf16.mxu1 %v9412_v24 }
0x1565   : > { %9415 = vmatpush3.bf16.msra.mxu1 %v9412_v24 }
0x1568   : > { %8995 = vmatmul.mubr.msk.f32.vlgmr.msra.gmra.mrb[128].mxu1 %vm668_vm0, %v7774_v36 }
0x1569   : > { %8997 = vmatprep.mubr.msk.f32.mxu1 %vm668_vm0, %v7775_v58 }
0x156c   : > { %8998 = vmatmul.mubr.msk.f32.gmra.mrb[130].mxu1 %vm668_vm0, %v7776_v53 }
0x15e4   : > { %v6997_v46 = vpop.xlane.xlu0 %6996 }
0x15e5   : > { %v7017_v9 = vmul.f32 0.03125, %v6997_v46  ;;  %v6994_v29 = vpop.xlane.xlu1 %6993 }
0x15e6   : > { %v7016_v44 = vmul.f32 0.03125, %v6994_v29 }
0x15e7   : > { %v7025_v40 = vadd.f32 1e-05, %v7017_v9 }
0x15e8   : > { %v7024_v63 = vadd.f32 1e-05, %v7016_v44  ;;  %v7003_v16 = vpop.xlane.xlu0 %7002 }
0x15e9   : > { %10020 = vrsqrt.f32 %v7025_v40  ;;  %v7019_v50 = vmul.f32 0.03125, %v7003_v16  ;;  %v7000_v57 = vpop.xlane.xlu1 %6999 }
0x15ea   : > { %10022 = vrsqrt.f32 %v7024_v63  ;;  %v7018_v32 = vmul.f32 0.03125, %v7000_v57 }
0x15eb   : > { %v7027_v21 = vadd.f32 1e-05, %v7019_v50 }
0x15ec   : > { %v7026_v18 = vadd.f32 1e-05, %v7018_v32 }
0x15ed   : > { %10024 = vrsqrt.f32 %v7027_v21 }
0x15ee   : > { %10026 = vrsqrt.f32 %v7026_v18 }
0x15f3   : > { %v10021_v12 = vpop.eup %10020 }
0x15f4   : > { %v10023_v4 = vpop.eup %10022  ;;  %v7041_v17 = vmul.f32 %v10021_v12, %v12351_v38 }
0x15f5   : > { %v7040_v49 = vmul.f32 %v10023_v4, %v12353_v10 }
0x15f6   : > { %v7055_v55 = vmul.f32 %v12365_v8, %v7041_v17 }
0x15f7   : > { %v10025_v42 = vpop.eup %10024  ;;  %v7054_v25 = vmul.f32 %v12365_v8, %v7040_v49 }
0x15f8   : > { %v10027_v0 = vpop.eup %10026  ;;  %v7069_v19 = vadd.f32 %v12376_v35, %v7055_v55  ;;  %v7043_v33 = vmul.f32 %v10025_v42, %v12359_v20 }
0x15f9   : > { %v7068_v11 = vadd.f32 %v12376_v35, %v7054_v25  ;;  %v7042_v28 = vmul.f32 %v10027_v0, %v12367_v7 }
0x15fa   : > { %v7183_v31 = vsel %vm668_vm0, %v7069_v19, 0.0  ;;  %v7057_v38 = vmul.f32 %v12365_v8, %v7043_v33 }
0x15fb   : > { %7184 = vadd.xlane.f32.xlu0 %v7183_v31  ;;  %v7180_v10 = vsel %vm668_vm0, %v7068_v11, 0.0  ;;  %v7056_v59 = vmul.f32 %v12365_v8, %v7042_v28 }
0x15fc   : > { %7181 = vadd.xlane.f32.xlu1 %v7180_v10  ;;  %v7071_v48 = vadd.f32 %v12376_v35, %v7057_v38 }
0x15fd   : > { %v7070_v41 = vadd.f32 %v12376_v35, %v7056_v59 }
0x15fe   : > { %v7189_v47 = vsel %vm668_vm0, %v7071_v48, 0.0 }
0x15ff   : > { %7190 = vadd.xlane.f32.xlu0 %v7189_v47  ;;  %v7186_v61 = vsel %vm668_vm0, %v7070_v41, 0.0 }
0x1600   : > { %7187 = vadd.xlane.f32.xlu1 %v7186_v61 }
0x163b   : > { %v8996_v15 = vpop.f32.mrb[128].mxu1 }
0x163c   : > { %v7159_v1 = vpop.f32.mrb[129].mxu1  ;;  %v7195_v20 = vsel %vm668_vm0, %v8996_v15, 0.0 }
0x163d   : > { %7196 = vadd.xlane.f32.xlu0 %v7195_v20  ;;  %v7192_v60 = vsel %vm668_vm0, %v7159_v1, 0.0 }
0x163e   : > { %7193 = vadd.xlane.f32.xlu1 %v7192_v60 }
0x163f   : > { %v8999_v8 = vpop.f32.mrb[130].mxu1 }
0x1640   : > { %v7169_v3 = vpop.f32.mrb[131].mxu1  ;;  %v7201_v7 = vsel %vm668_vm0, %v8999_v8, 0.0 }
0x1641   : > { %v7198_v30 = vsel %vm668_vm0, %v7169_v3, 0.0  ;;  %7202 = vadd.xlane.f32.xlu0 %v7201_v7 }
0x1642   : > { %7199 = vadd.xlane.f32.xlu1 %v7198_v30 }
0x1688   : > { %v7185_v43 = vpop.xlane.xlu0 %7184 }
0x1689   : > { %v7205_v37 = vmul.f32 0.03125, %v7185_v43  ;;  %v7182_v35 = vpop.xlane.xlu1 %7181 }
0x168a   : > { %v7204_v27 = vmul.f32 0.03125, %v7182_v35 }
0x168b   : > { %v12425_v45 = vsub.f32 %v7069_v19, %v7205_v37 }
0x168c   : > { %v12427_v52 = vsub.f32 %v7068_v11, %v7204_v27  ;;  %v7191_v54 = vpop.xlane.xlu0 %7190 }
0x168d   : > { %v7207_v14 = vmul.f32 0.03125, %v7191_v54  ;;  %v7188_v23 = vpop.xlane.xlu1 %7187  ;;  %v7221_v26 = vmul.f32 %v12425_v45, %v12425_v45 }
0x168e   : > { %v7206_v62 = vmul.f32 0.03125, %v7188_v23  ;;  %v7220_v2 = vmul.f32 %v12427_v52, %v12427_v52 }
0x168f   : > { %v12433_v22 = vsub.f32 %v7071_v48, %v7207_v14  ;;  %v7231_v56 = vsel %vm668_vm0, %v7221_v26, 0.0 }
0x1690   : > { %v12436_v34 = vsub.f32 %v7070_v41, %v7206_v62  ;;  %7232 = vadd.xlane.f32.xlu0 %v7231_v56  ;;  %v7228_v39 = vsel %vm668_vm0, %v7220_v2, 0.0  ;;  %v7781_v41 = vld [vmem:[%s12521_s17] ss:$0 sm:$0xff] }
0x1691   : > { %7229 = vadd.xlane.f32.xlu1 %v7228_v39  ;;  %v7223_v13 = vmul.f32 %v12433_v22, %v12433_v22 }
0x1692   : > { %v7222_v5 = vmul.f32 %v12436_v34, %v12436_v34 }
0x1693   : > { %v7237_v6 = vsel %vm668_vm0, %v7223_v13, 0.0 }
0x1694   : > { %7238 = vadd.xlane.f32.xlu0 %v7237_v6  ;;  %v7234_v51 = vsel %vm668_vm0, %v7222_v5, 0.0 }
0x1695   : > { %7235 = vadd.xlane.f32.xlu1 %v7234_v51 }
0x16ca   : > { %v7197_v24 = vpop.xlane.xlu0 %7196 }
0x16cb   : > { %v7209_v36 = vmul.f32 0.03125, %v7197_v24  ;;  %v7194_v58 = vpop.xlane.xlu1 %7193 }
0x16cc   : > { %v7208_v53 = vmul.f32 0.03125, %v7194_v58 }
0x16cd   : > { %v12445_v46 = vsub.f32 %v8996_v15, %v7209_v36  ;;  %v7782_v15 = vld [vmem:[%s12522_s18] ss:$0 sm:$0xff] }
0x16ce   : > { %v12447_v9 = vsub.f32 %v7159_v1, %v7208_v53  ;;  %v7203_v29 = vpop.xlane.xlu0 %7202 }
0x16cf   : > { %v7211_v44 = vmul.f32 0.03125, %v7203_v29  ;;  %v7200_v40 = vpop.xlane.xlu1 %7199  ;;  %v7225_v63 = vmul.f32 %v12445_v46, %v12445_v46 }
0x16d0   : > { %v7210_v16 = vmul.f32 0.03125, %v7200_v40  ;;  %v7224_v50 = vmul.f32 %v12447_v9, %v12447_v9 }
0x16d1   : > { %v12453_v57 = vsub.f32 %v8999_v8, %v7211_v44  ;;  %v7243_v32 = vsel %vm668_vm0, %v7225_v63, 0.0 }
0x16d2   : > { %v12456_v21 = vsub.f32 %v7169_v3, %v7210_v16  ;;  %7244 = vadd.xlane.f32.xlu0 %v7243_v32  ;;  %v7240_v18 = vsel %vm668_vm0, %v7224_v50, 0.0 }
0x16d3   : > { %7241 = vadd.xlane.f32.xlu1 %v7240_v18  ;;  %v7227_v12 = vmul.f32 %v12453_v57, %v12453_v57 }
0x16d4   : > { %v7226_v4 = vmul.f32 %v12456_v21, %v12456_v21 }
0x16d5   : > { %v7249_v17 = vsel %vm668_vm0, %v7227_v12, 0.0 }
0x16d6   : > { %7250 = vadd.xlane.f32.xlu0 %v7249_v17  ;;  %v7246_v49 = vsel %vm668_vm0, %v7226_v4, 0.0 }
0x16d7   : > { %7247 = vadd.xlane.f32.xlu1 %v7246_v49 }
0x171d   : > { %v7233_v55 = vpop.xlane.xlu0 %7232 }
0x171e   : > { %v7253_v42 = vmul.f32 0.03125, %v7233_v55  ;;  %v7230_v25 = vpop.xlane.xlu1 %7229 }
0x171f   : > { %v7252_v0 = vmul.f32 0.03125, %v7230_v25 }
0x1720   : > { %v7261_v19 = vadd.f32 1e-05, %v7253_v42 }
0x1721   : > { %v7260_v33 = vadd.f32 1e-05, %v7252_v0  ;;  %v7239_v11 = vpop.xlane.xlu0 %7238 }
0x1722   : > { %10028 = vrsqrt.f32 %v7261_v19  ;;  %v7255_v28 = vmul.f32 0.03125, %v7239_v11  ;;  %v7236_v31 = vpop.xlane.xlu1 %7235 }
0x1723   : > { %10030 = vrsqrt.f32 %v7260_v33  ;;  %v7254_v38 = vmul.f32 0.03125, %v7236_v31 }
0x1724   : > { %v7263_v10 = vadd.f32 1e-05, %v7255_v28 }
0x1725   : > { %v7262_v59 = vadd.f32 1e-05, %v7254_v38 }
0x1726   : > { %10032 = vrsqrt.f32 %v7263_v10 }
0x1727   : > { %10034 = vrsqrt.f32 %v7262_v59 }
0x172c   : > { %v10029_v48 = vpop.eup %10028 }
0x172d   : > { %v10031_v47 = vpop.eup %10030  ;;  %v7277_v61 = vmul.f32 %v10029_v48, %v12425_v45 }
0x172e   : > { %v7276_v1 = vmul.f32 %v10031_v47, %v12427_v52 }
0x172f   : > { %v7291_v20 = vmul.f32 %v7781_v41, %v7277_v61 }
0x1730   : > { %v10033_v60 = vpop.eup %10032  ;;  %v7290_v8 = vmul.f32 %v7781_v41, %v7276_v1 }
0x1731   : > { %v10035_v3 = vpop.eup %10034  ;;  %v7305_v7 = vadd.f32 %v7782_v15, %v7291_v20  ;;  %v7279_v30 = vmul.f32 %v10033_v60, %v12433_v22 }
0x1732   : > { %v7304_v43 = vadd.f32 %v7782_v15, %v7290_v8  ;;  %v7278_v37 = vmul.f32 %v10035_v3, %v12436_v34 }
0x1733   : > { %7313 = vst.msk [vmem:[%s12477_s29 + $0x8] sm:$0xff] %vm668_vm0, %v7305_v7  ;;  %v7293_v35 = vmul.f32 %v7781_v41, %v7279_v30 }
0x1734   : > { %7312 = vst.msk [vmem:[%s12477_s29] sm:$0xff] %vm668_vm0, %v7304_v43  ;;  %v7292_v27 = vmul.f32 %v7781_v41, %v7278_v37 }
0x1735   : > { %v7307_v45 = vadd.f32 %v7782_v15, %v7293_v35 }
0x1736   : > { %v7306_v52 = vadd.f32 %v7782_v15, %v7292_v27 }
0x1737   : > { %7315 = vst.msk [vmem:[%s12477_s29 + $0x18] sm:$0xff] %vm668_vm0, %v7307_v45 }
0x1738   : > { %7314 = vst.msk [vmem:[%s12477_s29 + $0x10] sm:$0xff] %vm668_vm0, %v7306_v52 }
0x175f   : > { %v7245_v54 = vpop.xlane.xlu0 %7244 }
0x1760   : > { %v7257_v14 = vmul.f32 0.03125, %v7245_v54  ;;  %v7242_v23 = vpop.xlane.xlu1 %7241 }
0x1761   : > { %v7256_v26 = vmul.f32 0.03125, %v7242_v23 }
0x1762   : > { %v7265_v62 = vadd.f32 1e-05, %v7257_v14 }
0x1763   : > { %v7264_v2 = vadd.f32 1e-05, %v7256_v26  ;;  %v7251_v22 = vpop.xlane.xlu0 %7250 }
0x1764   : > { %10036 = vrsqrt.f32 %v7265_v62  ;;  %v7259_v56 = vmul.f32 0.03125, %v7251_v22  ;;  %v7248_v34 = vpop.xlane.xlu1 %7247 }
0x1765   : > { %10038 = vrsqrt.f32 %v7264_v2  ;;  %v7258_v39 = vmul.f32 0.03125, %v7248_v34 }
0x1766   : > { %v7267_v13 = vadd.f32 1e-05, %v7259_v56 }
0x1767   : > { %v7266_v5 = vadd.f32 1e-05, %v7258_v39 }
0x1768   : > { %10040 = vrsqrt.f32 %v7267_v13 }
0x1769   : > { %10042 = vrsqrt.f32 %v7266_v5 }
0x176e   : > { %v10037_v6 = vpop.eup %10036 }
0x176f   : > { %v10039_v51 = vpop.eup %10038  ;;  %v7281_v24 = vmul.f32 %v10037_v6, %v12445_v46 }
0x1770   : > { %v7280_v36 = vmul.f32 %v10039_v51, %v12447_v9 }
0x1771   : > { %v7295_v58 = vmul.f32 %v7781_v41, %v7281_v24 }
0x1772   : > { %v10041_v53 = vpop.eup %10040  ;;  %v7294_v29 = vmul.f32 %v7781_v41, %v7280_v36 }
0x1773   : > { %v10043_v44 = vpop.eup %10042  ;;  %v7309_v40 = vadd.f32 %v7782_v15, %v7295_v58  ;;  %v7283_v63 = vmul.f32 %v10041_v53, %v12453_v57 }
0x1774   : > { %v7308_v16 = vadd.f32 %v7782_v15, %v7294_v29  ;;  %v7282_v50 = vmul.f32 %v10043_v44, %v12456_v21 }
0x1775   : > { %7317 = vst.msk [vmem:[%s12477_s29 + $0x28] sm:$0xff] %vm668_vm0, %v7309_v40  ;;  %v7297_v32 = vmul.f32 %v7781_v41, %v7283_v63 }
0x1776   : > { %7316 = vst.msk [vmem:[%s12477_s29 + $0x20] sm:$0xff] %vm668_vm0, %v7308_v16  ;;  %v7296_v46 = vmul.f32 %v7781_v41, %v7282_v50 }
0x1777   : > { %v7311_v18 = vadd.f32 %v7782_v15, %v7297_v32 }
0x1778   : > { %v7310_v12 = vadd.f32 %v7782_v15, %v7296_v46 }
0x1779   : > { %7319 = vst.msk [vmem:[%s12477_s29 + $0x38] sm:$0xff] %vm668_vm0, %v7311_v18 }
0x177a   : > { %7318 = vst.msk [vmem:[%s12477_s29 + $0x30] sm:$0xff] %vm668_vm0, %v7310_v12 }
0x177b PF: > { %s29_s0 = sadd.s32 1, %s10066_s0  }
0x177c   : > { %p26_p4 = scmp.ge.s32.totalorder %s29_s0, 4  }
0x177e   :  { %28 = sbr.rel (!%p26_p4) target bundleno = 5 (0x5), region = 144 }

</bundles_post_ra>
